<compile_context>
chip_gen: v5e
topology: v5e:2x2
jax: 0.10.0
libtpu: 0.0.40
codegen_flags: <defaults>
</compile_context>

<pallas_src>
import functools

import jax
import jax.numpy as jnp
from jax.experimental import pallas as pl
from jax.experimental.pallas import tpu as pltpu

LANE = 128


def _round_up(x, m):
    return (x + m - 1) // m * m


# ----------------------------------------------------------------------------
# Fused conv kernel:
#   [optional bn-affine + relu on the input]  ->  KxK conv (bf16 MXU, f32 acc)
#   -> [optional bias]  ->  stride folding  ->  store
#   -> [optional per-batch-element BN sum / sum-of-squares outputs]
# ----------------------------------------------------------------------------
def _fused_conv_kernel(*refs, kh, kw, stride, padding, in_affine, with_bias,
                       with_stats):
    it = iter(refs)
    x_ref = next(it)
    w_ref = next(it)
    scale_ref = next(it) if in_affine else None
    shift_ref = next(it) if in_affine else None
    b_ref = next(it) if with_bias else None
    o_ref = next(it)
    sum_ref = next(it) if with_stats else None
    sq_ref = next(it) if with_stats else None
    xpad_ref = next(it) if padding > 0 else None

    x = x_ref[0].astype(jnp.float32)                       # (H, W, Cin_p)
    if in_affine:                                          # fused bn1 affine + relu
        x = jnp.maximum(x * scale_ref[...] + shift_ref[...], 0.0)

    h, wd, cin = x.shape
    cout = w_ref.shape[-1]
    hout1 = h + 2 * padding - kh + 1                       # stride-1 output extents
    wout1 = wd + 2 * padding - kw + 1

    if padding > 0:
        # Zero-padded copy of the (affine'd) input in VMEM.  The W axis of the
        # scratch is padded by 8 on each side so the interior store is
        # sublane-aligned; only the columns near [8 - padding, ...] are read.
        xpad_ref[...] = jnp.zeros_like(xpad_ref)
        xpad_ref[padding:padding + h, 8:8 + wd, :] = x
        w_off = 8 - padding
    else:
        w_off = 0

    acc = jnp.zeros((hout1 * wout1, cout), jnp.float32)
    for ky in range(kh):
        for kx in range(kw):
            if padding > 0:
                patch = xpad_ref[ky:ky + hout1, w_off + kx:w_off + kx + wout1, :]
            else:
                patch = x[ky:ky + hout1, kx:kx + wout1, :]
            patch = patch.astype(jnp.bfloat16).reshape(hout1 * wout1, cin)
            acc = acc + jnp.dot(patch, w_ref[ky * kw + kx],
                                preferred_element_type=jnp.float32)

    if with_bias:
        acc = acc + b_ref[...].astype(jnp.float32)

    out = acc.reshape(hout1, wout1, cout)
    if stride > 1:
        # Fold the stride: keep rows/cols 0, s, 2s, ... via reshape + static
        # index (wrapper guarantees hout1 % stride == wout1 % stride == 0 here).
        out = out.reshape(hout1 // stride, stride, wout1, cout)[:, 0]
        out = out.reshape(hout1 // stride, wout1 // stride, stride, cout)[:, :, 0, :]

    o_ref[0] = out.astype(o_ref.dtype)

    if with_stats:
        # Per-batch-element channel sums for BatchNorm batch statistics.
        sum_ref[0] = jnp.sum(out, axis=(0, 1))[None, :]
        sq_ref[0] = jnp.sum(out * out, axis=(0, 1))[None, :]


def conv2d_fused(x, w_flat, *, kh, kw, stride=1, padding=0,
                 in_scale=None, in_shift=None, bias=None, with_stats=False):
    """x: (N, H, W, Cp_in) f32; w_flat: (kh*kw, Cp_in, Cp_out) bf16; bias: (1, Cp_out)."""
    n, h, wd, cp_in = x.shape
    ktaps, _, cp_out = w_flat.shape
    assert ktaps == kh * kw

    hout1 = h + 2 * padding - kh + 1
    wout1 = wd + 2 * padding - kw + 1
    fold = (stride == 1) or (hout1 % stride == 0 and wout1 % stride == 0)
    if fold and stride > 1:
        hout_o, wout_o = hout1 // stride, wout1 // stride
        k_stride = stride
    else:
        hout_o, wout_o = hout1, wout1
        k_stride = 1                    # rare fallback: slice outside the kernel

    in_affine = in_scale is not None
    with_bias = bias is not None

    in_specs = [
        pl.BlockSpec((1, h, wd, cp_in), lambda i: (i, 0, 0, 0)),
        pl.BlockSpec((ktaps, cp_in, cp_out), lambda i: (0, 0, 0)),
    ]
    args = [x, w_flat]
    if in_affine:
        in_specs += [pl.BlockSpec((1, cp_in), lambda i: (0, 0)),
                     pl.BlockSpec((1, cp_in), lambda i: (0, 0))]
        args += [in_scale, in_shift]
    if with_bias:
        in_specs.append(pl.BlockSpec((1, cp_out), lambda i: (0, 0)))
        args.append(bias)

    if with_stats:
        out_shape = (jax.ShapeDtypeStruct((n, hout_o, wout_o, cp_out), jnp.float32),
                     jax.ShapeDtypeStruct((n, 1, cp_out), jnp.float32),
                     jax.ShapeDtypeStruct((n, 1, cp_out), jnp.float32))
        out_specs = (pl.BlockSpec((1, hout_o, wout_o, cp_out), lambda i: (i, 0, 0, 0)),
                     pl.BlockSpec((1, 1, cp_out), lambda i: (i, 0, 0)),
                     pl.BlockSpec((1, 1, cp_out), lambda i: (i, 0, 0)))
    else:
        out_shape = jax.ShapeDtypeStruct((n, hout_o, wout_o, cp_out), jnp.float32)
        out_specs = pl.BlockSpec((1, hout_o, wout_o, cp_out), lambda i: (i, 0, 0, 0))

    scratch_shapes = []
    if padding > 0:
        scratch_shapes.append(
            pltpu.VMEM((h + 2 * padding, wd + 16, cp_in), jnp.float32))

    kernel = functools.partial(
        _fused_conv_kernel, kh=kh, kw=kw, stride=k_stride, padding=padding,
        in_affine=in_affine, with_bias=with_bias, with_stats=with_stats)

    res = pl.pallas_call(
        kernel,
        out_shape=out_shape,
        grid_spec=pltpu.PrefetchScalarGridSpec(
            num_scalar_prefetch=0, grid=(n,),
            in_specs=in_specs, out_specs=out_specs,
            scratch_shapes=scratch_shapes),
        compiler_params=pltpu.CompilerParams(dimension_semantics=("parallel",)),
    )(*args)

    if with_stats:
        out, s, q = res
    else:
        out, s, q = res, None, None

    if stride > 1 and not fold:
        # Fallback (not hit for the shapes here): stride-1 output, slice outside.
        out = out[:, ::stride, ::stride, :]
        if with_stats:
            s = jnp.sum(out, axis=(1, 2))[:, None, :]
            q = jnp.sum(out * out, axis=(1, 2))[:, None, :]

    return (out, s, q) if with_stats else out


# ----------------------------------------------------------------------------
# Fused tail: bn2 affine + residual add + ReLU (lane-dense, Cp = 128).
# ----------------------------------------------------------------------------
def _bn_add_relu_kernel(y_ref, scale_ref, shift_ref, res_ref, o_ref):
    y = y_ref[0].astype(jnp.float32)
    o = y * scale_ref[...] + shift_ref[...] + res_ref[0].astype(jnp.float32)
    o_ref[0] = jnp.maximum(o, 0.0).astype(o_ref.dtype)


def bn_add_relu(y, scale, shift, residual):
    n, h, w, cp = y.shape
    return pl.pallas_call(
        _bn_add_relu_kernel,
        out_shape=jax.ShapeDtypeStruct((n, h, w, cp), jnp.float32),
        grid_spec=pltpu.PrefetchScalarGridSpec(
            num_scalar_prefetch=0, grid=(n,),
            in_specs=[pl.BlockSpec((1, h, w, cp), lambda i: (i, 0, 0, 0)),
                      pl.BlockSpec((1, cp), lambda i: (0, 0)),
                      pl.BlockSpec((1, cp), lambda i: (0, 0)),
                      pl.BlockSpec((1, h, w, cp), lambda i: (i, 0, 0, 0))],
            out_specs=pl.BlockSpec((1, h, w, cp), lambda i: (i, 0, 0, 0))),
        compiler_params=pltpu.CompilerParams(dimension_semantics=("parallel",)),
    )(y, scale, shift, residual)


# ----------------------------------------------------------------------------
# Parameter packing helpers + BN affine from fused stats.
# ----------------------------------------------------------------------------
def _pad_weights(w, cp_in, cp_out):
    kh, kw, cin, cout = w.shape
    wp = jnp.pad(w, ((0, 0), (0, 0), (0, cp_in - cin), (0, cp_out - cout)))
    return wp.reshape(kh * kw, cp_in, cp_out).astype(jnp.bfloat16)


def _pad_vec(v, cp):
    return jnp.pad(v.astype(jnp.float32), (0, cp - v.shape[0]))


def _bn_affine(s, q, out_shape, gamma_p, beta_p, eps):
    n, ho, wo, _ = out_shape
    count = float(n * ho * wo)
    total = jnp.sum(s, axis=0)[0]
    total_sq = jnp.sum(q, axis=0)[0]
    mean = total / count
    var = jnp.maximum(total_sq / count - mean * mean, 0.0)   # clamp: no NaN from cancellation
    scale = gamma_p / jnp.sqrt(var + eps)
    shift = beta_p - mean * scale
    return scale.reshape(1, -1), shift.reshape(1, -1)


# ----------------------------------------------------------------------------
# Residual block forward (NCHW in / NCHW out, like the PyTorch module).
# ----------------------------------------------------------------------------
def residual_forward(x_nchw, params, *, use_1x1conv, strides, eps=1e-5):
    n, cin, h, w = x_nchw.shape
    cout = params["gamma1"].shape[0]
    cp_in = _round_up(max(cin, 1), LANE)
    cp_out = _round_up(max(cout, 1), LANE)

    # NCHW -> NHWC and lane-dense channel padding (boundary-only layout plumbing).
    x = jnp.transpose(x_nchw, (0, 2, 3, 1))
    x = jnp.pad(x, ((0, 0), (0, 0), (0, 0), (0, cp_in - cin))).astype(jnp.float32)

    w1 = _pad_weights(params["w1"], cp_in, cp_out)
    w2 = _pad_weights(params["w2"], cp_out, cp_out)
    gamma1, beta1 = _pad_vec(params["gamma1"], cp_out), _pad_vec(params["beta1"], cp_out)
    gamma2, beta2 = _pad_vec(params["gamma2"], cp_out), _pad_vec(params["beta2"], cp_out)

    # conv1 (bias dropped: bn1 cancels it exactly) + fused BN batch-stat outputs.
    y1, s1, q1 = conv2d_fused(x, w1, kh=3, kw=3, stride=strides, padding=1,
                              with_stats=True)
    scale1, shift1 = _bn_affine(s1, q1, y1.shape, gamma1, beta1, eps)

    # conv2: bn1 affine + relu fused into its input path; bias dropped (bn2
    # cancels it); fused BN batch-stat outputs for bn2.
    y2, s2, q2 = conv2d_fused(y1, w2, kh=3, kw=3, stride=1, padding=1,
                              in_scale=scale1, in_shift=shift1, with_stats=True)
    scale2, shift2 = _bn_affine(s2, q2, y2.shape, gamma2, beta2, eps)

    # Skip branch: optional 1x1 strided projection (keeps its bias), else identity.
    if use_1x1conv:
        w3 = _pad_weights(params["w3"], cp_in, cp_out)
        b3 = _pad_vec(params["b3"], cp_out).reshape(1, cp_out)
        xs = conv2d_fused(x, w3, kh=1, kw=1, stride=strides, padding=0, bias=b3)
    else:
        xs = x

    out = bn_add_relu(y2, scale2, shift2, xs)
    out = out[..., :cout]
    return jnp.transpose(out, (0, 3, 1, 2))                  # NHWC -> NCHW


# ----------------------------------------------------------------------------
# Deterministic parameter init + pure-JAX f32 reference for a sanity check.
# (b1/b2 are generated and used by the reference; the Pallas path drops them
#  because the following BatchNorm cancels any per-channel conv bias exactly.)
# ----------------------------------------------------------------------------
def make_params(key, cin, cout, use_1x1conv):
    ks = jax.random.split(key, 8)
    p = {
        "w1": 0.1 * jax.random.normal(ks[0], (3, 3, cin, cout), jnp.float32),
        "b1": 0.1 * jax.random.normal(ks[1], (cout,), jnp.float32),
        "w2": 0.1 * jax.random.normal(ks[2], (3, 3, cout, cout), jnp.float32),
        "b2": 0.1 * jax.random.normal(ks[3], (cout,), jnp.float32),
        "gamma1": 1.0 + 0.1 * jax.random.normal(ks[4], (cout,), jnp.float32),
        "beta1": 0.1 * jax.random.normal(ks[5], (cout,), jnp.float32),
        "gamma2": 1.0 + 0.1 * jax.random.normal(ks[6], (cout,), jnp.float32),
        "beta2": 0.1 * jax.random.normal(ks[7], (cout,), jnp.float32),
    }
    if use_1x1conv:
        k3a, k3b = jax.random.split(ks[0])
        p["w3"] = 0.1 * jax.random.normal(k3a, (1, 1, cin, cout), jnp.float32)
        p["b3"] = 0.1 * jax.random.normal(k3b, (cout,), jnp.float32)
    return p


def _ref_conv(x, w, b, stride, padding):
    out = jax.lax.conv_general_dilated(
        x, w, window_strides=(stride, stride),
        padding=[(padding, padding), (padding, padding)],
        dimension_numbers=("NHWC", "HWIO", "NHWC"))
    return out + b


def _ref_bn(y, gamma, beta, eps=1e-5):
    mean = y.mean(axis=(0, 1, 2))
    var = y.var(axis=(0, 1, 2))
    return gamma * (y - mean) / jnp.sqrt(var + eps) + beta


def residual_ref(x_nchw, params, use_1x1conv, strides):
    x = jnp.transpose(x_nchw, (0, 2, 3, 1))
    y = jax.nn.relu(_ref_bn(_ref_conv(x, params["w1"], params["b1"], strides, 1),
                            params["gamma1"], params["beta1"]))
    y = _ref_bn(_ref_conv(y, params["w2"], params["b2"], 1, 1),
                params["gamma2"], params["beta2"])
    xs = _ref_conv(x, params["w3"], params["b3"], strides, 0) if use_1x1conv else x
    return jnp.transpose(jax.nn.relu(y + xs), (0, 3, 1, 2))


if __name__ == "__main__":
    key = jax.random.PRNGKey(0)
    kx, kpa, kpb = jax.random.split(key, 3)
    x = jax.random.normal(kx, (2, 4, 16, 16), jnp.float32)    # NCHW, like PyTorch

    # Config A: identity skip (use_1x1conv=False, stride=1), 4 -> 4 channels
    pA = make_params(kpa, 4, 4, False)
    outA = residual_forward(x, pA, use_1x1conv=False, strides=1)
    refA = residual_ref(x, pA, False, 1)

    # Config B: 1x1 projection skip + downsample (stride=2), 4 -> 8 channels
    pB = make_params(kpb, 4, 8, True)
    outB = residual_forward(x, pB, use_1x1conv=True, strides=2)
    refB = residual_ref(x, pB, True, 2)

    jax.block_until_ready((outA, outB))
    assert outA.shape == (2, 4, 16, 16), outA.shape
    assert outB.shape == (2, 8, 8, 8), outB.shape
    # Tolerance covers bf16 MXU operands vs the pure-f32 XLA reference.
    errA = float(jnp.max(jnp.abs(outA - refA)))
    errB = float(jnp.max(jnp.abs(outB - refB)))
    assert jnp.allclose(outA, refA, rtol=5e-2, atol=5e-2), errA
    assert jnp.allclose(outB, refB, rtol=5e-2, atol=5e-2), errB
    print("KERNEL_OK")
</pallas_src>

<mosaic_0001>
module attributes {stable_mosaic.version = 11 : i64} {
  func.func @_fused_conv_kernel(%arg0: i32, %arg1: memref<1x16x16x128xf32, #tpu.memory_space<vmem>>, %arg2: memref<9x128x128xbf16, #tpu.memory_space<vmem>>, %arg3: memref<1x16x16x128xf32, #tpu.memory_space<vmem>>, %arg4: memref<1x1x128xf32, #tpu.memory_space<vmem>>, %arg5: memref<1x1x128xf32, #tpu.memory_space<vmem>>, %arg6: memref<18x32x128xf32, #tpu.memory_space<vmem>>) attributes {dimension_semantics = [#tpu.dimension_semantics<parallel>], iteration_bounds = array<i64: 2>, scalar_prefetch = 0 : i64, scratch_operands = 1 : i64, tpu.core_type = #tpu.core_type<tc>, window_params = [{transform_indices = @transform_0, window_bounds = array<i64: 1, 16, 16, 128>}, {pipeline_mode = #tpu.pipeline_mode<synchronous>, transform_indices = @transform_1, window_bounds = array<i64: 9, 128, 128>}, {transform_indices = @transform_2, window_bounds = array<i64: 1, 16, 16, 128>}, {transform_indices = @transform_3, window_bounds = array<i64: 1, 1, 128>}, {transform_indices = @transform_4, window_bounds = array<i64: 1, 1, 128>}]} {
    %c0 = arith.constant 0 : index
    %c0_0 = arith.constant 0 : index
    %c0_1 = arith.constant 0 : index
    %c0_2 = arith.constant 0 : index
    %0 = vector.load %arg1[%c0, %c0_0, %c0_1, %c0_2] : memref<1x16x16x128xf32, #tpu.memory_space<vmem>>, vector<1x16x16x128xf32>
    %1 = vector.shape_cast %0 : vector<1x16x16x128xf32> to vector<16x16x128xf32>
    %cst = arith.constant 0.000000e+00 : f32
    %2 = vector.broadcast %cst : f32 to vector<18x32x128xf32>
    %c0_3 = arith.constant 0 : index
    %c0_4 = arith.constant 0 : index
    %c0_5 = arith.constant 0 : index
    %3 = vector.load %arg6[%c0_3, %c0_4, %c0_5] : memref<18x32x128xf32, #tpu.memory_space<vmem>>, vector<18x32x128xf32>
    tpu.vector_store %arg6[%c0_3, %c0_4, %c0_5], %2 {strides = array<i32>} : memref<18x32x128xf32, #tpu.memory_space<vmem>>, vector<18x32x128xf32>,
    %c1 = arith.constant 1 : index
    %c8 = arith.constant 8 : index
    %c0_6 = arith.constant 0 : index
    %4 = vector.load %arg6[%c1, %c8, %c0_6] : memref<18x32x128xf32, #tpu.memory_space<vmem>>, vector<16x16x128xf32>
    tpu.vector_store %arg6[%c1, %c8, %c0_6], %1 {strides = array<i32>} : memref<18x32x128xf32, #tpu.memory_space<vmem>>, vector<16x16x128xf32>,
    %cst_7 = arith.constant 0.000000e+00 : f32
    %5 = vector.broadcast %cst_7 : f32 to vector<256x128xf32>
    %c0_8 = arith.constant 0 : index
    %c7 = arith.constant 7 : index
    %c0_9 = arith.constant 0 : index
    %6 = vector.load %arg6[%c0_8, %c7, %c0_9] : memref<18x32x128xf32, #tpu.memory_space<vmem>>, vector<16x16x128xf32>
    %7 = arith.truncf %6 : vector<16x16x128xf32> to vector<16x16x128xbf16>
    %8 = vector.shape_cast %7 : vector<16x16x128xbf16> to vector<256x128xbf16>
    %c0_10 = arith.constant 0 : index
    %c0_11 = arith.constant 0 : index
    %c0_12 = arith.constant 0 : index
    %9 = vector.load %arg2[%c0_10, %c0_11, %c0_12] : memref<9x128x128xbf16, #tpu.memory_space<vmem>>, vector<1x128x128xbf16>
    %10 = vector.shape_cast %9 : vector<1x128x128xbf16> to vector<128x128xbf16>
    %cst_13 = arith.constant dense<0.000000e+00> : vector<256x128xf32>
    %11 = tpu.matmul %8, %10, %cst_13 {dimension_numbers = #tpu.dot_dimension_numbers<[1], [0], [0], [1], [0, 0, 1, 1], [], []>} : vector<256x128xbf16>, vector<128x128xbf16>, vector<256x128xf32> -> vector<256x128xf32>
    %12 = arith.addf %5, %11 : vector<256x128xf32>
    %c0_14 = arith.constant 0 : index
    %c8_15 = arith.constant 8 : index
    %c0_16 = arith.constant 0 : index
    %13 = vector.load %arg6[%c0_14, %c8_15, %c0_16] : memref<18x32x128xf32, #tpu.memory_space<vmem>>, vector<16x16x128xf32>
    %14 = arith.truncf %13 : vector<16x16x128xf32> to vector<16x16x128xbf16>
    %15 = vector.shape_cast %14 : vector<16x16x128xbf16> to vector<256x128xbf16>
    %c1_17 = arith.constant 1 : index
    %c0_18 = arith.constant 0 : index
    %c0_19 = arith.constant 0 : index
    %16 = vector.load %arg2[%c1_17, %c0_18, %c0_19] : memref<9x128x128xbf16, #tpu.memory_space<vmem>>, vector<1x128x128xbf16>
    %17 = vector.shape_cast %16 : vector<1x128x128xbf16> to vector<128x128xbf16>
    %cst_20 = arith.constant dense<0.000000e+00> : vector<256x128xf32>
    %18 = tpu.matmul %15, %17, %cst_20 {dimension_numbers = #tpu.dot_dimension_numbers<[1], [0], [0], [1], [0, 0, 1, 1], [], []>} : vector<256x128xbf16>, vector<128x128xbf16>, vector<256x128xf32> -> vector<256x128xf32>
    %19 = arith.addf %12, %18 : vector<256x128xf32>
    %c0_21 = arith.constant 0 : index
    %c9 = arith.constant 9 : index
    %c0_22 = arith.constant 0 : index
    %20 = vector.load %arg6[%c0_21, %c9, %c0_22] : memref<18x32x128xf32, #tpu.memory_space<vmem>>, vector<16x16x128xf32>
    %21 = arith.truncf %20 : vector<16x16x128xf32> to vector<16x16x128xbf16>
    %22 = vector.shape_cast %21 : vector<16x16x128xbf16> to vector<256x128xbf16>
    %c2 = arith.constant 2 : index
    %c0_23 = arith.constant 0 : index
    %c0_24 = arith.constant 0 : index
    %23 = vector.load %arg2[%c2, %c0_23, %c0_24] : memref<9x128x128xbf16, #tpu.memory_space<vmem>>, vector<1x128x128xbf16>
    %24 = vector.shape_cast %23 : vector<1x128x128xbf16> to vector<128x128xbf16>
    %cst_25 = arith.constant dense<0.000000e+00> : vector<256x128xf32>
    %25 = tpu.matmul %22, %24, %cst_25 {dimension_numbers = #tpu.dot_dimension_numbers<[1], [0], [0], [1], [0, 0, 1, 1], [], []>} : vector<256x128xbf16>, vector<128x128xbf16>, vector<256x128xf32> -> vector<256x128xf32>
    %26 = arith.addf %19, %25 : vector<256x128xf32>
    %c1_26 = arith.constant 1 : index
    %c7_27 = arith.constant 7 : index
    %c0_28 = arith.constant 0 : index
    %27 = vector.load %arg6[%c1_26, %c7_27, %c0_28] : memref<18x32x128xf32, #tpu.memory_space<vmem>>, vector<16x16x128xf32>
    %28 = arith.truncf %27 : vector<16x16x128xf32> to vector<16x16x128xbf16>
    %29 = vector.shape_cast %28 : vector<16x16x128xbf16> to vector<256x128xbf16>
    %c3 = arith.constant 3 : index
    %c0_29 = arith.constant 0 : index
    %c0_30 = arith.constant 0 : index
    %30 = vector.load %arg2[%c3, %c0_29, %c0_30] : memref<9x128x128xbf16, #tpu.memory_space<vmem>>, vector<1x128x128xbf16>
    %31 = vector.shape_cast %30 : vector<1x128x128xbf16> to vector<128x128xbf16>
    %cst_31 = arith.constant dense<0.000000e+00> : vector<256x128xf32>
    %32 = tpu.matmul %29, %31, %cst_31 {dimension_numbers = #tpu.dot_dimension_numbers<[1], [0], [0], [1], [0, 0, 1, 1], [], []>} : vector<256x128xbf16>, vector<128x128xbf16>, vector<256x128xf32> -> vector<256x128xf32>
    %33 = arith.addf %26, %32 : vector<256x128xf32>
    %c1_32 = arith.constant 1 : index
    %c8_33 = arith.constant 8 : index
    %c0_34 = arith.constant 0 : index
    %34 = vector.load %arg6[%c1_32, %c8_33, %c0_34] : memref<18x32x128xf32, #tpu.memory_space<vmem>>, vector<16x16x128xf32>
    %35 = arith.truncf %34 : vector<16x16x128xf32> to vector<16x16x128xbf16>
    %36 = vector.shape_cast %35 : vector<16x16x128xbf16> to vector<256x128xbf16>
    %c4 = arith.constant 4 : index
    %c0_35 = arith.constant 0 : index
    %c0_36 = arith.constant 0 : index
    %37 = vector.load %arg2[%c4, %c0_35, %c0_36] : memref<9x128x128xbf16, #tpu.memory_space<vmem>>, vector<1x128x128xbf16>
    %38 = vector.shape_cast %37 : vector<1x128x128xbf16> to vector<128x128xbf16>
    %cst_37 = arith.constant dense<0.000000e+00> : vector<256x128xf32>
    %39 = tpu.matmul %36, %38, %cst_37 {dimension_numbers = #tpu.dot_dimension_numbers<[1], [0], [0], [1], [0, 0, 1, 1], [], []>} : vector<256x128xbf16>, vector<128x128xbf16>, vector<256x128xf32> -> vector<256x128xf32>
    %40 = arith.addf %33, %39 : vector<256x128xf32>
    %c1_38 = arith.constant 1 : index
    %c9_39 = arith.constant 9 : index
    %c0_40 = arith.constant 0 : index
    %41 = vector.load %arg6[%c1_38, %c9_39, %c0_40] : memref<18x32x128xf32, #tpu.memory_space<vmem>>, vector<16x16x128xf32>
    %42 = arith.truncf %41 : vector<16x16x128xf32> to vector<16x16x128xbf16>
    %43 = vector.shape_cast %42 : vector<16x16x128xbf16> to vector<256x128xbf16>
    %c5 = arith.constant 5 : index
    %c0_41 = arith.constant 0 : index
    %c0_42 = arith.constant 0 : index
    %44 = vector.load %arg2[%c5, %c0_41, %c0_42] : memref<9x128x128xbf16, #tpu.memory_space<vmem>>, vector<1x128x128xbf16>
    %45 = vector.shape_cast %44 : vector<1x128x128xbf16> to vector<128x128xbf16>
    %cst_43 = arith.constant dense<0.000000e+00> : vector<256x128xf32>
    %46 = tpu.matmul %43, %45, %cst_43 {dimension_numbers = #tpu.dot_dimension_numbers<[1], [0], [0], [1], [0, 0, 1, 1], [], []>} : vector<256x128xbf16>, vector<128x128xbf16>, vector<256x128xf32> -> vector<256x128xf32>
    %47 = arith.addf %40, %46 : vector<256x128xf32>
    %c2_44 = arith.constant 2 : index
    %c7_45 = arith.constant 7 : index
    %c0_46 = arith.constant 0 : index
    %48 = vector.load %arg6[%c2_44, %c7_45, %c0_46] : memref<18x32x128xf32, #tpu.memory_space<vmem>>, vector<16x16x128xf32>
    %49 = arith.truncf %48 : vector<16x16x128xf32> to vector<16x16x128xbf16>
    %50 = vector.shape_cast %49 : vector<16x16x128xbf16> to vector<256x128xbf16>
    %c6 = arith.constant 6 : index
    %c0_47 = arith.constant 0 : index
    %c0_48 = arith.constant 0 : index
    %51 = vector.load %arg2[%c6, %c0_47, %c0_48] : memref<9x128x128xbf16, #tpu.memory_space<vmem>>, vector<1x128x128xbf16>
    %52 = vector.shape_cast %51 : vector<1x128x128xbf16> to vector<128x128xbf16>
    %cst_49 = arith.constant dense<0.000000e+00> : vector<256x128xf32>
    %53 = tpu.matmul %50, %52, %cst_49 {dimension_numbers = #tpu.dot_dimension_numbers<[1], [0], [0], [1], [0, 0, 1, 1], [], []>} : vector<256x128xbf16>, vector<128x128xbf16>, vector<256x128xf32> -> vector<256x128xf32>
    %54 = arith.addf %47, %53 : vector<256x128xf32>
    %c2_50 = arith.constant 2 : index
    %c8_51 = arith.constant 8 : index
    %c0_52 = arith.constant 0 : index
    %55 = vector.load %arg6[%c2_50, %c8_51, %c0_52] : memref<18x32x128xf32, #tpu.memory_space<vmem>>, vector<16x16x128xf32>
    %56 = arith.truncf %55 : vector<16x16x128xf32> to vector<16x16x128xbf16>
    %57 = vector.shape_cast %56 : vector<16x16x128xbf16> to vector<256x128xbf16>
    %c7_53 = arith.constant 7 : index
    %c0_54 = arith.constant 0 : index
    %c0_55 = arith.constant 0 : index
    %58 = vector.load %arg2[%c7_53, %c0_54, %c0_55] : memref<9x128x128xbf16, #tpu.memory_space<vmem>>, vector<1x128x128xbf16>
    %59 = vector.shape_cast %58 : vector<1x128x128xbf16> to vector<128x128xbf16>
    %cst_56 = arith.constant dense<0.000000e+00> : vector<256x128xf32>
    %60 = tpu.matmul %57, %59, %cst_56 {dimension_numbers = #tpu.dot_dimension_numbers<[1], [0], [0], [1], [0, 0, 1, 1], [], []>} : vector<256x128xbf16>, vector<128x128xbf16>, vector<256x128xf32> -> vector<256x128xf32>
    %61 = arith.addf %54, %60 : vector<256x128xf32>
    %c2_57 = arith.constant 2 : index
    %c9_58 = arith.constant 9 : index
    %c0_59 = arith.constant 0 : index
    %62 = vector.load %arg6[%c2_57, %c9_58, %c0_59] : memref<18x32x128xf32, #tpu.memory_space<vmem>>, vector<16x16x128xf32>
    %63 = arith.truncf %62 : vector<16x16x128xf32> to vector<16x16x128xbf16>
    %64 = vector.shape_cast %63 : vector<16x16x128xbf16> to vector<256x128xbf16>
    %c8_60 = arith.constant 8 : index
    %c0_61 = arith.constant 0 : index
    %c0_62 = arith.constant 0 : index
    %65 = vector.load %arg2[%c8_60, %c0_61, %c0_62] : memref<9x128x128xbf16, #tpu.memory_space<vmem>>, vector<1x128x128xbf16>
    %66 = vector.shape_cast %65 : vector<1x128x128xbf16> to vector<128x128xbf16>
    %cst_63 = arith.constant dense<0.000000e+00> : vector<256x128xf32>
    %67 = tpu.matmul %64, %66, %cst_63 {dimension_numbers = #tpu.dot_dimension_numbers<[1], [0], [0], [1], [0, 0, 1, 1], [], []>} : vector<256x128xbf16>, vector<128x128xbf16>, vector<256x128xf32> -> vector<256x128xf32>
    %68 = arith.addf %61, %67 : vector<256x128xf32>
    %69 = vector.shape_cast %68 : vector<256x128xf32> to vector<16x16x128xf32>
    %c0_64 = arith.constant 0 : index
    %c0_65 = arith.constant 0 : index
    %c0_66 = arith.constant 0 : index
    %c0_67 = arith.constant 0 : index
    %70 = vector.load %arg3[%c0_64, %c0_65, %c0_66, %c0_67] : memref<1x16x16x128xf32, #tpu.memory_space<vmem>>, vector<1x16x16x128xf32>
    %71 = vector.shape_cast %70 : vector<1x16x16x128xf32> to vector<16x16x128xf32>
    %72 = vector.shape_cast %69 : vector<16x16x128xf32> to vector<1x16x16x128xf32>
    tpu.vector_store %arg3[%c0_64, %c0_65, %c0_66, %c0_67], %72 {strides = array<i32>} : memref<1x16x16x128xf32, #tpu.memory_space<vmem>>, vector<1x16x16x128xf32>,
    %cst_68 = arith.constant dense<0.000000e+00> : vector<128xf32>
    %73 = vector.multi_reduction <add>, %69, %cst_68 [0, 1] : vector<16x16x128xf32> to vector<128xf32>
    %74 = vector.shape_cast %73 : vector<128xf32> to vector<1x128xf32>
    %c0_69 = arith.constant 0 : index
    %c0_70 = arith.constant 0 : index
    %c0_71 = arith.constant 0 : index
    %75 = vector.load %arg4[%c0_69, %c0_70, %c0_71] : memref<1x1x128xf32, #tpu.memory_space<vmem>>, vector<1x1x128xf32>
    %76 = vector.shape_cast %75 : vector<1x1x128xf32> to vector<1x128xf32>
    %77 = vector.shape_cast %74 : vector<1x128xf32> to vector<1x1x128xf32>
    tpu.vector_store %arg4[%c0_69, %c0_70, %c0_71], %77 {strides = array<i32>} : memref<1x1x128xf32, #tpu.memory_space<vmem>>, vector<1x1x128xf32>,
    %78 = arith.mulf %69, %69 : vector<16x16x128xf32>
    %cst_72 = arith.constant dense<0.000000e+00> : vector<128xf32>
    %79 = vector.multi_reduction <add>, %78, %cst_72 [0, 1] : vector<16x16x128xf32> to vector<128xf32>
    %80 = vector.shape_cast %79 : vector<128xf32> to vector<1x128xf32>
    %c0_73 = arith.constant 0 : index
    %c0_74 = arith.constant 0 : index
    %c0_75 = arith.constant 0 : index
    %81 = vector.load %arg5[%c0_73, %c0_74, %c0_75] : memref<1x1x128xf32, #tpu.memory_space<vmem>>, vector<1x1x128xf32>
    %82 = vector.shape_cast %81 : vector<1x1x128xf32> to vector<1x128xf32>
    %83 = vector.shape_cast %80 : vector<1x128xf32> to vector<1x1x128xf32>
    tpu.vector_store %arg5[%c0_73, %c0_74, %c0_75], %83 {strides = array<i32>} : memref<1x1x128xf32, #tpu.memory_space<vmem>>, vector<1x1x128xf32>,
    return
  }
  func.func @transform_0(%arg0: i32) -> (i32, i32, i32, i32) {
    %c0_i32 = arith.constant 0 : i32
    %c0_i32_0 = arith.constant 0 : i32
    %c0_i32_1 = arith.constant 0 : i32
    %c0_i32_2 = arith.constant 0 : i32
    return %arg0, %c0_i32, %c0_i32_0, %c0_i32_1 : i32, i32, i32, i32
  }
  func.func @transform_1(%arg0: i32) -> (i32, i32, i32) {
    %c0_i32 = arith.constant 0 : i32
    %c0_i32_0 = arith.constant 0 : i32
    %c0_i32_1 = arith.constant 0 : i32
    %c0_i32_2 = arith.constant 0 : i32
    return %c0_i32, %c0_i32_0, %c0_i32_1 : i32, i32, i32
  }
  func.func @transform_2(%arg0: i32) -> (i32, i32, i32, i32) {
    %c0_i32 = arith.constant 0 : i32
    %c0_i32_0 = arith.constant 0 : i32
    %c0_i32_1 = arith.constant 0 : i32
    %c0_i32_2 = arith.constant 0 : i32
    return %arg0, %c0_i32, %c0_i32_0, %c0_i32_1 : i32, i32, i32, i32
  }
  func.func @transform_3(%arg0: i32) -> (i32, i32, i32) {
    %c0_i32 = arith.constant 0 : i32
    %c0_i32_0 = arith.constant 0 : i32
    %c0_i32_1 = arith.constant 0 : i32
    return %arg0, %c0_i32, %c0_i32_0 : i32, i32, i32
  }
  func.func @transform_4(%arg0: i32) -> (i32, i32, i32) {
    %c0_i32 = arith.constant 0 : i32
    %c0_i32_0 = arith.constant 0 : i32
    %c0_i32_1 = arith.constant 0 : i32
    return %arg0, %c0_i32, %c0_i32_0 : i32, i32, i32
  }
}

</mosaic_0001>

<bundles_post_ra>
// kernel: tpu_custom_call.1
= control target key start
LH: loop header
LB: loop body
LE: loop exit
PB: predicated region body
PF: predicated region fallthrough
CT: control target
= control target key end

     0   :  { %10 = vsyncpa [#allocation4], 0  ;;  %s5039_s0 = inlined_call_operand.hbm [shape: f32[2,16,16,128], index: 0, kind: input, shape index: {}]   ;;  %s5040_s1 = inlined_call_operand.hbm [shape: bf16[9,128,128], index: 1, kind: input, shape index: {}]   ;;  %s5041_s2 = inlined_call_operand.hbm [shape: f32[2,16,16,128], index: 2, kind: output, shape index: {0}]   ;;  %s5042_s3 = inlined_call_operand.hbm [shape: f32[2,1,128], index: 3, kind: output, shape index: {1}]   ;;  %s5043_s4 = inlined_call_operand.hbm [shape: f32[2,1,128], index: 4, kind: output, shape index: {2}]  }
   0x1   :  { %12 = vsyncpa [#allocation4 + $0x1], 0 }
   0x2   :  { %13 = vsyncpa [#allocation7], 0 }
   0x3   :  { %14 = vsyncpa [#allocation5], 0 }
   0x4   :  { %16 = vsyncpa [#allocation5 + $0x1], 0 }
   0x5   :  { %17 = vsyncpa [#allocation10], 0 }
   0x6   :  { %19 = vsyncpa [#allocation10 + $0x1], 0  ;;  %s4467_s15 = smov 0   ;;  %s4469_s16 = smov 0  }
   0x7   :  { %s4471_s17 = smov 0   ;;  %s4473_s18 = smov 0  }
   0x8 LB: > { %s4488_s19 = sadd.s32 4294967295, %s4431_s18   ;;  %s3764_s20 = sadd.s32 4294967294, %s4431_s18   ;;  %s4431_s18 = sphi %s4473_s18, %s5053_s18   ;;  %s4427_s17 = sphi %s4471_s17, %s5052_s17   ;;  %s4423_s16 = sphi %s4469_s16, %s5051_s16   ;;  %s4419_s15 = sphi %s4467_s15, %s5050_s15  }
   0x9   : > { %p45_p0 = scmp.ne.s32.totalorder %s4423_s16, %s4419_s15  ;;  %p46_p1 = scmp.eq.s32.totalorder %s4488_s19, 0 }
   0xa   : > { %p90_p2 = scmp.eq.s32.totalorder %s4488_s19, 1  ;;  %p96_p3 = scmp.eq.s32.totalorder %s3764_s20, 1 }
   0xb   : > { %p4499_p4 = por %p46_p1, %p45_p0  ;;  %p3765_p5 = scmp.ge.s32.totalorder %s4431_s18, 1 }
   0xc   : > { %p4504_p6 = por %p96_p3, %p45_p0  ;;  %p155_p7 = scmp.lt.s32.totalorder %s4431_s18, 3 }
   0xd   : > { %s166_s25 = sshll.u32 %s5040_s1, 4  ;;  %s4433_s27 = smov [#allocation6]   ;;  %s167_s25 = int_to_ptr.hbm [resolvable:$true] %s166_s25 }
   0xe   : > { %p4512_p8 = pnand %p3765_p5, %p155_p7  ;;  %s168_s28 = sshll.u32 %s4433_s27, 4  ;;  %s169_s28 = int_to_ptr.vmem [resolvable:$true] %s168_s28 }
   0xf   : > { %s4522_s29 = sadd.s32 1, %s4431_s18   ;;  %s4434_s30 = smov 64  }
  0x10   : > { %p4178_p9 = pneg %p4512_p8  ;;  %s4435_s5 = smov 4  }
  0x11   : > { %s29_s6 = ssub.s32 %s4431_s18, %s4522_s29  ;;  %s32_s7 = sadd.s32 1, %s4427_s17 }
  0x12   : > { %p4179_p10 = pnand %p4178_p9, %p46_p1  ;;  %p30_p12 = scmp.eq.s32.totalorder %s29_s6, 0 }
  0x13   : > { %p39_p13 = scmp.ne.s32.totalorder %s4427_s17, %s4423_s16  ;;  %p40_p0 = scmp.eq.s32.totalorder %s4431_s18, 0 }
  0x14   : > { %4181 = dma.hbm_to_vmem [thread:$0]  (!%p4179_p10), %s167_s25, 9216, %s169_s28, [#allocation7], %s4434_s30, %s4434_s30, %s4435_s5  }
  0x15   : > { %p4197_p3 = scmp.lt.s32.totalorder %s4431_s18, 2  ;;  %p41_p5 = por %p40_p0, %p39_p13 }
  0x16   : > { %s4532_s8 = scalar_select %p30_p12, %s4427_s17, %s32_s7  }
  0x17   : > { %p4536_p7 = por %p90_p2, %p39_p13  ;;  %s182_s10 = sand.u32 1, %s4427_s17  }
  0x18   : > { %s4068_s11 = sshll.u32 %s4431_s18, 8  ;;  %s3768_s12 = sshll.u32 %s182_s10, 8 }
  0x19   : > { %s191_s23 = scalar_lea.hbm %s5039_s0, %s4068_s11  ;;  %s186_s25 = scalar_lea.vmem [#allocation3], %s3768_s12 }
  0x1a   : > { %s192_s24 = sshll.u32 %s191_s23, 4  ;;  %s194_s27 = sshll.u32 %s186_s25, 4  ;;  %s193_s24 = int_to_ptr.hbm [resolvable:$true] %s192_s24  ;;  %s195_s27 = int_to_ptr.vmem [resolvable:$true] %s194_s27 }
  0x1b   : > { %p4547_p9 = pnand %p4197_p3, %p41_p5  ;;  %s183_s30 = scalar_lea.sflag [#allocation4], %s182_s10 }
  0x1c   : > { %s4271_s5 = sshra.s32 %s193_s24, 4  ;;  %s4278_s12 = scalar_lea.hbm %s5039_s0, 512  ;;  %s4272_s5 = int_to_ptr.hbm [resolvable:$true] %s4271_s5 }
  0x1d   : > { %s4273_s6 = scalar_lea.hbm %s4272_s5, 256  ;;  %p4275_p10 = pneg %p4547_p9 }
  0x1e   : > { %p4274_p2 = scmp.ne.s32.totalorder %s4272_s5, %s4273_s6  ;;  %p4279_p0 = scmp.lt.s32.totalorder %s4272_s5, %s5039_s0 }
  0x1f   : > { %p4280_p3 = scmp.lt.s32.totalorder %s4278_s12, %s4273_s6 }
  0x20   : > { %p4276_p12 = pnand %p4275_p10, %p4274_p2 }
  0x21   : > { %p4281_p5 = por %p4280_p3, %p4279_p0 }
  0x22   : > { %p4277_p13 = pneg %p4276_p12 }
  0x24   : > { %p4282_p11 = pnand %p4281_p5, %p4277_p13 }
  0x26   : > { %4285 = shalt.err (!%p4282_p11)
}
  0x27   : > { %s4436_s10 = smov 128   ;;  %s4437_s23 = smov 8  }
  0x28   : > { %4185 = dma.hbm_to_vmem [thread:$0]  (!%p4547_p9), %s193_s24, 4096, %s195_s27, %s183_s30, %s4436_s10, %s4436_s10, %s4437_s23  }
  0x29   : > { %206 = sbr.rel (%p4512_p8) target bundleno = 820 (0x334), region = 28  ;;  %s4564_s25 = sand.u32 (!%p4512_p8), 1, %s4423_s16  }
  0x2a   : > { %s3772_s5 = sshll.u32 (!%p4512_p8), %s4564_s25, 8  ;;  %s209_s6 = scalar_lea.sflag (!%p4512_p8), [#allocation4], %s4564_s25 }
  0x2b   : > { %s4570_s7 = scalar_lea.vmem (!%p4512_p8), [#allocation3], %s3772_s5 }
  0x2e   : > { %4402 = dma.done.wait (%p4499_p4), %s209_s6, 4096  }
  0x2f   : > { %4404 = vsyncadd (%p4499_p4), %s209_s6, 4294963200 }
  0x30   : > { %4406 = dma.done.wait (%p46_p1), [#allocation7], 9216  }
  0x31   : > { %4408 = vsyncadd (%p46_p1), [#allocation7], 4294958080  ;;  %v4438_v0 = vmov 0.0   ;;  %v4084_v1 = vld [vmem:[#allocation6 + $0x78] sm:$0xff]  ;;  %v4083_v2 = vld [vmem:[#allocation6 + $0x70] sm:$0xff]  ;;  %v4439_v27 = vmov 0.0|0.0  }
  0x32   : > { %283 = vst [vmem:[#allocation2] sm:$0xff] %v4438_v0  ;;  %4142 = vmatpush.bf16.msra.mxu1 %v4084_v1  ;;  %4143 = vmatpush.bf16.msra.mxu2 %v4084_v1  ;;  %v257_v3 = vld [vmem:[%s4570_s7 + $0x30] sm:$0xff]  ;;  %v258_v4 = vld [vmem:[%s4570_s7 + $0x38] sm:$0xff]  ;;  %v4082_v5 = vld [vmem:[#allocation6 + $0x68] sm:$0xff]  ;;  %v581_v28 = vunpack.c.l.b16 %v4439_v27  ;;  %s4889_s21 = scalar_lea.vmem [#allocation8], %s3772_s5  ;;  %s4141_s26 = sshll.u32 %s4488_s19, 8 }
  0x33   : > { %284 = vst [vmem:[#allocation2 + $0x8] sm:$0xff] %v4438_v0  ;;  %4144 = vmatpush.bf16.msra.mxu3 %v4084_v1  ;;  %693 = vmatpush.bf16.msra.mxu0 %v4084_v1  ;;  %v4081_v6 = vld [vmem:[#allocation6 + $0x60] sm:$0xff]  ;;  %v4080_v7 = vld [vmem:[#allocation6 + $0x58] sm:$0xff]  ;;  %v4079_v8 = vld [vmem:[#allocation6 + $0x50] sm:$0xff]  ;;  %v508_v13 = vpack.c.bf16 %v257_v3, %v257_v3  ;;  %v509_v14 = vpack.c.bf16 %v258_v4, %v258_v4  ;;  %s3598_s28 = scalar_lea.hbm %s5041_s2, %s4141_s26  ;;  %s3599_s30 = sshll.u32 %s4889_s21, 4  ;;  %s3600_s30 = int_to_ptr.vmem [resolvable:$true] %s3599_s30 }
  0x34   : > { %285 = vst [vmem:[#allocation2 + $0x10] sm:$0xff] %v4438_v0  ;;  %v4602_v9 = vld [vmem:[%s4570_s7 + $0x70] sm:$0xff]  ;;  %v4605_v10 = vld [vmem:[%s4570_s7 + $0x78] sm:$0xff]  ;;  %v4078_v17 = vld [vmem:[#allocation6 + $0x48] sm:$0xff]  ;;  %v613_v34 = vpack.c.b16 %v581_v28, %v581_v28  ;;  %s3601_s11 = sshll.u32 %s3598_s28, 4  ;;  %s3579_s12 = scalar_lea.sflag [#allocation5], %s4564_s25  ;;  %s3602_s11 = int_to_ptr.hbm [resolvable:$true] %s3601_s11 }
  0x35   : > { %286 = vst [vmem:[#allocation2 + $0x18] sm:$0xff] %v4438_v0  ;;  %v4609_v11 = vld [vmem:[%s4570_s7 + $0xb0] sm:$0xff]  ;;  %v4612_v12 = vld [vmem:[%s4570_s7 + $0xb8] sm:$0xff]  ;;  %v516_v15 = vpack.c.bf16 %v4602_v9, %v4602_v9  ;;  %v517_v16 = vpack.c.bf16 %v4605_v10, %v4605_v10  ;;  %v589_v20 = vunpack.c.l.b16 %v508_v13  ;;  %v590_v21 = vunpack.c.l.b16 %v509_v14  ;;  %v4077_v24 = vld [vmem:[#allocation6 + $0x40] sm:$0xff]  ;;  %s4315_s13 = sshra.s32 %s3602_s11, 4  ;;  %s4321_s5 = scalar_lea.hbm %s5041_s2, 512  ;;  %s4316_s13 = int_to_ptr.hbm [resolvable:$true] %s4315_s13 }
  0x36   : > { %287 = vst [vmem:[#allocation2 + $0x20] sm:$0xff] %v4438_v0  ;;  %4145 = vmatpush.bf16.msra.mxu1 %v4083_v2  ;;  %4146 = vmatpush.bf16.msra.mxu2 %v4083_v2  ;;  %v524_v18 = vpack.c.bf16 %v4609_v11, %v4609_v11  ;;  %v525_v19 = vpack.c.bf16 %v4612_v12, %v4612_v12  ;;  %v4092_v29 = vld [vmem:[#allocation6 + $0xb8] sm:$0xff]  ;;  %v4091_v37 = vld [vmem:[#allocation6 + $0xb0] sm:$0xff]  ;;  %v259_v40 = vld [vmem:[%s4570_s7 + $0x40] sm:$0xff]  ;;  %s4317_s14 = scalar_lea.hbm %s4316_s13, 256  ;;  %p4322_p11 = scmp.lt.s32.totalorder %s4316_s13, %s5041_s2 }
  0x37   : > { %362 = vst [vmem:[#allocation2 + $0x88] sm:$0xff] %v257_v3  ;;  %4147 = vmatpush.bf16.msra.mxu3 %v4083_v2  ;;  %694 = vmatpush.bf16.msra.mxu0 %v4083_v2  ;;  %v597_v22 = vunpack.c.l.b16 %v516_v15  ;;  %v598_v23 = vunpack.c.l.b16 %v517_v16  ;;  %v4100_v30 = vld [vmem:[#allocation6 + $0xf8] sm:$0xff]  ;;  %v617_v31 = vpack.c.b16 %v590_v21, %v589_v20  ;;  %v4099_v38 = vld [vmem:[#allocation6 + $0xf0] sm:$0xff]  ;;  %v260_v41 = vld [vmem:[%s4570_s7 + $0x48] sm:$0xff]  ;;  %v510_v51 = vpack.c.bf16 %v259_v40, %v259_v40  ;;  %p4318_p1 = scmp.ne.s32.totalorder %s4316_s13, %s4317_s14  ;;  %p4323_p9 = scmp.lt.s32.totalorder %s4321_s5, %s4317_s14 }
  0x38   : > { %363 = vst [vmem:[#allocation2 + $0x90] sm:$0xff] %v258_v4  ;;  %v605_v25 = vunpack.c.l.b16 %v524_v18  ;;  %v606_v26 = vunpack.c.l.b16 %v525_v19  ;;  %v4076_v35 = vld [vmem:[#allocation6 + $0x38] sm:$0xff]  ;;  %v4075_v39 = vld [vmem:[#allocation6 + $0x30] sm:$0xff]  ;;  %v267_v42 = vld [vmem:[%s4570_s7 + $0x80] sm:$0xff]  ;;  %v511_v52 = vpack.c.bf16 %v260_v41, %v260_v41 }
  0x39   : > { %290 = vst [vmem:[#allocation2 + $0x38] sm:$0xff] %v4438_v0  ;;  %v621_v32 = vpack.c.b16 %v598_v23, %v597_v22  ;;  %v4108_v36 = vld [vmem:[#allocation6 + $0x138] sm:$0xff]  ;;  %v268_v43 = vld [vmem:[%s4570_s7 + $0x88] sm:$0xff]  ;;  %v4642_v44 = vld [vmem:[%s4570_s7 + $0xc0] sm:$0xff]  ;;  %v518_v53 = vpack.c.bf16 %v267_v42, %v267_v42  ;;  %v591_v63 = vunpack.c.l.b16 %v510_v51  ;;  %p4319_p4 = pnand %p4318_p1, %p4536_p7  ;;  %p4324_p2 = por %p4323_p9, %p4322_p11 }
  0x3a   : > { %291 = vst [vmem:[#allocation2 + $0x40] sm:$0xff] %v4438_v0  ;;  %4148 = vmatpush.bf16.msra.mxu1 %v4082_v5  ;;  %4149 = vmatpush.bf16.msra.mxu2 %v4082_v5  ;;  %v625_v33 = vpack.c.b16 %v606_v26, %v605_v25  ;;  %v4645_v45 = vld [vmem:[%s4570_s7 + $0xc8] sm:$0xff]  ;;  %v4649_v46 = vld [vmem:[%s4570_s7] sm:$0xff]  ;;  %v4107_v48 = vld [vmem:[#allocation6 + $0x130] sm:$0xff]  ;;  %v519_v54 = vpack.c.bf16 %v268_v43, %v268_v43  ;;  %v592_v1 = vunpack.c.l.b16 %v511_v52 }
  0x3b   : > { %294 = vst [vmem:[#allocation2 + $0x58] sm:$0xff] %v4438_v0  ;;  %4150 = vmatpush.bf16.msra.mxu3 %v4082_v5  ;;  %695 = vmatpush.bf16.msra.mxu0 %v4082_v5  ;;  %v4652_v47 = vld [vmem:[%s4570_s7 + $0x8] sm:$0xff]  ;;  %v526_v55 = vpack.c.bf16 %v4642_v44, %v4642_v44  ;;  %v527_v56 = vpack.c.bf16 %v4645_v45, %v4645_v45  ;;  %v4089_v61 = vld [vmem:[#allocation6 + $0xa0] sm:$0xff]  ;;  %v599_v2 = vunpack.c.l.b16 %v518_v53  ;;  %v4104_v16 = vld [vmem:[#allocation6 + $0x118] sm:$0xff]  ;;  %p4320_p8 = pneg %p4319_p4 }
  0x3c   : > { %295 = vst [vmem:[#allocation2 + $0x60] sm:$0xff] %v4438_v0  ;;  %v4090_v49 = vld [vmem:[#allocation6 + $0xa8] sm:$0xff]  ;;  %v502_v57 = vpack.c.bf16 %v4649_v46, %v4649_v46  ;;  %v503_v58 = vpack.c.bf16 %v4652_v47, %v4652_v47  ;;  %v4097_v62 = vld [vmem:[#allocation6 + $0xe0] sm:$0xff]  ;;  %v600_v3 = vunpack.c.l.b16 %v519_v54  ;;  %v4670_v13 = vpack.c.b16 %v592_v1, %v591_v63  ;;  %v4087_v18 = vld [vmem:[#allocation6 + $0x90] sm:$0xff] }
  0x3d   : > { %298 = vst [vmem:[#allocation2 + $0x78] sm:$0xff] %v4438_v0  ;;  %v4098_v50 = vld [vmem:[#allocation6 + $0xe8] sm:$0xff]  ;;  %v607_v4 = vunpack.c.l.b16 %v526_v55  ;;  %v4095_v19 = vld [vmem:[#allocation6 + $0xd0] sm:$0xff]  ;;  %v262_v20 = vld [vmem:[%s4570_s7 + $0x58] sm:$0xff]  ;;  %p4325_p10 = pnand %p4324_p2, %p4320_p8 }
  0x3e   : > { %299 = vst [vmem:[#allocation2 + $0x80] sm:$0xff] %v4438_v0  ;;  %4151 = vmatpush.bf16.msra.mxu1 %v4081_v6  ;;  %4152 = vmatpush.bf16.msra.mxu2 %v4081_v6  ;;  %v4074_v59 = vld [vmem:[#allocation6 + $0x28] sm:$0xff]  ;;  %v583_v5 = vunpack.c.l.b16 %v502_v57  ;;  %v269_v21 = vld [vmem:[%s4570_s7 + $0x90] sm:$0xff]  ;;  %v270_v22 = vld [vmem:[%s4570_s7 + $0x98] sm:$0xff] }
  0x3f   : > { %302 = vst [vmem:[#allocation2 + $0x98] sm:$0xff] %v4438_v0  ;;  %4153 = vmatpush.bf16.msra.mxu3 %v4081_v6  ;;  %696 = vmatpush.bf16.msra.mxu0 %v4081_v6  ;;  %v4106_v60 = vld [vmem:[#allocation6 + $0x128] sm:$0xff]  ;;  %v584_v6 = vunpack.c.l.b16 %v503_v58  ;;  %v277_v23 = vld [vmem:[%s4570_s7 + $0xd0] sm:$0xff]  ;;  %v254_v26 = vld [vmem:[%s4570_s7 + $0x18] sm:$0xff] }
  0x40   : > { %303 = vst [vmem:[#allocation2 + $0xa0] sm:$0xff] %v4438_v0  ;;  %v253_v25 = vld [vmem:[%s4570_s7 + $0x10] sm:$0xff]  ;;  %v263_v51 = vld [vmem:[%s4570_s7 + $0x60] sm:$0xff]  ;;  %v264_v54 = vld [vmem:[%s4570_s7 + $0x68] sm:$0xff] }
  0x41   : > { %306 = vst [vmem:[#allocation2 + $0xb8] sm:$0xff] %v4438_v0  ;;  %v4672_v15 = vpack.c.b16 %v584_v6, %v583_v5  ;;  %v4071_v27 = vld [vmem:[#allocation6 + $0x10] sm:$0xff]  ;;  %v4069_v52 = vld [vmem:[#allocation6] sm:$0xff]  ;;  %v256_v1 = vld [vmem:[%s4570_s7 + $0x28] sm:$0xff]  ;;  %v514_v5 = vpack.c.bf16 %v263_v51, %v263_v51  ;;  %v515_v6 = vpack.c.bf16 %v264_v54, %v264_v54 }
  0x42   : > { %307 = vst [vmem:[#allocation2 + $0xc0] sm:$0xff] %v4438_v0  ;;  %4154 = vmatpush.bf16.msra.mxu1 %v4080_v7  ;;  %4155 = vmatpush.bf16.msra.mxu2 %v4080_v7  ;;  %v4103_v28 = vld [vmem:[#allocation6 + $0x110] sm:$0xff]  ;;  %v4101_v53 = vld [vmem:[#allocation6 + $0x100] sm:$0xff] }
  0x43   : > { %310 = vst [vmem:[#allocation2 + $0xd8] sm:$0xff] %v4438_v0  ;;  %4156 = vmatpush.bf16.msra.mxu3 %v4080_v7  ;;  %697 = vmatpush.bf16.msra.mxu0 %v4080_v7  ;;  %v4073_v7 = vld [vmem:[#allocation6 + $0x20] sm:$0xff] }
  0x44   : > { %311 = vst [vmem:[#allocation2 + $0xe0] sm:$0xff] %v4438_v0  ;;  %v271_v57 = vld [vmem:[%s4570_s7 + $0xa0] sm:$0xff] }
  0x45   : > { %314 = vst [vmem:[#allocation2 + $0xf8] sm:$0xff] %v4438_v0  ;;  %v255_v63 = vld [vmem:[%s4570_s7 + $0x20] sm:$0xff] }
  0x46   : > { %315 = vst [vmem:[#allocation2 + $0x100] sm:$0xff] %v4438_v0  ;;  %4157 = vmatpush.bf16.msra.mxu1 %v4079_v8  ;;  %4158 = vmatpush.bf16.msra.mxu2 %v4079_v8 }
  0x47   : > { %318 = vst [vmem:[#allocation2 + $0x118] sm:$0xff] %v4438_v0  ;;  %4159 = vmatpush.bf16.msra.mxu3 %v4079_v8  ;;  %698 = vmatpush.bf16.msra.mxu0 %v4079_v8  ;;  %v4105_v8 = vld [vmem:[#allocation6 + $0x120] sm:$0xff] }
  0x48   : > { %319 = vst [vmem:[#allocation2 + $0x120] sm:$0xff] %v4438_v0 }
  0x49   : > { %322 = vst [vmem:[#allocation2 + $0x138] sm:$0xff] %v4438_v0 }
  0x4a   : > { %323 = vst [vmem:[#allocation2 + $0x140] sm:$0xff] %v4438_v0  ;;  %4160 = vmatpush.bf16.msra.mxu1 %v4078_v17  ;;  %4161 = vmatpush.bf16.msra.mxu2 %v4078_v17 }
  0x4b   : > { %326 = vst [vmem:[#allocation2 + $0x158] sm:$0xff] %v4438_v0  ;;  %4162 = vmatpush.bf16.msra.mxu3 %v4078_v17  ;;  %699 = vmatpush.bf16.msra.mxu0 %v4078_v17  ;;  %v261_v17 = vld [vmem:[%s4570_s7 + $0x50] sm:$0xff] }
  0x4c   : > { %327 = vst [vmem:[#allocation2 + $0x160] sm:$0xff] %v4438_v0 }
  0x4d   : > { %330 = vst [vmem:[#allocation2 + $0x178] sm:$0xff] %v4438_v0 }
  0x4e   : > { %331 = vst [vmem:[#allocation2 + $0x180] sm:$0xff] %v4438_v0  ;;  %4163 = vmatpush.bf16.msra.mxu1 %v4077_v24  ;;  %4164 = vmatpush.bf16.msra.mxu2 %v4077_v24 }
  0x4f   : > { %334 = vst [vmem:[#allocation2 + $0x198] sm:$0xff] %v4438_v0  ;;  %4165 = vmatpush.bf16.msra.mxu3 %v4077_v24  ;;  %700 = vmatpush.bf16.msra.mxu0 %v4077_v24  ;;  %v278_v24 = vld [vmem:[%s4570_s7 + $0xd8] sm:$0xff] }
  0x50   : > { %335 = vst [vmem:[#allocation2 + $0x1a0] sm:$0xff] %v4438_v0 }
  0x51   : > { %338 = vst [vmem:[#allocation2 + $0x1b8] sm:$0xff] %v4438_v0  ;;  %721 = vmatmul.bf16.vlgmr.msra.gmra.mxu1 %v617_v31  ;;  %741 = vmatmul.bf16.vlgmr.msra.gmra.mxu2 %v621_v32  ;;  %v512_v31 = vpack.c.bf16 %v261_v17, %v261_v17  ;;  %v513_v32 = vpack.c.bf16 %v262_v20, %v262_v20 }
  0x52   : > { %339 = vst [vmem:[#allocation2 + $0x1c0] sm:$0xff] %v4438_v0  ;;  %1240 = vmatpush.bf16.msrb.mxu2 %v4092_v29  ;;  %761 = vmatmul.bf16.vlgmr.msra.gmra.mxu3 %v625_v33  ;;  %v4086_v29 = vld [vmem:[#allocation6 + $0x88] sm:$0xff]  ;;  %v520_v33 = vpack.c.bf16 %v269_v21, %v269_v21 }
  0x53   : > { %342 = vst [vmem:[#allocation2 + $0x1d8] sm:$0xff] %v4438_v0  ;;  %1586 = vmatpush.bf16.msrb.mxu3 %v4100_v30  ;;  %701 = vmatmul.bf16.vlgmr.msra.gmra.mxu0 %v613_v34  ;;  %v4094_v30 = vld [vmem:[#allocation6 + $0xc8] sm:$0xff]  ;;  %v521_v34 = vpack.c.bf16 %v270_v22, %v270_v22 }
  0x54   : > { %343 = vst [vmem:[#allocation2 + $0x1e0] sm:$0xff] %v4438_v0  ;;  %926 = vmatpush.bf16.msrb.mxu1 %v4076_v35  ;;  %1932 = vmatpush.bf16.msrb.mxu0 %v4108_v36  ;;  %v528_v35 = vpack.c.bf16 %v277_v23, %v277_v23  ;;  %v529_v36 = vpack.c.bf16 %v278_v24, %v278_v24 }
  0x55   : > { %346 = vst [vmem:[#allocation2 + $0x1f8] sm:$0xff] %v4438_v0 }
  0x56   : > { %347 = vst [vmem:[#allocation2 + $0x200] sm:$0xff] %v4438_v0  ;;  %1241 = vmatpush.bf16.msrb.mxu2 %v4091_v37  ;;  %v504_v37 = vpack.c.bf16 %v253_v25, %v253_v25 }
  0x57   : > { %350 = vst [vmem:[#allocation2 + $0x218] sm:$0xff] %v4438_v0  ;;  %1587 = vmatpush.bf16.msrb.mxu3 %v4099_v38  ;;  %v505_v38 = vpack.c.bf16 %v254_v26, %v254_v26 }
  0x58   : > { %351 = vst [vmem:[#allocation2 + $0x220] sm:$0xff] %v4438_v0  ;;  %927 = vmatpush.bf16.msrb.mxu1 %v4075_v39  ;;  %1933 = vmatpush.bf16.msrb.mxu0 %v4107_v48  ;;  %v4070_v39 = vld [vmem:[#allocation6 + $0x8] sm:$0xff]  ;;  %v610_v48 = vunpack.c.l.b16 %v529_v36 }
  0x59   : > { %352 = vst [vmem:[#allocation2 + $0x228] sm:$0xff] %v4438_v0 }
  0x5a   : > { %353 = vst [vmem:[#allocation2 + $0x230] sm:$0xff] %v4438_v0  ;;  %1242 = vmatpush.bf16.msrb.mxu2 %v4090_v49  ;;  %v585_v49 = vunpack.c.l.b16 %v504_v37 }
  0x5b   : > { %354 = vst [vmem:[#allocation2 + $0x238] sm:$0xff] %v4438_v0  ;;  %1588 = vmatpush.bf16.msrb.mxu3 %v4098_v50  ;;  %v608_v0 = vunpack.c.l.b16 %v527_v56  ;;  %v586_v50 = vunpack.c.l.b16 %v505_v38 }
  0x5c   : > { %370 = vst [vmem:[#allocation2 + $0x108] sm:$0xff] %v4602_v9  ;;  %928 = vmatpush.bf16.msrb.mxu1 %v4074_v59  ;;  %1934 = vmatpush.bf16.msrb.mxu0 %v4106_v60  ;;  %v4088_v9 = vld [vmem:[#allocation6 + $0x98] sm:$0xff]  ;;  %v272_v60 = vld [vmem:[%s4570_s7 + $0xa8] sm:$0xff] }
  0x5d   : > { %371 = vst [vmem:[#allocation2 + $0x110] sm:$0xff] %v4605_v10  ;;  %v4096_v10 = vld [vmem:[#allocation6 + $0xd8] sm:$0xff]  ;;  %v626_v14 = vpack.c.b16 %v608_v0, %v607_v4  ;;  %v4693_v59 = vpack.c.b16 %v586_v50, %v585_v49  ;;  %v4123_v50 = vld [vmem:[#allocation6 + $0x1b0] sm:$0xff] }
  0x5e   : > { %378 = vst [vmem:[#allocation2 + $0x188] sm:$0xff] %v4609_v11  ;;  %1243 = vmatpush.bf16.msrb.mxu2 %v4089_v61  ;;  %v622_v11 = vpack.c.b16 %v600_v3, %v599_v2  ;;  %v279_v61 = vld [vmem:[%s4570_s7 + $0xe0] sm:$0xff]  ;;  %v4124_v2 = vld [vmem:[#allocation6 + $0x1b8] sm:$0xff] }
  0x5f   : > { %379 = vst [vmem:[#allocation2 + $0x190] sm:$0xff] %v4612_v12  ;;  %1589 = vmatpush.bf16.msrb.mxu3 %v4097_v62  ;;  %v4072_v12 = vld [vmem:[#allocation6 + $0x18] sm:$0xff]  ;;  %v280_v62 = vld [vmem:[%s4570_s7 + $0xe8] sm:$0xff] }
  0x60   : > { %364 = vst [vmem:[#allocation2 + $0xa8] sm:$0xff] %v259_v40  ;;  %929 = vmatpush.bf16.msrb.mxu1 %v4073_v7  ;;  %1935 = vmatpush.bf16.msrb.mxu0 %v4105_v8  ;;  %v4102_v40 = vld [vmem:[#allocation6 + $0x108] sm:$0xff]  ;;  %v4132_v3 = vld [vmem:[#allocation6 + $0x1f8] sm:$0xff]  ;;  %v522_v7 = vpack.c.bf16 %v271_v57, %v271_v57  ;;  %v523_v8 = vpack.c.bf16 %v272_v60, %v272_v60 }
  0x61   : > { %365 = vst [vmem:[#allocation2 + $0xb0] sm:$0xff] %v260_v41  ;;  %726 = vmatmul.bf16.gmra.mxu1 %v4670_v13  ;;  %746 = vmatmul.bf16.gmra.mxu2 %v622_v11  ;;  %v4085_v41 = vld [vmem:[#allocation6 + $0x80] sm:$0xff]  ;;  %v4116_v4 = vld [vmem:[#allocation6 + $0x178] sm:$0xff]  ;;  %v506_v11 = vpack.c.bf16 %v255_v63, %v255_v63 }
  0x62   : > { %372 = vst [vmem:[#allocation2 + $0x128] sm:$0xff] %v267_v42  ;;  %1244 = vmatpush.bf16.msrb.mxu2 %v4088_v9  ;;  %766 = vmatmul.bf16.gmra.mxu3 %v626_v14  ;;  %v4093_v42 = vld [vmem:[#allocation6 + $0xc0] sm:$0xff]  ;;  %v4140_v0 = vld [vmem:[#allocation6 + $0x238] sm:$0xff]  ;;  %v530_v9 = vpack.c.bf16 %v279_v61, %v279_v61  ;;  %v507_v14 = vpack.c.bf16 %v256_v1, %v256_v1 }
  0x63   : > { %373 = vst [vmem:[#allocation2 + $0x130] sm:$0xff] %v268_v43  ;;  %1590 = vmatpush.bf16.msrb.mxu3 %v4096_v10  ;;  %706 = vmatmul.bf16.gmra.mxu0 %v4672_v15  ;;  %v593_v43 = vunpack.c.l.b16 %v512_v31  ;;  %v531_v10 = vpack.c.bf16 %v280_v62, %v280_v62 }
  0x64   : > { %380 = vst [vmem:[#allocation2 + $0x1a8] sm:$0xff] %v4642_v44  ;;  %930 = vmatpush.bf16.msrb.mxu1 %v4072_v12  ;;  %1936 = vmatpush.bf16.msrb.mxu0 %v4104_v16  ;;  %v594_v44 = vunpack.c.l.b16 %v513_v32  ;;  %v595_v12 = vunpack.c.l.b16 %v514_v5  ;;  %v596_v16 = vunpack.c.l.b16 %v515_v6 }
  0x65   : > { %381 = vst [vmem:[#allocation2 + $0x1b0] sm:$0xff] %v4645_v45  ;;  %v601_v45 = vunpack.c.l.b16 %v520_v33 }
  0x66   : > { %356 = vst [vmem:[#allocation2 + $0x28] sm:$0xff] %v4649_v46  ;;  %1245 = vmatpush.bf16.msrb.mxu2 %v4087_v18  ;;  %v602_v46 = vunpack.c.l.b16 %v521_v34  ;;  %v4690_v55 = vpack.c.b16 %v594_v44, %v593_v43  ;;  %v604_v18 = vunpack.c.l.b16 %v523_v8 }
  0x67   : > { %357 = vst [vmem:[#allocation2 + $0x30] sm:$0xff] %v4652_v47  ;;  %1591 = vmatpush.bf16.msrb.mxu3 %v4095_v19  ;;  %v609_v47 = vunpack.c.l.b16 %v528_v35  ;;  %v611_v19 = vunpack.c.l.b16 %v530_v9 }
  0x68   : > { %366 = vst [vmem:[#allocation2 + $0xc8] sm:$0xff] %v261_v17  ;;  %931 = vmatpush.bf16.msrb.mxu1 %v4071_v27  ;;  %1937 = vmatpush.bf16.msrb.mxu0 %v4103_v28  ;;  %v623_v56 = vpack.c.b16 %v602_v46, %v601_v45  ;;  %v603_v17 = vunpack.c.l.b16 %v522_v7  ;;  %v388_v27 = vld [vmem:[#allocation2 + $0x7] sm:$0xff]  ;;  %v389_v28 = vld [vmem:[#allocation2 + $0xf] sm:$0xff] }
  0x69   : > { %367 = vst [vmem:[#allocation2 + $0xd0] sm:$0xff] %v262_v20  ;;  %v627_v58 = vpack.c.b16 %v610_v48, %v609_v47  ;;  %v612_v20 = vunpack.c.l.b16 %v531_v10  ;;  %v420_v33 = vpack.c.bf16 %v388_v27, %v388_v27  ;;  %v421_v34 = vpack.c.bf16 %v389_v28, %v389_v28  ;;  %v1714_v27 = vld [vmem:[#allocation2 + $0x90] sm:$0xff] }
  0x6a   : > { %374 = vst [vmem:[#allocation2 + $0x148] sm:$0xff] %v269_v21  ;;  %1246 = vmatpush.bf16.msrb.mxu2 %v4086_v29  ;;  %v587_v21 = vunpack.c.l.b16 %v506_v11  ;;  %v1015_v29 = vld [vmem:[#allocation2 + $0x9] sm:$0xff] }
  0x6b   : > { %375 = vst [vmem:[#allocation2 + $0x150] sm:$0xff] %v270_v22  ;;  %1592 = vmatpush.bf16.msrb.mxu3 %v4094_v30  ;;  %v588_v22 = vunpack.c.l.b16 %v507_v14  ;;  %v1016_v30 = vld [vmem:[#allocation2 + $0x11] sm:$0xff]  ;;  %v1047_v35 = vpack.c.bf16 %v1015_v29, %v1015_v29 }
  0x6c   : > { %382 = vst [vmem:[#allocation2 + $0x1c8] sm:$0xff] %v277_v23  ;;  %932 = vmatpush.bf16.msrb.mxu1 %v4070_v39  ;;  %1938 = vmatpush.bf16.msrb.mxu0 %v4102_v40  ;;  %v4702_v23 = vpack.c.b16 %v596_v16, %v595_v12  ;;  %v1048_v36 = vpack.c.bf16 %v1016_v30, %v1016_v30  ;;  %v814_v39 = vunpack.c.l.b16 %v420_v33  ;;  %v815_v40 = vunpack.c.l.b16 %v421_v34  ;;  %v4114_v30 = vld [vmem:[#allocation6 + $0x168] sm:$0xff] }
  0x6d   : > { %383 = vst [vmem:[#allocation2 + $0x1d0] sm:$0xff] %v278_v24  ;;  %v624_v24 = vpack.c.b16 %v604_v18, %v603_v17  ;;  %v1361_v31 = vld [vmem:[#allocation2 + $0x27] sm:$0xff]  ;;  %v1746_v34 = vpack.c.bf16 %v1714_v27, %v1714_v27 }
  0x6e   : > { %358 = vst [vmem:[#allocation2 + $0x48] sm:$0xff] %v253_v25  ;;  %1247 = vmatpush.bf16.msrb.mxu2 %v4085_v41  ;;  %v628_v25 = vpack.c.b16 %v612_v20, %v611_v19  ;;  %v1362_v32 = vld [vmem:[#allocation2 + $0x2f] sm:$0xff]  ;;  %v1393_v37 = vpack.c.bf16 %v1361_v31, %v1361_v31  ;;  %v1128_v41 = vunpack.c.l.b16 %v1047_v35  ;;  %v846_v45 = vpack.c.b16 %v815_v40, %v814_v39 }
  0x6f   : > { %359 = vst [vmem:[#allocation2 + $0x50] sm:$0xff] %v254_v26  ;;  %1593 = vmatpush.bf16.msrb.mxu3 %v4093_v42  ;;  %v4704_v26 = vpack.c.b16 %v588_v22, %v587_v21  ;;  %v1394_v38 = vpack.c.bf16 %v1362_v32, %v1362_v32  ;;  %v1129_v42 = vunpack.c.l.b16 %v1048_v36  ;;  %v1017_v48 = vld [vmem:[#allocation2 + $0x29] sm:$0xff]  ;;  %v1018_v49 = vld [vmem:[#allocation2 + $0x31] sm:$0xff]  ;;  %v1827_v40 = vunpack.c.l.b16 %v1746_v34 }
  0x70   : > { %368 = vst [vmem:[#allocation2 + $0xe8] sm:$0xff] %v263_v51  ;;  %933 = vmatpush.bf16.msrb.mxu1 %v4069_v52  ;;  %1939 = vmatpush.bf16.msrb.mxu0 %v4101_v53  ;;  %v1474_v43 = vunpack.c.l.b16 %v1393_v37  ;;  %v4131_v51 = vld [vmem:[#allocation6 + $0x1f0] sm:$0xff]  ;;  %v4122_v21 = vld [vmem:[#allocation6 + $0x1a8] sm:$0xff] }
  0x71   : > { %369 = vst [vmem:[#allocation2 + $0xf0] sm:$0xff] %v264_v54  ;;  %731 = vmatmul.bf16.gmra.mxu1 %v4690_v55  ;;  %751 = vmatmul.bf16.gmra.mxu2 %v623_v56  ;;  %v1475_v44 = vunpack.c.l.b16 %v1394_v38  ;;  %v1160_v46 = vpack.c.b16 %v1129_v42, %v1128_v41  ;;  %v4115_v52 = vld [vmem:[#allocation6 + $0x170] sm:$0xff]  ;;  %v4130_v22 = vld [vmem:[#allocation6 + $0x1e8] sm:$0xff] }
  0x72   : > { %376 = vst [vmem:[#allocation2 + $0x168] sm:$0xff] %v271_v57  ;;  %771 = vmatmul.bf16.gmra.mxu3 %v627_v58  ;;  %2625 = vmatpush.bf16.msra.mxu2 %v4124_v2  ;;  %v4139_v56 = vld [vmem:[#allocation6 + $0x230] sm:$0xff]  ;;  %v1049_v57 = vpack.c.bf16 %v1017_v48, %v1017_v48  ;;  %v1050_v58 = vpack.c.bf16 %v1018_v49, %v1018_v49  ;;  %v4138_v35 = vld [vmem:[#allocation6 + $0x228] sm:$0xff] }
  0x73   : > { %377 = vst [vmem:[#allocation2 + $0x170] sm:$0xff] %v272_v60  ;;  %711 = vmatmul.bf16.gmra.mxu0 %v4693_v59  ;;  %2971 = vmatpush.bf16.msra.mxu3 %v4132_v3  ;;  %v1506_v47 = vpack.c.b16 %v1475_v44, %v1474_v43  ;;  %v1023_v44 = vld [vmem:[#allocation2 + $0x89] sm:$0xff] }
  0x74   : > { %384 = vst [vmem:[#allocation2 + $0x1e8] sm:$0xff] %v279_v61  ;;  %2278 = vmatpush.bf16.msra.mxu1 %v4116_v4  ;;  %3317 = vmatpush.bf16.msra.mxu0 %v4140_v0  ;;  %v1055_v48 = vpack.c.bf16 %v1023_v44, %v1023_v44 }
  0x75   : > { %385 = vst [vmem:[#allocation2 + $0x1f0] sm:$0xff] %v280_v62  ;;  %v1363_v53 = vld [vmem:[#allocation2 + $0x47] sm:$0xff]  ;;  %v1130_v62 = vunpack.c.l.b16 %v1049_v57 }
  0x76   : > { %360 = vst [vmem:[#allocation2 + $0x68] sm:$0xff] %v255_v63  ;;  %v1364_v54 = vld [vmem:[#allocation2 + $0x4f] sm:$0xff]  ;;  %2626 = vmatpush.bf16.msra.mxu2 %v4123_v50  ;;  %v1395_v60 = vpack.c.bf16 %v1363_v53, %v1363_v53  ;;  %v1131_v63 = vunpack.c.l.b16 %v1050_v58 }
  0x77   : > { %361 = vst [vmem:[#allocation2 + $0x70] sm:$0xff] %v256_v1  ;;  %2972 = vmatpush.bf16.msra.mxu3 %v4131_v51  ;;  %v1396_v61 = vpack.c.bf16 %v1364_v54, %v1364_v54  ;;  %v1019_v4 = vld [vmem:[#allocation2 + $0x49] sm:$0xff]  ;;  %v1020_v0 = vld [vmem:[#allocation2 + $0x51] sm:$0xff] }
  0x78   : > { %2279 = vmatpush.bf16.msra.mxu1 %v4115_v52  ;;  %3318 = vmatpush.bf16.msra.mxu0 %v4139_v56  ;;  %v1476_v1 = vunpack.c.l.b16 %v1395_v60  ;;  %v1161_v3 = vpack.c.b16 %v1131_v63, %v1130_v62  ;;  %v1051_v7 = vpack.c.bf16 %v1019_v4, %v1019_v4  ;;  %v1052_v8 = vpack.c.bf16 %v1020_v0, %v1020_v0  ;;  %v1025_v62 = vld [vmem:[#allocation2 + $0xa9] sm:$0xff]  ;;  %v1026_v63 = vld [vmem:[#allocation2 + $0xb1] sm:$0xff] }
  0x79   : > { %v1477_v2 = vunpack.c.l.b16 %v1396_v61  ;;  %v1136_v52 = vunpack.c.l.b16 %v1055_v48  ;;  %v1373_v27 = vld [vmem:[#allocation2 + $0xe7] sm:$0xff]  ;;  %v4120_v48 = vld [vmem:[#allocation6 + $0x198] sm:$0xff] }
  0x7a   : > { %v1132_v11 = vunpack.c.l.b16 %v1051_v7  ;;  %v1133_v14 = vunpack.c.l.b16 %v1052_v8  ;;  %2627 = vmatpush.bf16.msra.mxu2 %v4122_v21  ;;  %v4113_v7 = vld [vmem:[#allocation6 + $0x160] sm:$0xff]  ;;  %v1405_v34 = vpack.c.bf16 %v1373_v27, %v1373_v27  ;;  %v1032_v27 = vld [vmem:[#allocation2 + $0x111] sm:$0xff] }
  0x7b   : > { %2973 = vmatpush.bf16.msra.mxu3 %v4130_v22 }
  0x7c   : > { %v1162_v17 = vpack.c.b16 %v1133_v14, %v1132_v11  ;;  %2280 = vmatpush.bf16.msra.mxu1 %v4114_v30  ;;  %3319 = vmatpush.bf16.msra.mxu0 %v4138_v35 }
  0x7d   : > { %v1365_v5 = vld [vmem:[#allocation2 + $0x67] sm:$0xff] }
  0x7e   : > { %v1366_v6 = vld [vmem:[#allocation2 + $0x6f] sm:$0xff]  ;;  %v1397_v9 = vpack.c.bf16 %v1365_v5, %v1365_v5  ;;  %v1057_v5 = vpack.c.bf16 %v1025_v62, %v1025_v62 }
  0x7f   : > { %v1398_v10 = vpack.c.bf16 %v1366_v6, %v1366_v6  ;;  %v1021_v19 = vld [vmem:[#allocation2 + $0x69] sm:$0xff]  ;;  %v1022_v20 = vld [vmem:[#allocation2 + $0x71] sm:$0xff]  ;;  %v1058_v6 = vpack.c.bf16 %v1026_v63, %v1026_v63 }
  0x80   : > { %v1478_v12 = vunpack.c.l.b16 %v1397_v9  ;;  %v1053_v28 = vpack.c.bf16 %v1021_v19, %v1021_v19  ;;  %v1054_v29 = vpack.c.bf16 %v1022_v20, %v1022_v20  ;;  %2281 = vmatpush.bf16.msra.mxu1 %v4113_v7  ;;  %v1138_v14 = vunpack.c.l.b16 %v1057_v5 }
  0x81   : > { %736 = vmatmul.bf16.gmra.mxu1 %v4702_v23  ;;  %756 = vmatmul.bf16.gmra.mxu2 %v624_v24  ;;  %v1479_v16 = vunpack.c.l.b16 %v1398_v10  ;;  %v1368_v24 = vld [vmem:[#allocation2 + $0x8f] sm:$0xff] }
  0x82   : > { %776 = vmatmul.bf16.gmra.mxu3 %v628_v25  ;;  %v1713_v25 = vld [vmem:[#allocation2 + $0x88] sm:$0xff]  ;;  %v1400_v32 = vpack.c.bf16 %v1368_v24, %v1368_v24  ;;  %v1134_v36 = vunpack.c.l.b16 %v1053_v28  ;;  %v1135_v37 = vunpack.c.l.b16 %v1054_v29 }
  0x83   : > { %716 = vmatmul.bf16.gmra.mxu0 %v4704_v26  ;;  %v1508_v18 = vpack.c.b16 %v1479_v16, %v1478_v12  ;;  %v1745_v33 = vpack.c.bf16 %v1713_v25, %v1713_v25  ;;  %v1139_v12 = vunpack.c.l.b16 %v1058_v6  ;;  %v1027_v24 = vld [vmem:[#allocation2 + $0xc9] sm:$0xff]  ;;  %v1028_v25 = vld [vmem:[#allocation2 + $0xd1] sm:$0xff] }
  0x84   : > { %v1481_v38 = vunpack.c.l.b16 %v1400_v32  ;;  %v1163_v41 = vpack.c.b16 %v1135_v37, %v1134_v36  ;;  %v1374_v28 = vld [vmem:[#allocation2 + $0xef] sm:$0xff]  ;;  %v1060_v32 = vpack.c.bf16 %v1028_v25, %v1028_v25 }
  0x85   : > { %v1826_v39 = vunpack.c.l.b16 %v1745_v33  ;;  %v1165_v20 = vpack.c.b16 %v1139_v12, %v1138_v14  ;;  %v1406_v35 = vpack.c.bf16 %v1374_v28, %v1374_v28  ;;  %v1031_v25 = vld [vmem:[#allocation2 + $0x109] sm:$0xff] }
  0x86   : > { %v1377_v28 = vld [vmem:[#allocation2 + $0x127] sm:$0xff] }
  0x87   : > { %v1855_v43 = vpack.c.b16 %v1827_v40, %v1826_v39 }
  0x91   : > { %934 = vmatmul.bf16.vlgmr.msrb.gmra.mxu1 %v846_v45  ;;  %1248 = vmatmul.bf16.vlgmr.msrb.gmra.mxu2 %v1160_v46  ;;  %v1024_v45 = vld [vmem:[#allocation2 + $0x91] sm:$0xff]  ;;  %v1369_v46 = vld [vmem:[#allocation2 + $0xa7] sm:$0xff] }
  0x92   : > { %1594 = vmatmul.bf16.vlgmr.msrb.gmra.mxu3 %v1506_v47  ;;  %v1056_v49 = vpack.c.bf16 %v1024_v45, %v1024_v45  ;;  %v1401_v50 = vpack.c.bf16 %v1369_v46, %v1369_v46  ;;  %v1029_v45 = vld [vmem:[#allocation2 + $0xe9] sm:$0xff]  ;;  %v1030_v46 = vld [vmem:[#allocation2 + $0xf1] sm:$0xff] }
  0x93   : > { %1940 = vmatmul.bf16.vlgmr.msrb.gmra.mxu0 %v4672_v15  ;;  %v1507_v15 = vpack.c.b16 %v1477_v2, %v1476_v1  ;;  %v4121_v1 = vld [vmem:[#allocation6 + $0x1a0] sm:$0xff] }
  0x94   : > { %v1137_v53 = vunpack.c.l.b16 %v1056_v49  ;;  %v1482_v54 = vunpack.c.l.b16 %v1401_v50  ;;  %v4129_v2 = vld [vmem:[#allocation6 + $0x1e0] sm:$0xff]  ;;  %2628 = vmatpush.bf16.msra.mxu2 %v4121_v1  ;;  %v4128_v49 = vld [vmem:[#allocation6 + $0x1d8] sm:$0xff]  ;;  %v1376_v50 = vld [vmem:[#allocation2 + $0x10f] sm:$0xff] }
  0x95   : > { %2974 = vmatpush.bf16.msra.mxu3 %v4129_v2  ;;  %v1408_v63 = vpack.c.bf16 %v1376_v50, %v1376_v50 }
  0x96   : > { %v1164_v57 = vpack.c.b16 %v1137_v53, %v1136_v52  ;;  %v1722_v52 = vld [vmem:[#allocation2 + $0x110] sm:$0xff] }
  0x98   : > { %2629 = vmatpush.bf16.msra.mxu2 %v4120_v48 }
  0x99   : > { %2975 = vmatpush.bf16.msra.mxu3 %v4128_v49 }
  0xa1   : > { %939 = vmatmul.bf16.gmra.mxu1 %v1506_v47  ;;  %1253 = vmatmul.bf16.gmra.mxu2 %v1161_v3  ;;  %v1370_v47 = vld [vmem:[#allocation2 + $0xaf] sm:$0xff]  ;;  %v1371_v3 = vld [vmem:[#allocation2 + $0xc7] sm:$0xff] }
  0xa2   : > { %1599 = vmatmul.bf16.gmra.mxu3 %v1507_v15  ;;  %v1402_v51 = vpack.c.bf16 %v1370_v47, %v1370_v47  ;;  %v1403_v9 = vpack.c.bf16 %v1371_v3, %v1371_v3  ;;  %v1375_v47 = vld [vmem:[#allocation2 + $0x107] sm:$0xff]  ;;  %v4112_v3 = vld [vmem:[#allocation6 + $0x158] sm:$0xff] }
  0xa3   : > { %1945 = vmatmul.bf16.gmra.mxu0 %v4693_v59  ;;  %v1367_v59 = vld [vmem:[#allocation2 + $0x87] sm:$0xff]  ;;  %v1407_v62 = vpack.c.bf16 %v1375_v47, %v1375_v47  ;;  %2282 = vmatpush.bf16.msra.mxu1 %v4112_v3 }
  0xa4   : > { %v1399_v31 = vpack.c.bf16 %v1367_v59, %v1367_v59  ;;  %v1483_v56 = vunpack.c.l.b16 %v1402_v51  ;;  %v1484_v16 = vunpack.c.l.b16 %v1403_v9  ;;  %v1721_v51 = vld [vmem:[#allocation2 + $0x108] sm:$0xff]  ;;  %v1489_v9 = vunpack.c.l.b16 %v1408_v63 }
  0xa5   : > { %v1753_v1 = vpack.c.bf16 %v1721_v51, %v1721_v51  ;;  %v1488_v7 = vunpack.c.l.b16 %v1407_v62 }
  0xa6   : > { %v1510_v60 = vpack.c.b16 %v1483_v56, %v1482_v54  ;;  %v1061_v56 = vpack.c.bf16 %v1029_v45, %v1029_v45 }
  0xa8   : > { %v1142_v5 = vunpack.c.l.b16 %v1061_v56 }
  0xb1   : > { %944 = vmatmul.bf16.gmra.mxu1 %v1507_v15  ;;  %1258 = vmatmul.bf16.gmra.mxu2 %v1162_v17  ;;  %v1372_v15 = vld [vmem:[#allocation2 + $0xcf] sm:$0xff] }
  0xb2   : > { %1604 = vmatmul.bf16.gmra.mxu3 %v1508_v18  ;;  %v1404_v10 = vpack.c.bf16 %v1372_v15, %v1372_v15  ;;  %v4136_v15 = vld [vmem:[#allocation6 + $0x218] sm:$0xff] }
  0xb3   : > { %1950 = vmatmul.bf16.gmra.mxu0 %v4704_v26  ;;  %v1480_v26 = vunpack.c.l.b16 %v1399_v31  ;;  %v1059_v31 = vpack.c.bf16 %v1027_v24, %v1027_v24 }
  0xb4   : > { %v1485_v17 = vunpack.c.l.b16 %v1404_v10  ;;  %v1834_v10 = vunpack.c.l.b16 %v1753_v1 }
  0xb5   : > { %v1509_v42 = vpack.c.b16 %v1481_v38, %v1480_v26  ;;  %v1140_v37 = vunpack.c.l.b16 %v1059_v31  ;;  %v1141_v26 = vunpack.c.l.b16 %v1060_v32  ;;  %v1486_v38 = vunpack.c.l.b16 %v1405_v34  ;;  %v1378_v31 = vld [vmem:[#allocation2 + $0x12f] sm:$0xff] }
  0xb6   : > { %v1511_v21 = vpack.c.b16 %v1485_v17, %v1484_v16  ;;  %v1723_v32 = vld [vmem:[#allocation2 + $0x128] sm:$0xff]  ;;  %v1724_v34 = vld [vmem:[#allocation2 + $0x130] sm:$0xff]  ;;  %v1410_v45 = vpack.c.bf16 %v1378_v31, %v1378_v31 }
  0xb8   : > { %v1491_v51 = vunpack.c.l.b16 %v1410_v45 }
  0xc1   : > { %949 = vmatmul.bf16.gmra.mxu1 %v1508_v18  ;;  %1263 = vmatmul.bf16.gmra.mxu2 %v1163_v41  ;;  %v1166_v41 = vpack.c.b16 %v1141_v26, %v1140_v37  ;;  %v1063_v26 = vpack.c.bf16 %v1031_v25, %v1031_v25  ;;  %v1726_v25 = vld [vmem:[#allocation2 + $0x150] sm:$0xff] }
  0xc2   : > { %1609 = vmatmul.bf16.gmra.mxu3 %v1509_v42 }
  0xc3   : > { %1955 = vmatmul.bf16.gmra.mxu0 %v1855_v43  ;;  %v1144_v48 = vunpack.c.l.b16 %v1063_v26 }
  0xce   : > { %v4711_v58 = vpop.f32.mrf.mxu1 }
  0xd0   : > { %v4713_v61 = vpop.f32.mrf.mxu0 }
  0xd1   : > { %954 = vmatmul.bf16.gmra.mxu1 %v1509_v42  ;;  %1268 = vmatmul.bf16.gmra.mxu2 %v1164_v57  ;;  %v1062_v57 = vpack.c.bf16 %v1030_v46, %v1030_v46  ;;  %v1756_v46 = vpack.c.bf16 %v1724_v34, %v1724_v34 }
  0xd2   : > { %1614 = vmatmul.bf16.gmra.mxu3 %v1510_v60 }
  0xd3   : > { %1960 = vmatmul.bf16.gmra.mxu0 %v4670_v13  ;;  %v4137_v13 = vld [vmem:[#allocation6 + $0x220] sm:$0xff]  ;;  %v1143_v6 = vunpack.c.l.b16 %v1062_v57  ;;  %v1837_v56 = vunpack.c.l.b16 %v1756_v46 }
  0xd4   : > { %v4716_v4 = vpop.f32.mrf.mxu2  ;;  %3320 = vmatpush.bf16.msra.mxu0 %v4137_v13 }
  0xd5   : > { %v4718_v0 = vpop.f32.mrf.mxu3  ;;  %v1167_v16 = vpack.c.b16 %v1143_v6, %v1142_v5  ;;  %v1033_v6 = vld [vmem:[#allocation2 + $0x129] sm:$0xff] }
  0xd6   : > { %v4720_v8 = vpop.f32.mrf.mxu1 }
  0xd8   : > { %v4722_v11 = vpop.f32.mrf.mxu0  ;;  %3321 = vmatpush.bf16.msra.mxu0 %v4136_v15 }
  0xdc   : > { %v4724_v18 = vpop.f32.mrf.mxu2 }
  0xdd   : > { %v4726_v19 = vpop.f32.mrf.mxu3 }
  0xde   : > { %v4728_v59 = vpop.f32.mrf.mxu1 }
  0xe0   : > { %v4730_v22 = vpop.f32.mrf.mxu0 }
  0xe1   : > { %959 = vmatmul.bf16.gmra.mxu1 %v1510_v60  ;;  %1273 = vmatmul.bf16.gmra.mxu2 %v1165_v20  ;;  %v1513_v20 = vpack.c.b16 %v1489_v9, %v1488_v7  ;;  %v1034_v7 = vld [vmem:[#allocation2 + $0x131] sm:$0xff]  ;;  %v1379_v9 = vld [vmem:[#allocation2 + $0x147] sm:$0xff] }
  0xe2   : > { %1619 = vmatmul.bf16.gmra.mxu3 %v1511_v21 }
  0xe3   : > { %1965 = vmatmul.bf16.gmra.mxu0 %v4690_v55  ;;  %v1487_v55 = vunpack.c.l.b16 %v1406_v35 }
  0xe4   : > { %v4733_v29 = vpop.f32.mrf.mxu2 }
  0xe5   : > { %v4735_v30 = vpop.f32.mrf.mxu3  ;;  %v1512_v43 = vpack.c.b16 %v1487_v55, %v1486_v38  ;;  %v1064_v38 = vpack.c.bf16 %v1032_v27, %v1032_v27 }
  0xe6   : > { %v4737_v33 = vpop.f32.mrf.mxu1 }
  0xe7   : > { %v1145_v49 = vunpack.c.l.b16 %v1064_v38 }
  0xe8   : > { %v4739_v36 = vpop.f32.mrf.mxu0 }
  0xe9   : > { %v1168_v63 = vpack.c.b16 %v1145_v49, %v1144_v48  ;;  %v4111_v48 = vld [vmem:[#allocation6 + $0x150] sm:$0xff] }
  0xea   : > { %v4135_v49 = vld [vmem:[#allocation6 + $0x210] sm:$0xff]  ;;  %2283 = vmatpush.bf16.msra.mxu1 %v4111_v48 }
  0xeb   : > { %3322 = vmatpush.bf16.msra.mxu0 %v4135_v49 }
  0xec   : > { %v4741_v39 = vpop.f32.mrf.mxu2 }
  0xed   : > { %v4743_v40 = vpop.f32.mrf.mxu3 }
  0xee   : > { %v4745_v42 = vpop.f32.mrf.mxu1 }
  0xf0   : > { %v4747_v44 = vpop.f32.mrf.mxu0 }
  0xf1   : > { %964 = vmatmul.bf16.gmra.mxu1 %v1511_v21  ;;  %1278 = vmatmul.bf16.gmra.mxu2 %v1166_v41  ;;  %v1409_v41 = vpack.c.bf16 %v1377_v28, %v1377_v28 }
  0xf2   : > { %1624 = vmatmul.bf16.gmra.mxu3 %v1512_v43 }
  0xf3   : > { %1970 = vmatmul.bf16.gmra.mxu0 %v4702_v23  ;;  %v1754_v23 = vpack.c.bf16 %v1722_v52, %v1722_v52  ;;  %v1490_v50 = vunpack.c.l.b16 %v1409_v41  ;;  %v1758_v41 = vpack.c.bf16 %v1726_v25, %v1726_v25 }
  0xf4   : > { %v4750_v53 = vpop.f32.mrf.mxu2 }
  0xf5   : > { %v4752_v54 = vpop.f32.mrf.mxu3  ;;  %v1835_v13 = vunpack.c.l.b16 %v1754_v23  ;;  %v1514_v23 = vpack.c.b16 %v1491_v51, %v1490_v50 }
  0xf6   : > { %v4754_v60 = vpop.f32.mrf.mxu1 }
  0xf7   : > { %v1859_v21 = vpack.c.b16 %v1835_v13, %v1834_v10  ;;  %v4119_v10 = vld [vmem:[#allocation6 + $0x190] sm:$0xff] }
  0xf8   : > { %v4756_v2 = vpop.f32.mrf.mxu0  ;;  %v4127_v13 = vld [vmem:[#allocation6 + $0x1d0] sm:$0xff]  ;;  %2630 = vmatpush.bf16.msra.mxu2 %v4119_v10 }
  0xf9   : > { %2976 = vmatpush.bf16.msra.mxu3 %v4127_v13 }
  0xfc   : > { %v4758_v14 = vpop.f32.mrf.mxu2 }
  0xfd   : > { %v4760_v12 = vpop.f32.mrf.mxu3 }
  0xfe   : > { %v4762_v17 = vpop.f32.mrf.mxu1 }
 0x100   : > { %v4764_v24 = vpop.f32.mrf.mxu0 }
 0x101   : > { %969 = vmatmul.bf16.gmra.mxu1 %v1512_v43  ;;  %1283 = vmatmul.bf16.gmra.mxu2 %v1167_v16  ;;  %v1755_v43 = vpack.c.bf16 %v1723_v32, %v1723_v32  ;;  %v1380_v16 = vld [vmem:[#allocation2 + $0x14f] sm:$0xff]  ;;  %v1065_v32 = vpack.c.bf16 %v1033_v6, %v1033_v6 }
 0x102   : > { %1629 = vmatmul.bf16.gmra.mxu3 %v1513_v20  ;;  %v1412_v26 = vpack.c.bf16 %v1380_v16, %v1380_v16 }
 0x103   : > { %1975 = vmatmul.bf16.gmra.mxu0 %v1859_v21  ;;  %v1836_v52 = vunpack.c.l.b16 %v1755_v43  ;;  %v1725_v21 = vld [vmem:[#allocation2 + $0x148] sm:$0xff]  ;;  %v1146_v50 = vunpack.c.l.b16 %v1065_v32 }
 0x104   : > { %v4766_v35 = vpop.f32.mrf.mxu2  ;;  %v1757_v38 = vpack.c.bf16 %v1725_v21, %v1725_v21  ;;  %v1382_v32 = vld [vmem:[#allocation2 + $0x16f] sm:$0xff] }
 0x105   : > { %v4768_v37 = vpop.f32.mrf.mxu3  ;;  %v1860_v3 = vpack.c.b16 %v1837_v56, %v1836_v52  ;;  %v1414_v48 = vpack.c.bf16 %v1382_v32, %v1382_v32 }
 0x106   : > { %v4770_v55 = vpop.f32.mrf.mxu1 }
 0x108   : > { %v4772_v47 = vpop.f32.mrf.mxu0 }
 0x10c   : > { %v4774_v57 = vpop.f32.mrf.mxu2 }
 0x10d   : > { %v4776_v62 = vpop.f32.mrf.mxu3 }
 0x10e   : > { %v935_v1 = vpop.f32.mrf.mxu1 }
 0x10f   : > { %v936_v15 = vadd.f32 %v935_v1, %v4713_v61  ;;  %v1066_v61 = vpack.c.bf16 %v1034_v7, %v1034_v7  ;;  %v1838_v1 = vunpack.c.l.b16 %v1757_v38 }
 0x110   : > { %v1941_v5 = vpop.f32.mrf.mxu0 }
 0x111   : > { %974 = vmatmul.bf16.gmra.mxu1 %v1513_v20  ;;  %1288 = vmatmul.bf16.gmra.mxu2 %v1168_v63  ;;  %v1411_v20 = vpack.c.bf16 %v1379_v9, %v1379_v9  ;;  %v1147_v51 = vunpack.c.l.b16 %v1066_v61  ;;  %v1493_v63 = vunpack.c.l.b16 %v1412_v26  ;;  %v1727_v61 = vld [vmem:[#allocation2 + $0x168] sm:$0xff] }
 0x112   : > { %1634 = vmatmul.bf16.gmra.mxu3 %v1514_v23 }
 0x113   : > { %1980 = vmatmul.bf16.gmra.mxu0 %v1860_v3  ;;  %v1492_v56 = vunpack.c.l.b16 %v1411_v20  ;;  %v1839_v3 = vunpack.c.l.b16 %v1758_v41  ;;  %v1169_v9 = vpack.c.b16 %v1147_v51, %v1146_v50 }
 0x114   : > { %v1249_v27 = vpop.f32.mrf.mxu2 }
 0x115   : > { %v1329_v28 = vadd.f32 %v1249_v27, %v936_v15  ;;  %v1595_v31 = vpop.f32.mrf.mxu3  ;;  %v1515_v13 = vpack.c.b16 %v1493_v63, %v1492_v56 }
 0x116   : > { %v937_v34 = vpop.f32.mrf.mxu1 }
 0x117   : > { %v1675_v45 = vadd.f32 %v1595_v31, %v1329_v28  ;;  %v938_v43 = vadd.f32 %v937_v34, %v4722_v11  ;;  %v1861_v11 = vpack.c.b16 %v1839_v3, %v1838_v1  ;;  %v1036_v28 = vld [vmem:[#allocation2 + $0x151] sm:$0xff]  ;;  %v1381_v31 = vld [vmem:[#allocation2 + $0x167] sm:$0xff] }
 0x118   : > { %v1943_v46 = vpop.f32.mrf.mxu0  ;;  %v1728_v34 = vld [vmem:[#allocation2 + $0x170] sm:$0xff] }
 0x119   : > { %v4780_v52 = vadd.f32 %v1941_v5, %v1675_v45  ;;  %v1035_v5 = vld [vmem:[#allocation2 + $0x149] sm:$0xff]  ;;  %v1068_v45 = vpack.c.bf16 %v1036_v28, %v1036_v28  ;;  %v1760_v49 = vpack.c.bf16 %v1728_v34, %v1728_v34 }
 0x11a   : > { %v1067_v41 = vpack.c.bf16 %v1035_v5, %v1035_v5 }
 0x11b   : > { %v1149_v63 = vunpack.c.l.b16 %v1068_v45  ;;  %v1729_v45 = vld [vmem:[#allocation2 + $0x188] sm:$0xff] }
 0x11c   : > { %v1251_v15 = vpop.f32.mrf.mxu2  ;;  %v1148_v56 = vunpack.c.l.b16 %v1067_v41  ;;  %v1384_v41 = vld [vmem:[#allocation2 + $0x18f] sm:$0xff] }
 0x11d   : > { %v1330_v6 = vadd.f32 %v1251_v15, %v938_v43  ;;  %v1597_v7 = vpop.f32.mrf.mxu3  ;;  %v1495_v15 = vunpack.c.l.b16 %v1414_v48 }
 0x11e   : > { %v940_v10 = vpop.f32.mrf.mxu1 }
 0x11f   : > { %v1676_v16 = vadd.f32 %v1597_v7, %v1330_v6  ;;  %v941_v21 = vadd.f32 %v940_v10, %v4730_v22  ;;  %v1413_v22 = vpack.c.bf16 %v1381_v31, %v1381_v31  ;;  %v1841_v7 = vunpack.c.l.b16 %v1760_v49 }
 0x120   : > { %v1946_v25 = vpop.f32.mrf.mxu0 }
 0x121   : > { %979 = vmatmul.bf16.gmra.mxu1 %v1514_v23  ;;  %1293 = vmatmul.bf16.gmra.mxu2 %v1169_v9  ;;  %v4783_v27 = vadd.f32 %v1943_v46, %v1676_v16  ;;  %v1759_v23 = vpack.c.bf16 %v1727_v61, %v1727_v61  ;;  %v1494_v3 = vunpack.c.l.b16 %v1413_v22  ;;  %v1170_v16 = vpack.c.b16 %v1149_v63, %v1148_v56  ;;  %v1037_v61 = vld [vmem:[#allocation2 + $0x169] sm:$0xff] }
 0x122   : > { %1639 = vmatmul.bf16.gmra.mxu3 %v1515_v13 }
 0x123   : > { %1985 = vmatmul.bf16.gmra.mxu0 %v1861_v11  ;;  %v1840_v6 = vunpack.c.l.b16 %v1759_v23  ;;  %v1516_v5 = vpack.c.b16 %v1495_v15, %v1494_v3  ;;  %v1069_v23 = vpack.c.bf16 %v1037_v61, %v1037_v61 }
 0x124   : > { %v1254_v20 = vpop.f32.mrf.mxu2 }
 0x125   : > { %v1331_v26 = vadd.f32 %v1254_v20, %v941_v21  ;;  %v1600_v38 = vpop.f32.mrf.mxu3  ;;  %v1862_v28 = vpack.c.b16 %v1841_v7, %v1840_v6  ;;  %v1383_v20 = vld [vmem:[#allocation2 + $0x187] sm:$0xff] }
 0x126   : > { %v942_v43 = vpop.f32.mrf.mxu1  ;;  %v4110_v6 = vld [vmem:[#allocation6 + $0x148] sm:$0xff] }
 0x127   : > { %v1677_v46 = vadd.f32 %v1600_v38, %v1331_v26  ;;  %v943_v50 = vadd.f32 %v942_v43, %v4739_v36  ;;  %v4118_v26 = vld [vmem:[#allocation6 + $0x188] sm:$0xff]  ;;  %v1730_v43 = vld [vmem:[#allocation2 + $0x190] sm:$0xff]  ;;  %2284 = vmatpush.bf16.msra.mxu1 %v4110_v6 }
 0x128   : > { %v1948_v51 = vpop.f32.mrf.mxu0  ;;  %v4126_v38 = vld [vmem:[#allocation6 + $0x1c8] sm:$0xff]  ;;  %2631 = vmatpush.bf16.msra.mxu2 %v4118_v26  ;;  %v1762_v56 = vpack.c.bf16 %v1730_v43, %v1730_v43 }
 0x129   : > { %v4786_v1 = vadd.f32 %v1946_v25, %v1677_v46  ;;  %v1038_v25 = vld [vmem:[#allocation2 + $0x171] sm:$0xff]  ;;  %2977 = vmatpush.bf16.msra.mxu3 %v4126_v38  ;;  %v1415_v46 = vpack.c.bf16 %v1383_v20, %v1383_v20  ;;  %v4134_v7 = vld [vmem:[#allocation6 + $0x208] sm:$0xff] }
 0x12a   : > { %3323 = vmatpush.bf16.msra.mxu0 %v4134_v7 }
 0x12c   : > { %v1256_v9 = vpop.f32.mrf.mxu2 }
 0x12d   : > { %v1332_v10 = vadd.f32 %v1256_v9, %v943_v50  ;;  %v1602_v11 = vpop.f32.mrf.mxu3  ;;  %v1416_v50 = vpack.c.bf16 %v1384_v41, %v1384_v41  ;;  %v1150_v9 = vunpack.c.l.b16 %v1069_v23  ;;  %v1386_v23 = vld [vmem:[#allocation2 + $0x1af] sm:$0xff] }
 0x12e   : > { %v945_v21 = vpop.f32.mrf.mxu1  ;;  %v1418_v6 = vpack.c.bf16 %v1386_v23, %v1386_v23 }
 0x12f   : > { %v1678_v31 = vadd.f32 %v1602_v11, %v1332_v10  ;;  %v946_v32 = vadd.f32 %v945_v21, %v4747_v44  ;;  %v1497_v21 = vunpack.c.l.b16 %v1416_v50 }
 0x130   : > { %v1951_v36 = vpop.f32.mrf.mxu0 }
 0x131   : > { %984 = vmatmul.bf16.gmra.mxu1 %v1515_v13  ;;  %1298 = vmatmul.bf16.gmra.mxu2 %v1170_v16  ;;  %v4789_v34 = vadd.f32 %v1948_v51, %v1678_v31  ;;  %v1070_v13 = vpack.c.bf16 %v1038_v25, %v1038_v25  ;;  %v1761_v51 = vpack.c.bf16 %v1729_v45, %v1729_v45  ;;  %v1496_v16 = vunpack.c.l.b16 %v1415_v46 }
 0x132   : > { %1644 = vmatmul.bf16.gmra.mxu3 %v1516_v5  ;;  %v1843_v31 = vunpack.c.l.b16 %v1762_v56 }
 0x133   : > { %1990 = vmatmul.bf16.gmra.mxu0 %v1862_v28  ;;  %v1151_v10 = vunpack.c.l.b16 %v1070_v13  ;;  %v1842_v28 = vunpack.c.l.b16 %v1761_v51  ;;  %v1517_v38 = vpack.c.b16 %v1497_v21, %v1496_v16  ;;  %v1731_v13 = vld [vmem:[#allocation2 + $0x1a8] sm:$0xff] }
 0x134   : > { %v1259_v22 = vpop.f32.mrf.mxu2 }
 0x135   : > { %v1333_v48 = vadd.f32 %v1259_v22, %v946_v32  ;;  %v1605_v44 = vpop.f32.mrf.mxu3  ;;  %v1171_v20 = vpack.c.b16 %v1151_v10, %v1150_v9 }
 0x136   : > { %v947_v49 = vpop.f32.mrf.mxu1 }
 0x137   : > { %v1679_v63 = vadd.f32 %v1605_v44, %v1333_v48  ;;  %v948_v3 = vadd.f32 %v947_v49, %v4756_v2  ;;  %v1863_v2 = vpack.c.b16 %v1843_v31, %v1842_v28  ;;  %v1040_v48 = vld [vmem:[#allocation2 + $0x191] sm:$0xff]  ;;  %v1385_v44 = vld [vmem:[#allocation2 + $0x1a7] sm:$0xff] }
 0x138   : > { %v1953_v15 = vpop.f32.mrf.mxu0  ;;  %v1732_v49 = vld [vmem:[#allocation2 + $0x1b0] sm:$0xff] }
 0x139   : > { %v4792_v11 = vadd.f32 %v1951_v36, %v1679_v63  ;;  %v1039_v36 = vld [vmem:[#allocation2 + $0x189] sm:$0xff]  ;;  %v1072_v63 = vpack.c.bf16 %v1040_v48, %v1040_v48  ;;  %v1764_v7 = vpack.c.bf16 %v1732_v49, %v1732_v49 }
 0x13a   : > { %v1071_v56 = vpack.c.bf16 %v1039_v36, %v1039_v36  ;;  %v1388_v49 = vld [vmem:[#allocation2 + $0x1cf] sm:$0xff] }
 0x13b   : > { %v1153_v21 = vunpack.c.l.b16 %v1072_v63 }
 0x13c   : > { %v1261_v32 = vpop.f32.mrf.mxu2  ;;  %v1152_v16 = vunpack.c.l.b16 %v1071_v56  ;;  %v4125_v56 = vld [vmem:[#allocation6 + $0x1c0] sm:$0xff] }
 0x13d   : > { %v1334_v61 = vadd.f32 %v1261_v32, %v948_v3  ;;  %v1607_v25 = vpop.f32.mrf.mxu3  ;;  %v1499_v32 = vunpack.c.l.b16 %v1418_v6  ;;  %v4807_v6 = vld [vmem:[%s4570_s7 + $0xf8] sm:$0xff]  ;;  %2978 = vmatpush.bf16.msra.mxu3 %v4125_v56 }
 0x13e   : > { %v950_v26 = vpop.f32.mrf.mxu1  ;;  %387 = vst [vmem:[#allocation2 + $0x210] sm:$0xff] %v4807_v6 }
 0x13f   : > { %v1680_v41 = vadd.f32 %v1607_v25, %v1334_v61  ;;  %v951_v45 = vadd.f32 %v950_v26, %v4764_v24  ;;  %v1417_v24 = vpack.c.bf16 %v1385_v44, %v1385_v44  ;;  %v1845_v25 = vunpack.c.l.b16 %v1764_v7 }
 0x140   : > { %v1956_v43 = vpop.f32.mrf.mxu0 }
 0x141   : > { %989 = vmatmul.bf16.gmra.mxu1 %v1516_v5  ;;  %1303 = vmatmul.bf16.gmra.mxu2 %v1171_v20  ;;  %v4795_v22 = vadd.f32 %v1953_v15, %v1680_v41  ;;  %v1763_v5 = vpack.c.bf16 %v1731_v13, %v1731_v13  ;;  %v1498_v31 = vunpack.c.l.b16 %v1417_v24  ;;  %v1172_v41 = vpack.c.b16 %v1153_v21, %v1152_v16  ;;  %v1387_v13 = vld [vmem:[#allocation2 + $0x1c7] sm:$0xff]  ;;  %v4804_v24 = vld [vmem:[%s4570_s7 + $0xf0] sm:$0xff] }
 0x142   : > { %1649 = vmatmul.bf16.gmra.mxu3 %v1517_v38  ;;  %386 = vst [vmem:[#allocation2 + $0x208] sm:$0xff] %v4804_v24  ;;  %v1419_v16 = vpack.c.bf16 %v1387_v13, %v1387_v13  ;;  %v1420_v21 = vpack.c.bf16 %v1388_v49, %v1388_v49 }
 0x143   : > { %1995 = vmatmul.bf16.gmra.mxu0 %v1863_v2  ;;  %v1844_v61 = vunpack.c.l.b16 %v1763_v5  ;;  %v1518_v36 = vpack.c.b16 %v1499_v32, %v1498_v31 }
 0x144   : > { %v1264_v46 = vpop.f32.mrf.mxu2 }
 0x145   : > { %v1335_v50 = vadd.f32 %v1264_v46, %v951_v45  ;;  %v1610_v51 = vpop.f32.mrf.mxu3  ;;  %v1864_v48 = vpack.c.b16 %v1845_v25, %v1844_v61  ;;  %v4109_v25 = vld [vmem:[#allocation6 + $0x140] sm:$0xff] }
 0x146   : > { %v952_v3 = vpop.f32.mrf.mxu1  ;;  %2285 = vmatpush.bf16.msra.mxu1 %v4109_v25 }
 0x147   : > { %v1681_v15 = vadd.f32 %v1610_v51, %v1335_v50  ;;  %v953_v9 = vadd.f32 %v952_v3, %v4772_v47  ;;  %v1041_v47 = vld [vmem:[#allocation2 + $0x1a9] sm:$0xff]  ;;  %v4117_v51 = vld [vmem:[#allocation6 + $0x180] sm:$0xff] }
 0x148   : > { %v1958_v10 = vpop.f32.mrf.mxu0  ;;  %v1733_v50 = vld [vmem:[#allocation2 + $0x1c8] sm:$0xff]  ;;  %v1734_v3 = vld [vmem:[#allocation2 + $0x1d0] sm:$0xff]  ;;  %2632 = vmatpush.bf16.msra.mxu2 %v4117_v51 }
 0x149   : > { %v4798_v28 = vadd.f32 %v1956_v43, %v1681_v15  ;;  %v1042_v43 = vld [vmem:[#allocation2 + $0x1b1] sm:$0xff]  ;;  %v1073_v15 = vpack.c.bf16 %v1041_v47, %v1041_v47  ;;  %v1766_v31 = vpack.c.bf16 %v1734_v3, %v1734_v3 }
 0x14b   : > { %v1847_v47 = vunpack.c.l.b16 %v1766_v31 }
 0x14c   : > { %v1266_v20 = vpop.f32.mrf.mxu2 }
 0x14d   : > { %v1336_v26 = vadd.f32 %v1266_v20, %v953_v9  ;;  %v1612_v2 = vpop.f32.mrf.mxu3  ;;  %v1074_v9 = vpack.c.bf16 %v1042_v43, %v1042_v43  ;;  %v4133_v20 = vld [vmem:[#allocation6 + $0x200] sm:$0xff] }
 0x14e   : > { %v955_v45 = vpop.f32.mrf.mxu1  ;;  %3324 = vmatpush.bf16.msra.mxu0 %v4133_v20 }
 0x14f   : > { %v1682_v44 = vadd.f32 %v1612_v2, %v1336_v26  ;;  %v956_v63 = vadd.f32 %v955_v45, %v4711_v58  ;;  %v1765_v58 = vpack.c.bf16 %v1733_v50, %v1733_v50  ;;  %v1154_v26 = vunpack.c.l.b16 %v1073_v15  ;;  %v1044_v15 = vld [vmem:[#allocation2 + $0x1d1] sm:$0xff] }
 0x150   : > { %v1961_v23 = vpop.f32.mrf.mxu0  ;;  %v1155_v2 = vunpack.c.l.b16 %v1074_v9  ;;  %v1500_v45 = vunpack.c.l.b16 %v1419_v16  ;;  %v1389_v9 = vld [vmem:[#allocation2 + $0x1e7] sm:$0xff]  ;;  %v1076_v20 = vpack.c.bf16 %v1044_v15, %v1044_v15 }
 0x151   : > { %994 = vmatmul.bf16.gmra.mxu1 %v1517_v38  ;;  %1308 = vmatmul.bf16.gmra.mxu2 %v1172_v41  ;;  %v4800_v46 = vadd.f32 %v1958_v10, %v1682_v44  ;;  %v1846_v44 = vunpack.c.l.b16 %v1765_v58  ;;  %v1735_v16 = vld [vmem:[#allocation2 + $0x1e8] sm:$0xff] }
 0x152   : > { %1654 = vmatmul.bf16.gmra.mxu3 %v1518_v36  ;;  %v1173_v51 = vpack.c.b16 %v1155_v2, %v1154_v26 }
 0x153   : > { %2000 = vmatmul.bf16.gmra.mxu0 %v1864_v48  ;;  %v1501_v48 = vunpack.c.l.b16 %v1420_v21  ;;  %v1865_v3 = vpack.c.b16 %v1847_v47, %v1846_v44  ;;  %v1736_v21 = vld [vmem:[#allocation2 + $0x1f0] sm:$0xff] }
 0x154   : > { %v1269_v5 = vpop.f32.mrf.mxu2 }
 0x155   : > { %v1337_v38 = vadd.f32 %v1269_v5, %v956_v63  ;;  %v1615_v7 = vpop.f32.mrf.mxu3  ;;  %v1519_v63 = vpack.c.b16 %v1501_v48, %v1500_v45  ;;  %v1768_v45 = vpack.c.bf16 %v1736_v21, %v1736_v21 }
 0x156   : > { %v957_v10 = vpop.f32.mrf.mxu1 }
 0x157   : > { %v1683_v32 = vadd.f32 %v1615_v7, %v1337_v38  ;;  %v958_v43 = vadd.f32 %v957_v10, %v4720_v8  ;;  %v1390_v10 = vld [vmem:[#allocation2 + $0x1ef] sm:$0xff] }
 0x158   : > { %v1963_v61 = vpop.f32.mrf.mxu0  ;;  %v1422_v2 = vpack.c.bf16 %v1390_v10, %v1390_v10 }
 0x159   : > { %v4811_v41 = vadd.f32 %v1961_v23, %v1683_v32  ;;  %v1043_v23 = vld [vmem:[#allocation2 + $0x1c9] sm:$0xff] }
 0x15a   : > { %v1075_v25 = vpack.c.bf16 %v1043_v23, %v1043_v23 }
 0x15c   : > { %v1271_v13 = vpop.f32.mrf.mxu2  ;;  %v1156_v47 = vunpack.c.l.b16 %v1075_v25  ;;  %v1392_v25 = vld [vmem:[#allocation2 + $0x20f] sm:$0xff] }
 0x15d   : > { %v1338_v49 = vadd.f32 %v1271_v13, %v958_v43  ;;  %v1617_v50 = vpop.f32.mrf.mxu3  ;;  %v1157_v43 = vunpack.c.l.b16 %v1076_v20 }
 0x15e   : > { %v960_v56 = vpop.f32.mrf.mxu1 }
 0x15f   : > { %v1684_v5 = vadd.f32 %v1617_v50, %v1338_v49  ;;  %v961_v8 = vadd.f32 %v960_v56, %v4728_v59  ;;  %v1503_v49 = vunpack.c.l.b16 %v1422_v2  ;;  %v1174_v15 = vpack.c.b16 %v1157_v43, %v1156_v47 }
 0x160   : > { %v1966_v38 = vpop.f32.mrf.mxu0  ;;  %v1424_v47 = vpack.c.bf16 %v1392_v25, %v1392_v25 }
 0x161   : > { %999 = vmatmul.bf16.gmra.mxu1 %v1518_v36  ;;  %1313 = vmatmul.bf16.gmra.mxu2 %v1173_v51  ;;  %v4814_v7 = vadd.f32 %v1963_v61, %v1684_v5  ;;  %v1421_v36 = vpack.c.bf16 %v1389_v9, %v1389_v9  ;;  %v1767_v61 = vpack.c.bf16 %v1735_v16, %v1735_v16  ;;  %v1849_v51 = vunpack.c.l.b16 %v1768_v45 }
 0x162   : > { %1659 = vmatmul.bf16.gmra.mxu3 %v1519_v63 }
 0x163   : > { %2005 = vmatmul.bf16.gmra.mxu0 %v1865_v3  ;;  %v1502_v59 = vunpack.c.l.b16 %v1421_v36  ;;  %v1848_v50 = vunpack.c.l.b16 %v1767_v61 }
 0x164   : > { %v1274_v58 = vpop.f32.mrf.mxu2 }
 0x165   : > { %v1339_v31 = vadd.f32 %v1274_v58, %v961_v8  ;;  %v1620_v32 = vpop.f32.mrf.mxu3  ;;  %v1520_v8 = vpack.c.b16 %v1503_v49, %v1502_v59  ;;  %v1866_v10 = vpack.c.b16 %v1849_v51, %v1848_v50 }
 0x166   : > { %v962_v26 = vpop.f32.mrf.mxu1 }
 0x167   : > { %v1685_v48 = vadd.f32 %v1620_v32, %v1339_v31  ;;  %v963_v56 = vadd.f32 %v962_v26, %v4737_v33  ;;  %v1046_v31 = vld [vmem:[#allocation2 + $0x1f1] sm:$0xff]  ;;  %v1391_v33 = vld [vmem:[#allocation2 + $0x207] sm:$0xff] }
 0x168   : > { %v1968_v44 = vpop.f32.mrf.mxu0  ;;  %v1078_v61 = vpack.c.bf16 %v1046_v31, %v1046_v31 }
 0x169   : > { %v4817_v13 = vadd.f32 %v1966_v38, %v1685_v48  ;;  %v1045_v38 = vld [vmem:[#allocation2 + $0x1e9] sm:$0xff]  ;;  %v1423_v48 = vpack.c.bf16 %v1391_v33, %v1391_v33 }
 0x16a   : > { %v1077_v2 = vpack.c.bf16 %v1045_v38, %v1045_v38  ;;  %v2053_v33 = vld [vmem:[#allocation2 + $0x29] sm:$0xff] }
 0x16b   : > { %v1504_v51 = vunpack.c.l.b16 %v1423_v48 }
 0x16c   : > { %v1276_v3 = vpop.f32.mrf.mxu2  ;;  %v1158_v49 = vunpack.c.l.b16 %v1077_v2  ;;  %v2747_v2 = vld [vmem:[#allocation2 + $0x50] sm:$0xff] }
 0x16d   : > { %v1340_v5 = vadd.f32 %v1276_v3, %v963_v56  ;;  %v1622_v23 = vpop.f32.mrf.mxu3  ;;  %v1505_v56 = vunpack.c.l.b16 %v1424_v47  ;;  %v2085_v47 = vpack.c.bf16 %v2053_v33, %v2053_v33 }
 0x16e   : > { %v965_v9 = vpop.f32.mrf.mxu1 }
 0x16f   : > { %v1686_v16 = vadd.f32 %v1622_v23, %v1340_v5  ;;  %v966_v32 = vadd.f32 %v965_v9, %v4745_v42  ;;  %v1159_v42 = vunpack.c.l.b16 %v1078_v61  ;;  %v1521_v38 = vpack.c.b16 %v1505_v56, %v1504_v51  ;;  %v3092_v61 = vld [vmem:[#allocation2 + $0x49] sm:$0xff] }
 0x170   : > { %v1971_v21 = vpop.f32.mrf.mxu0  ;;  %v2779_v51 = vpack.c.bf16 %v2747_v2, %v2747_v2  ;;  %v3124_v56 = vpack.c.bf16 %v3092_v61, %v3092_v61 }
 0x171   : > { %1004 = vmatmul.bf16.gmra.mxu1 %v1519_v63  ;;  %1318 = vmatmul.bf16.gmra.mxu2 %v1174_v15  ;;  %v4820_v58 = vadd.f32 %v1968_v44, %v1686_v16  ;;  %v1769_v63 = vpack.c.bf16 %v4804_v24, %v4804_v24  ;;  %v1770_v44 = vpack.c.bf16 %v4807_v6, %v4807_v6 }
 0x172   : > { %1664 = vmatmul.bf16.gmra.mxu3 %v1520_v8  ;;  %v1175_v16 = vpack.c.b16 %v1159_v42, %v1158_v49 }
 0x173   : > { %2010 = vmatmul.bf16.gmra.mxu0 %v1866_v10  ;;  %v1850_v3 = vunpack.c.l.b16 %v1769_v63  ;;  %v1851_v5 = vunpack.c.l.b16 %v1770_v44 }
 0x174   : > { %v1279_v20 = vpop.f32.mrf.mxu2 }
 0x175   : > { %v1341_v26 = vadd.f32 %v1279_v20, %v966_v32  ;;  %v1625_v36 = vpop.f32.mrf.mxu3  ;;  %v1867_v31 = vpack.c.b16 %v1851_v5, %v1850_v3  ;;  %v2400_v20 = vld [vmem:[#allocation2 + $0x47] sm:$0xff] }
 0x176   : > { %v967_v45 = vpop.f32.mrf.mxu1 }
 0x177   : > { %v1687_v43 = vadd.f32 %v1625_v36, %v1341_v26  ;;  %v968_v23 = vadd.f32 %v967_v45, %v4754_v60  ;;  %v2401_v26 = vld [vmem:[#allocation2 + $0x4f] sm:$0xff] }
 0x178   : > { %v1973_v59 = vpop.f32.mrf.mxu0  ;;  %v2746_v60 = vld [vmem:[#allocation2 + $0x48] sm:$0xff]  ;;  %v3093_v45 = vld [vmem:[#allocation2 + $0x51] sm:$0xff]  ;;  %v2433_v49 = vpack.c.bf16 %v2401_v26, %v2401_v26 }
 0x179   : > { %v4827_v50 = vadd.f32 %v1971_v21, %v1687_v43  ;;  %v2054_v21 = vld [vmem:[#allocation2 + $0x31] sm:$0xff]  ;;  %v2432_v43 = vpack.c.bf16 %v2400_v20, %v2400_v20  ;;  %v3125_v3 = vpack.c.bf16 %v3093_v45, %v3093_v45 }
 0x17c   : > { %v1281_v15 = vpop.f32.mrf.mxu2 }
 0x17d   : > { %v1342_v9 = vadd.f32 %v1281_v15, %v968_v23  ;;  %v1627_v10 = vpop.f32.mrf.mxu3  ;;  %v2166_v15 = vunpack.c.l.b16 %v2085_v47 }
 0x17e   : > { %v970_v24 = vpop.f32.mrf.mxu1 }
 0x17f   : > { %v1688_v6 = vadd.f32 %v1627_v10, %v1342_v9  ;;  %v971_v36 = vadd.f32 %v970_v24, %v4762_v17  ;;  %v2513_v17 = vunpack.c.l.b16 %v2432_v43  ;;  %v2514_v10 = vunpack.c.l.b16 %v2433_v49  ;;  %v2749_v43 = vld [vmem:[#allocation2 + $0x70] sm:$0xff] }
 0x180   : > { %v1976_v32 = vpop.f32.mrf.mxu0  ;;  %v3094_v49 = vld [vmem:[#allocation2 + $0x69] sm:$0xff] }
 0x181   : > { %1009 = vmatmul.bf16.gmra.mxu1 %v1520_v8  ;;  %1323 = vmatmul.bf16.gmra.mxu2 %v1175_v16  ;;  %v4830_v25 = vadd.f32 %v1973_v59, %v1688_v6  ;;  %v2086_v8 = vpack.c.bf16 %v2054_v21, %v2054_v21  ;;  %v2778_v59 = vpack.c.bf16 %v2746_v60, %v2746_v60  ;;  %v3206_v6 = vunpack.c.l.b16 %v3125_v3 }
 0x182   : > { %1669 = vmatmul.bf16.gmra.mxu3 %v1521_v38  ;;  %v2860_v38 = vunpack.c.l.b16 %v2779_v51 }
 0x183   : > { %2015 = vmatmul.bf16.gmra.mxu0 %v1867_v31  ;;  %v2167_v9 = vunpack.c.l.b16 %v2086_v8  ;;  %v2859_v24 = vunpack.c.l.b16 %v2778_v59  ;;  %v3205_v31 = vunpack.c.l.b16 %v3124_v56  ;;  %v2748_v8 = vld [vmem:[#allocation2 + $0x68] sm:$0xff] }
 0x184   : > { %v1284_v48 = vpop.f32.mrf.mxu2 }
 0x185   : > { %v1343_v63 = vadd.f32 %v1284_v48, %v971_v36  ;;  %v1630_v44 = vpop.f32.mrf.mxu3  ;;  %v2198_v60 = vpack.c.b16 %v2167_v9, %v2166_v15  ;;  %v2545_v36 = vpack.c.b16 %v2514_v10, %v2513_v17  ;;  %v2891_v61 = vpack.c.b16 %v2860_v38, %v2859_v24 }
 0x186   : > { %v972_v42 = vpop.f32.mrf.mxu1  ;;  %v3237_v45 = vpack.c.b16 %v3206_v6, %v3205_v31  ;;  %v2780_v9 = vpack.c.bf16 %v2748_v8, %v2748_v8  ;;  %v2781_v17 = vpack.c.bf16 %v2749_v43, %v2749_v43 }
 0x187   : > { %v1689_v5 = vadd.f32 %v1630_v44, %v1343_v63  ;;  %v973_v33 = vadd.f32 %v972_v42, %v4770_v55  ;;  %v2402_v63 = vld [vmem:[#allocation2 + $0x67] sm:$0xff]  ;;  %v2403_v44 = vld [vmem:[#allocation2 + $0x6f] sm:$0xff] }
 0x188   : > { %v1978_v23 = vpop.f32.mrf.mxu0  ;;  %v3095_v42 = vld [vmem:[#allocation2 + $0x71] sm:$0xff]  ;;  %v2434_v3 = vpack.c.bf16 %v2402_v63, %v2402_v63 }
 0x189   : > { %v4833_v16 = vadd.f32 %v1976_v32, %v1689_v5  ;;  %v2435_v5 = vpack.c.bf16 %v2403_v44, %v2403_v44  ;;  %v3127_v10 = vpack.c.bf16 %v3095_v42, %v3095_v42  ;;  %v2405_v42 = vld [vmem:[#allocation2 + $0x8f] sm:$0xff] }
 0x18a   : > { %v2515_v31 = vunpack.c.l.b16 %v2434_v3  ;;  %v3097_v3 = vld [vmem:[#allocation2 + $0x91] sm:$0xff] }
 0x18b   : > { %v2516_v6 = vunpack.c.l.b16 %v2435_v5 }
 0x18c   : > { %v1286_v21 = vpop.f32.mrf.mxu2 }
 0x18d   : > { %v1344_v20 = vadd.f32 %v1286_v21, %v973_v33  ;;  %v1632_v26 = vpop.f32.mrf.mxu3  ;;  %v2862_v21 = vunpack.c.l.b16 %v2781_v17 }
 0x18e   : > { %v975_v2 = vpop.f32.mrf.mxu1 }
 0x18f   : > { %v1690_v48 = vadd.f32 %v1632_v26, %v1344_v20  ;;  %v976_v55 = vadd.f32 %v975_v2, %v4716_v4  ;;  %v2861_v4 = vunpack.c.l.b16 %v2780_v9  ;;  %v3208_v26 = vunpack.c.l.b16 %v3127_v10 }
 0x190   : > { %v1981_v47 = vpop.f32.mrf.mxu0 }
 0x191   : > { %2286 = vmatmul.bf16.vlgmr.msra.gmra.mxu1 %v2198_v60  ;;  %2633 = vmatmul.bf16.vlgmr.msra.gmra.mxu2 %v2545_v36  ;;  %v4836_v32 = vadd.f32 %v1978_v23, %v1690_v48  ;;  %v3126_v23 = vpack.c.bf16 %v3094_v49, %v3094_v49  ;;  %v2546_v48 = vpack.c.b16 %v2516_v6, %v2515_v31 }
 0x192   : > { %2979 = vmatmul.bf16.vlgmr.msra.gmra.mxu3 %v2891_v61  ;;  %v2892_v44 = vpack.c.b16 %v2862_v21, %v2861_v4  ;;  %v3129_v31 = vpack.c.bf16 %v3097_v3, %v3097_v3  ;;  %v2407_v3 = vld [vmem:[#allocation2 + $0xaf] sm:$0xff] }
 0x193   : > { %3325 = vmatmul.bf16.vlgmr.msra.gmra.mxu0 %v3237_v45  ;;  %v3207_v20 = vunpack.c.l.b16 %v3126_v23  ;;  %v2437_v23 = vpack.c.bf16 %v2405_v42, %v2405_v42 }
 0x194   : > { %v1289_v59 = vpop.f32.mrf.mxu2 }
 0x195   : > { %v1345_v51 = vadd.f32 %v1289_v59, %v976_v55  ;;  %v1635_v56 = vpop.f32.mrf.mxu3  ;;  %v3238_v8 = vpack.c.b16 %v3208_v26, %v3207_v20  ;;  %v2750_v59 = vld [vmem:[#allocation2 + $0x88] sm:$0xff]  ;;  %v2518_v20 = vunpack.c.l.b16 %v2437_v23 }
 0x196   : > { %v977_v15 = vpop.f32.mrf.mxu1 }
 0x197   : > { %v1691_v24 = vadd.f32 %v1635_v56, %v1345_v51  ;;  %v978_v60 = vadd.f32 %v977_v15, %v4724_v18  ;;  %v2751_v51 = vld [vmem:[#allocation2 + $0x90] sm:$0xff] }
 0x198   : > { %v1983_v38 = vpop.f32.mrf.mxu0  ;;  %v3096_v56 = vld [vmem:[#allocation2 + $0x89] sm:$0xff] }
 0x199   : > { %v4839_v33 = vadd.f32 %v1981_v47, %v1691_v24  ;;  %v2404_v47 = vld [vmem:[#allocation2 + $0x87] sm:$0xff]  ;;  %v2783_v24 = vpack.c.bf16 %v2751_v51, %v2751_v51 }
 0x19a   : > { %v2436_v17 = vpack.c.bf16 %v2404_v47, %v2404_v47 }
 0x19c   : > { %v1291_v36 = vpop.f32.mrf.mxu2  ;;  %v2517_v21 = vunpack.c.l.b16 %v2436_v17  ;;  %v3099_v17 = vld [vmem:[#allocation2 + $0xb1] sm:$0xff] }
 0x19d   : > { %v1346_v2 = vadd.f32 %v1291_v36, %v978_v60  ;;  %v1637_v61 = vpop.f32.mrf.mxu3  ;;  %v2864_v60 = vunpack.c.l.b16 %v2783_v24 }
 0x19e   : > { %v980_v63 = vpop.f32.mrf.mxu1 }
 0x19f   : > { %v1692_v55 = vadd.f32 %v1637_v61, %v1346_v2  ;;  %v981_v18 = vadd.f32 %v980_v63, %v4733_v29  ;;  %v3210_v2 = vunpack.c.l.b16 %v3129_v31 }
 0x1a0   : > { %v1986_v43 = vpop.f32.mrf.mxu0 }
 0x1a1   : > { %2291 = vmatmul.bf16.gmra.mxu1 %v3237_v45  ;;  %2638 = vmatmul.bf16.gmra.mxu2 %v2546_v48  ;;  %v4842_v49 = vadd.f32 %v1983_v38, %v1692_v55  ;;  %v2782_v45 = vpack.c.bf16 %v2750_v59, %v2750_v59  ;;  %v3128_v38 = vpack.c.bf16 %v3096_v56, %v3096_v56 }
 0x1a2   : > { %2984 = vmatmul.bf16.gmra.mxu3 %v2892_v44  ;;  %v2547_v55 = vpack.c.b16 %v2518_v20, %v2517_v21  ;;  %v3131_v21 = vpack.c.bf16 %v3099_v17, %v3099_v17  ;;  %v2409_v17 = vld [vmem:[#allocation2 + $0xcf] sm:$0xff] }
 0x1a3   : > { %3330 = vmatmul.bf16.gmra.mxu0 %v3238_v8  ;;  %v2863_v29 = vunpack.c.l.b16 %v2782_v45  ;;  %v3209_v36 = vunpack.c.l.b16 %v3128_v38  ;;  %v2439_v38 = vpack.c.bf16 %v2407_v3, %v2407_v3 }
 0x1a4   : > { %v1294_v5 = vpop.f32.mrf.mxu2 }
 0x1a5   : > { %v1347_v15 = vadd.f32 %v1294_v5, %v981_v18  ;;  %v1640_v9 = vpop.f32.mrf.mxu3  ;;  %v2893_v42 = vpack.c.b16 %v2864_v60, %v2863_v29  ;;  %v3239_v59 = vpack.c.b16 %v3210_v2, %v3209_v36  ;;  %v2752_v5 = vld [vmem:[#allocation2 + $0xa8] sm:$0xff]  ;;  %v2520_v36 = vunpack.c.l.b16 %v2439_v38 }
 0x1a6   : > { %v982_v10 = vpop.f32.mrf.mxu1 }
 0x1a7   : > { %v1693_v6 = vadd.f32 %v1640_v9, %v1347_v15  ;;  %v983_v61 = vadd.f32 %v982_v10, %v4741_v39  ;;  %v2753_v15 = vld [vmem:[#allocation2 + $0xb0] sm:$0xff] }
 0x1a8   : > { %v1988_v4 = vpop.f32.mrf.mxu0  ;;  %v3098_v9 = vld [vmem:[#allocation2 + $0xa9] sm:$0xff] }
 0x1a9   : > { %v4845_v26 = vadd.f32 %v1986_v43, %v1693_v6  ;;  %v2406_v43 = vld [vmem:[#allocation2 + $0xa7] sm:$0xff]  ;;  %v2785_v6 = vpack.c.bf16 %v2753_v15, %v2753_v15 }
 0x1aa   : > { %v2438_v24 = vpack.c.bf16 %v2406_v43, %v2406_v43 }
 0x1ac   : > { %v1296_v48 = vpop.f32.mrf.mxu2  ;;  %v2519_v60 = vunpack.c.l.b16 %v2438_v24  ;;  %v3101_v24 = vld [vmem:[#allocation2 + $0xd1] sm:$0xff] }
 0x1ad   : > { %v1348_v63 = vadd.f32 %v1296_v48, %v983_v61  ;;  %v1642_v44 = vpop.f32.mrf.mxu3  ;;  %v2866_v61 = vunpack.c.l.b16 %v2785_v6 }
 0x1ae   : > { %v985_v47 = vpop.f32.mrf.mxu1 }
 0x1af   : > { %v1694_v18 = vadd.f32 %v1642_v44, %v1348_v63  ;;  %v986_v39 = vadd.f32 %v985_v47, %v4750_v53  ;;  %v3212_v63 = vunpack.c.l.b16 %v3131_v21 }
 0x1b0   : > { %v1991_v51 = vpop.f32.mrf.mxu0 }
 0x1b1   : > { %2296 = vmatmul.bf16.gmra.mxu1 %v3238_v8  ;;  %2643 = vmatmul.bf16.gmra.mxu2 %v2547_v55  ;;  %v4848_v56 = vadd.f32 %v1988_v4, %v1694_v18  ;;  %v2784_v8 = vpack.c.bf16 %v2752_v5, %v2752_v5  ;;  %v3130_v4 = vpack.c.bf16 %v3098_v9, %v3098_v9 }
 0x1b2   : > { %2989 = vmatmul.bf16.gmra.mxu3 %v2893_v42  ;;  %v2548_v18 = vpack.c.b16 %v2520_v36, %v2519_v60  ;;  %v3133_v60 = vpack.c.bf16 %v3101_v24, %v3101_v24  ;;  %v2411_v24 = vld [vmem:[#allocation2 + $0xef] sm:$0xff] }
 0x1b3   : > { %3335 = vmatmul.bf16.gmra.mxu0 %v3239_v59  ;;  %v2865_v53 = vunpack.c.l.b16 %v2784_v8  ;;  %v3211_v48 = vunpack.c.l.b16 %v3130_v4  ;;  %v2441_v4 = vpack.c.bf16 %v2409_v17, %v2409_v17 }
 0x1b4   : > { %v1299_v23 = vpop.f32.mrf.mxu2 }
 0x1b5   : > { %v1349_v10 = vadd.f32 %v1299_v23, %v986_v39  ;;  %v1645_v45 = vpop.f32.mrf.mxu3  ;;  %v2894_v3 = vpack.c.b16 %v2866_v61, %v2865_v53  ;;  %v3240_v5 = vpack.c.b16 %v3212_v63, %v3211_v48  ;;  %v2754_v23 = vld [vmem:[#allocation2 + $0xc8] sm:$0xff]  ;;  %v2522_v48 = vunpack.c.l.b16 %v2441_v4 }
 0x1b6   : > { %v987_v31 = vpop.f32.mrf.mxu1 }
 0x1b7   : > { %v1695_v20 = vadd.f32 %v1645_v45, %v1349_v10  ;;  %v988_v44 = vadd.f32 %v987_v31, %v4758_v14  ;;  %v2755_v10 = vld [vmem:[#allocation2 + $0xd0] sm:$0xff] }
 0x1b8   : > { %v1993_v29 = vpop.f32.mrf.mxu0  ;;  %v3100_v45 = vld [vmem:[#allocation2 + $0xc9] sm:$0xff] }
 0x1b9   : > { %v4851_v2 = vadd.f32 %v1991_v51, %v1695_v20  ;;  %v2408_v51 = vld [vmem:[#allocation2 + $0xc7] sm:$0xff]  ;;  %v2787_v20 = vpack.c.bf16 %v2755_v10, %v2755_v10 }
 0x1ba   : > { %v2440_v6 = vpack.c.bf16 %v2408_v51, %v2408_v51 }
 0x1bc   : > { %v1301_v55 = vpop.f32.mrf.mxu2  ;;  %v2521_v61 = vunpack.c.l.b16 %v2440_v6  ;;  %v3103_v6 = vld [vmem:[#allocation2 + $0xf1] sm:$0xff] }
 0x1bd   : > { %v1350_v47 = vadd.f32 %v1301_v55, %v988_v44  ;;  %v1647_v42 = vpop.f32.mrf.mxu3  ;;  %v2868_v44 = vunpack.c.l.b16 %v2787_v20 }
 0x1be   : > { %v990_v43 = vpop.f32.mrf.mxu1 }
 0x1bf   : > { %v1696_v39 = vadd.f32 %v1647_v42, %v1350_v47  ;;  %v991_v14 = vadd.f32 %v990_v43, %v4766_v35  ;;  %v3214_v47 = vunpack.c.l.b16 %v3133_v60 }
 0x1c0   : > { %v1996_v15 = vpop.f32.mrf.mxu0 }
 0x1c1   : > { %2301 = vmatmul.bf16.gmra.mxu1 %v3239_v59  ;;  %2648 = vmatmul.bf16.gmra.mxu2 %v2548_v18  ;;  %v4854_v9 = vadd.f32 %v1993_v29, %v1696_v39  ;;  %v2786_v59 = vpack.c.bf16 %v2754_v23, %v2754_v23  ;;  %v3132_v29 = vpack.c.bf16 %v3100_v45, %v3100_v45 }
 0x1c2   : > { %2994 = vmatmul.bf16.gmra.mxu3 %v2894_v3  ;;  %v2549_v39 = vpack.c.b16 %v2522_v48, %v2521_v61  ;;  %v3135_v61 = vpack.c.bf16 %v3103_v6, %v3103_v6  ;;  %v2413_v6 = vld [vmem:[#allocation2 + $0x10f] sm:$0xff] }
 0x1c3   : > { %3340 = vmatmul.bf16.gmra.mxu0 %v3240_v5  ;;  %v2867_v35 = vunpack.c.l.b16 %v2786_v59  ;;  %v3213_v55 = vunpack.c.l.b16 %v3132_v29  ;;  %v2443_v29 = vpack.c.bf16 %v2411_v24, %v2411_v24 }
 0x1c4   : > { %v1304_v38 = vpop.f32.mrf.mxu2 }
 0x1c5   : > { %v1351_v31 = vadd.f32 %v1304_v38, %v991_v14  ;;  %v1650_v8 = vpop.f32.mrf.mxu3  ;;  %v2895_v17 = vpack.c.b16 %v2868_v44, %v2867_v35  ;;  %v3241_v23 = vpack.c.b16 %v3214_v47, %v3213_v55  ;;  %v2756_v38 = vld [vmem:[#allocation2 + $0xe8] sm:$0xff]  ;;  %v2524_v55 = vunpack.c.l.b16 %v2443_v29 }
 0x1c6   : > { %v992_v21 = vpop.f32.mrf.mxu1 }
 0x1c7   : > { %v1697_v36 = vadd.f32 %v1650_v8, %v1351_v31  ;;  %v993_v42 = vadd.f32 %v992_v21, %v4774_v57  ;;  %v2757_v31 = vld [vmem:[#allocation2 + $0xf0] sm:$0xff] }
 0x1c8   : > { %v1998_v53 = vpop.f32.mrf.mxu0  ;;  %v3102_v8 = vld [vmem:[#allocation2 + $0xe9] sm:$0xff] }
 0x1c9   : > { %v4857_v63 = vadd.f32 %v1996_v15, %v1697_v36  ;;  %v2410_v15 = vld [vmem:[#allocation2 + $0xe7] sm:$0xff]  ;;  %v2789_v36 = vpack.c.bf16 %v2757_v31, %v2757_v31 }
 0x1ca   : > { %v2442_v20 = vpack.c.bf16 %v2410_v15, %v2410_v15 }
 0x1cc   : > { %v1306_v18 = vpop.f32.mrf.mxu2  ;;  %v2523_v44 = vunpack.c.l.b16 %v2442_v20  ;;  %v3105_v20 = vld [vmem:[#allocation2 + $0x111] sm:$0xff] }
 0x1cd   : > { %v1352_v43 = vadd.f32 %v1306_v18, %v993_v42  ;;  %v1652_v3 = vpop.f32.mrf.mxu3  ;;  %v2870_v42 = vunpack.c.l.b16 %v2789_v36 }
 0x1ce   : > { %v995_v51 = vpop.f32.mrf.mxu1 }
 0x1cf   : > { %v1698_v14 = vadd.f32 %v1652_v3, %v1352_v43  ;;  %v996_v57 = vadd.f32 %v995_v51, %v4718_v0  ;;  %v3216_v43 = vunpack.c.l.b16 %v3135_v61 }
 0x1d0   : > { %v2001_v10 = vpop.f32.mrf.mxu0 }
 0x1d1   : > { %2306 = vmatmul.bf16.gmra.mxu1 %v3240_v5  ;;  %2653 = vmatmul.bf16.gmra.mxu2 %v2549_v39  ;;  %v4860_v45 = vadd.f32 %v1998_v53, %v1698_v14  ;;  %v2788_v5 = vpack.c.bf16 %v2756_v38, %v2756_v38  ;;  %v3134_v53 = vpack.c.bf16 %v3102_v8, %v3102_v8 }
 0x1d2   : > { %2999 = vmatmul.bf16.gmra.mxu3 %v2895_v17  ;;  %v2550_v14 = vpack.c.b16 %v2524_v55, %v2523_v44  ;;  %v3137_v44 = vpack.c.bf16 %v3105_v20, %v3105_v20  ;;  %v2415_v20 = vld [vmem:[#allocation2 + $0x12f] sm:$0xff] }
 0x1d3   : > { %3345 = vmatmul.bf16.gmra.mxu0 %v3241_v23  ;;  %v2869_v0 = vunpack.c.l.b16 %v2788_v5  ;;  %v3215_v18 = vunpack.c.l.b16 %v3134_v53  ;;  %v2445_v53 = vpack.c.bf16 %v2413_v6, %v2413_v6 }
 0x1d4   : > { %v1309_v4 = vpop.f32.mrf.mxu2 }
 0x1d5   : > { %v1353_v21 = vadd.f32 %v1309_v4, %v996_v57  ;;  %v1655_v59 = vpop.f32.mrf.mxu3  ;;  %v2896_v24 = vpack.c.b16 %v2870_v42, %v2869_v0  ;;  %v3242_v38 = vpack.c.b16 %v3216_v43, %v3215_v18  ;;  %v2758_v4 = vld [vmem:[#allocation2 + $0x108] sm:$0xff]  ;;  %v2526_v18 = vunpack.c.l.b16 %v2445_v53 }
 0x1d6   : > { %v997_v60 = vpop.f32.mrf.mxu1 }
 0x1d7   : > { %v1699_v48 = vadd.f32 %v1655_v59, %v1353_v21  ;;  %v998_v3 = vadd.f32 %v997_v60, %v4726_v19  ;;  %v2759_v21 = vld [vmem:[#allocation2 + $0x110] sm:$0xff] }
 0x1d8   : > { %v2003_v35 = vpop.f32.mrf.mxu0  ;;  %v3104_v59 = vld [vmem:[#allocation2 + $0x109] sm:$0xff] }
 0x1d9   : > { %v4863_v47 = vadd.f32 %v2001_v10, %v1699_v48  ;;  %v2412_v10 = vld [vmem:[#allocation2 + $0x107] sm:$0xff]  ;;  %v2791_v48 = vpack.c.bf16 %v2759_v21, %v2759_v21 }
 0x1da   : > { %v2444_v36 = vpack.c.bf16 %v2412_v10, %v2412_v10 }
 0x1dc   : > { %v1311_v39 = vpop.f32.mrf.mxu2  ;;  %v2525_v42 = vunpack.c.l.b16 %v2444_v36  ;;  %v3107_v36 = vld [vmem:[#allocation2 + $0x131] sm:$0xff] }
 0x1dd   : > { %v1354_v51 = vadd.f32 %v1311_v39, %v998_v3  ;;  %v1657_v17 = vpop.f32.mrf.mxu3  ;;  %v2872_v3 = vunpack.c.l.b16 %v2791_v48 }
 0x1de   : > { %v1000_v15 = vpop.f32.mrf.mxu1 }
 0x1df   : > { %v1700_v57 = vadd.f32 %v1657_v17, %v1354_v51  ;;  %v1001_v19 = vadd.f32 %v1000_v15, %v4735_v30  ;;  %v3218_v51 = vunpack.c.l.b16 %v3137_v44 }
 0x1e0   : > { %v2006_v31 = vpop.f32.mrf.mxu0 }
 0x1e1   : > { %2311 = vmatmul.bf16.gmra.mxu1 %v3241_v23  ;;  %2658 = vmatmul.bf16.gmra.mxu2 %v2550_v14  ;;  %v4866_v8 = vadd.f32 %v2003_v35, %v1700_v57  ;;  %v2790_v23 = vpack.c.bf16 %v2758_v4, %v2758_v4  ;;  %v3136_v35 = vpack.c.bf16 %v3104_v59, %v3104_v59 }
 0x1e2   : > { %3004 = vmatmul.bf16.gmra.mxu3 %v2896_v24  ;;  %v2551_v57 = vpack.c.b16 %v2526_v18, %v2525_v42  ;;  %v3139_v42 = vpack.c.bf16 %v3107_v36, %v3107_v36  ;;  %v2417_v36 = vld [vmem:[#allocation2 + $0x14f] sm:$0xff] }
 0x1e3   : > { %3350 = vmatmul.bf16.gmra.mxu0 %v3242_v38  ;;  %v2871_v30 = vunpack.c.l.b16 %v2790_v23  ;;  %v3217_v39 = vunpack.c.l.b16 %v3136_v35  ;;  %v2447_v35 = vpack.c.bf16 %v2415_v20, %v2415_v20 }
 0x1e4   : > { %v1314_v29 = vpop.f32.mrf.mxu2 }
 0x1e5   : > { %v1355_v60 = vadd.f32 %v1314_v29, %v1001_v19  ;;  %v1660_v5 = vpop.f32.mrf.mxu3  ;;  %v2897_v6 = vpack.c.b16 %v2872_v3, %v2871_v30  ;;  %v3243_v4 = vpack.c.b16 %v3218_v51, %v3217_v39  ;;  %v2760_v29 = vld [vmem:[#allocation2 + $0x128] sm:$0xff]  ;;  %v2528_v39 = vunpack.c.l.b16 %v2447_v35 }
 0x1e6   : > { %v1002_v61 = vpop.f32.mrf.mxu1 }
 0x1e7   : > { %v1701_v55 = vadd.f32 %v1660_v5, %v1355_v60  ;;  %v1003_v17 = vadd.f32 %v1002_v61, %v4743_v40  ;;  %v2761_v60 = vld [vmem:[#allocation2 + $0x130] sm:$0xff] }
 0x1e8   : > { %v2008_v0 = vpop.f32.mrf.mxu0  ;;  %v3106_v5 = vld [vmem:[#allocation2 + $0x129] sm:$0xff] }
 0x1e9   : > { %v4869_v43 = vadd.f32 %v2006_v31, %v1701_v55  ;;  %v2414_v31 = vld [vmem:[#allocation2 + $0x127] sm:$0xff]  ;;  %v2793_v55 = vpack.c.bf16 %v2761_v60, %v2761_v60 }
 0x1ea   : > { %v2446_v48 = vpack.c.bf16 %v2414_v31, %v2414_v31 }
 0x1ec   : > { %v1316_v14 = vpop.f32.mrf.mxu2  ;;  %v2527_v3 = vunpack.c.l.b16 %v2446_v48  ;;  %v3109_v48 = vld [vmem:[#allocation2 + $0x151] sm:$0xff] }
 0x1ed   : > { %v1356_v15 = vadd.f32 %v1316_v14, %v1003_v17  ;;  %v1662_v24 = vpop.f32.mrf.mxu3  ;;  %v2874_v17 = vunpack.c.l.b16 %v2793_v55 }
 0x1ee   : > { %v1005_v10 = vpop.f32.mrf.mxu1 }
 0x1ef   : > { %v1702_v19 = vadd.f32 %v1662_v24, %v1356_v15  ;;  %v1006_v40 = vadd.f32 %v1005_v10, %v4752_v54  ;;  %v3220_v15 = vunpack.c.l.b16 %v3139_v42 }
 0x1f0   : > { %v2011_v21 = vpop.f32.mrf.mxu0 }
 0x1f1   : > { %2316 = vmatmul.bf16.gmra.mxu1 %v3242_v38  ;;  %2663 = vmatmul.bf16.gmra.mxu2 %v2551_v57  ;;  %v4872_v59 = vadd.f32 %v2008_v0, %v1702_v19  ;;  %v2792_v38 = vpack.c.bf16 %v2760_v29, %v2760_v29  ;;  %v3138_v0 = vpack.c.bf16 %v3106_v5, %v3106_v5 }
 0x1f2   : > { %3009 = vmatmul.bf16.gmra.mxu3 %v2897_v6  ;;  %v2552_v19 = vpack.c.b16 %v2528_v39, %v2527_v3  ;;  %v3141_v3 = vpack.c.bf16 %v3109_v48, %v3109_v48  ;;  %v2419_v48 = vld [vmem:[#allocation2 + $0x16f] sm:$0xff] }
 0x1f3   : > { %3355 = vmatmul.bf16.gmra.mxu0 %v3243_v4  ;;  %v2873_v54 = vunpack.c.l.b16 %v2792_v38  ;;  %v3219_v14 = vunpack.c.l.b16 %v3138_v0  ;;  %v2449_v0 = vpack.c.bf16 %v2417_v36, %v2417_v36 }
 0x1f4   : > { %v1319_v53 = vpop.f32.mrf.mxu2 }
 0x1f5   : > { %v1357_v61 = vadd.f32 %v1319_v53, %v1006_v40  ;;  %v1665_v23 = vpop.f32.mrf.mxu3  ;;  %v2898_v20 = vpack.c.b16 %v2874_v17, %v2873_v54  ;;  %v3244_v29 = vpack.c.b16 %v3220_v15, %v3219_v14  ;;  %v2762_v53 = vld [vmem:[#allocation2 + $0x148] sm:$0xff]  ;;  %v2530_v14 = vunpack.c.l.b16 %v2449_v0 }
 0x1f6   : > { %v1007_v44 = vpop.f32.mrf.mxu1 }
 0x1f7   : > { %v1703_v18 = vadd.f32 %v1665_v23, %v1357_v61  ;;  %v1008_v24 = vadd.f32 %v1007_v44, %v4760_v12  ;;  %v2763_v61 = vld [vmem:[#allocation2 + $0x150] sm:$0xff] }
 0x1f8   : > { %v2013_v30 = vpop.f32.mrf.mxu0  ;;  %v3108_v23 = vld [vmem:[#allocation2 + $0x149] sm:$0xff] }
 0x1f9   : > { %v4875_v51 = vadd.f32 %v2011_v21, %v1703_v18  ;;  %v2416_v21 = vld [vmem:[#allocation2 + $0x147] sm:$0xff]  ;;  %v2795_v18 = vpack.c.bf16 %v2763_v61, %v2763_v61 }
 0x1fa   : > { %v2448_v55 = vpack.c.bf16 %v2416_v21, %v2416_v21 }
 0x1fc   : > { %v1321_v57 = vpop.f32.mrf.mxu2  ;;  %v2529_v17 = vunpack.c.l.b16 %v2448_v55  ;;  %v3111_v55 = vld [vmem:[#allocation2 + $0x171] sm:$0xff] }
 0x1fd   : > { %v1358_v10 = vadd.f32 %v1321_v57, %v1008_v24  ;;  %v1667_v6 = vpop.f32.mrf.mxu3  ;;  %v2876_v24 = vunpack.c.l.b16 %v2795_v18 }
 0x1fe   : > { %v1010_v31 = vpop.f32.mrf.mxu1 }
 0x1ff   : > { %v1704_v40 = vadd.f32 %v1667_v6, %v1358_v10  ;;  %v1011_v12 = vadd.f32 %v1010_v31, %v4768_v37  ;;  %v3222_v10 = vunpack.c.l.b16 %v3141_v3 }
 0x200   : > { %v2016_v60 = vpop.f32.mrf.mxu0 }
 0x201   : > { %2321 = vmatmul.bf16.gmra.mxu1 %v3243_v4  ;;  %2668 = vmatmul.bf16.gmra.mxu2 %v2552_v19  ;;  %v4878_v5 = vadd.f32 %v2013_v30, %v1704_v40  ;;  %v2794_v4 = vpack.c.bf16 %v2762_v53, %v2762_v53  ;;  %v3140_v30 = vpack.c.bf16 %v3108_v23, %v3108_v23 }
 0x202   : > { %3014 = vmatmul.bf16.gmra.mxu3 %v2898_v20  ;;  %v2553_v40 = vpack.c.b16 %v2530_v14, %v2529_v17  ;;  %v3143_v17 = vpack.c.bf16 %v3111_v55, %v3111_v55  ;;  %v2421_v55 = vld [vmem:[#allocation2 + $0x18f] sm:$0xff] }
 0x203   : > { %3360 = vmatmul.bf16.gmra.mxu0 %v3244_v29  ;;  %v2875_v37 = vunpack.c.l.b16 %v2794_v4  ;;  %v3221_v57 = vunpack.c.l.b16 %v3140_v30  ;;  %v2451_v30 = vpack.c.bf16 %v2419_v48, %v2419_v48 }
 0x204   : > { %v1324_v35 = vpop.f32.mrf.mxu2 }
 0x205   : > { %v1359_v44 = vadd.f32 %v1324_v35, %v1011_v12  ;;  %v1670_v38 = vpop.f32.mrf.mxu3  ;;  %v2899_v36 = vpack.c.b16 %v2876_v24, %v2875_v37  ;;  %v3245_v53 = vpack.c.b16 %v3222_v10, %v3221_v57  ;;  %v2764_v35 = vld [vmem:[#allocation2 + $0x168] sm:$0xff]  ;;  %v2532_v10 = vunpack.c.l.b16 %v2451_v30  ;;  %v2767_v30 = vld [vmem:[#allocation2 + $0x190] sm:$0xff] }
 0x206   : > { %v1012_v42 = vpop.f32.mrf.mxu1  ;;  %v2796_v3 = vpack.c.bf16 %v2764_v35, %v2764_v35 }
 0x207   : > { %v1705_v39 = vadd.f32 %v1670_v38, %v1359_v44  ;;  %v1013_v6 = vadd.f32 %v1012_v42, %v4776_v62  ;;  %v2765_v44 = vld [vmem:[#allocation2 + $0x170] sm:$0xff] }
 0x208   : > { %v2018_v54 = vpop.f32.mrf.mxu0  ;;  %v3110_v38 = vld [vmem:[#allocation2 + $0x169] sm:$0xff] }
 0x209   : > { %v4881_v15 = vadd.f32 %v2016_v60, %v1705_v39  ;;  %v2418_v60 = vld [vmem:[#allocation2 + $0x167] sm:$0xff]  ;;  %v2797_v39 = vpack.c.bf16 %v2765_v44, %v2765_v44 }
 0x20a   : > { %v2450_v18 = vpack.c.bf16 %v2418_v60, %v2418_v60 }
 0x20c   : > { %v1326_v19 = vpop.f32.mrf.mxu2  ;;  %v2531_v57 = vunpack.c.l.b16 %v2450_v18 }
 0x20d   : > { %v1360_v31 = vadd.f32 %v1326_v19, %v1013_v6  ;;  %v1672_v20 = vpop.f32.mrf.mxu3  ;;  %v2878_v6 = vunpack.c.l.b16 %v2797_v39 }
 0x20e   : > { %v2287_v21 = vpop.f32.mrf.mxu1 }
 0x20f   : > { %v1706_v12 = vadd.f32 %v1672_v20, %v1360_v31  ;;  %v2367_v62 = vadd.f32 %v2287_v21, %v4780_v52  ;;  %v2877_v52 = vunpack.c.l.b16 %v2796_v3  ;;  %v3224_v31 = vunpack.c.l.b16 %v3143_v17  ;;  %v3113_v3 = vld [vmem:[#allocation2 + $0x191] sm:$0xff] }
 0x210   : > { %v3326_v61 = vpop.f32.mrf.mxu0 }
 0x211   : > { %2326 = vmatmul.bf16.gmra.mxu1 %v3244_v29  ;;  %2673 = vmatmul.bf16.gmra.mxu2 %v2553_v40  ;;  %v4884_v23 = vadd.f32 %v2018_v54, %v1706_v12  ;;  %v3142_v54 = vpack.c.bf16 %v3110_v38, %v3110_v38  ;;  %v2554_v12 = vpack.c.b16 %v2532_v10, %v2531_v57  ;;  %v2420_v38 = vld [vmem:[#allocation2 + $0x187] sm:$0xff] }
 0x212   : > { %3019 = vmatmul.bf16.gmra.mxu3 %v2899_v36 }
 0x213   : > { %3365 = vmatmul.bf16.gmra.mxu0 %v3245_v53  ;;  %v3223_v19 = vunpack.c.l.b16 %v3142_v54 }
 0x214   : > { %v2634_v0 = vpop.f32.mrf.mxu2 }
 0x215   : > { %v2714_v42 = vadd.f32 %v2634_v0, %v2367_v62  ;;  %v2980_v4 = vpop.f32.mrf.mxu3  ;;  %v3246_v48 = vpack.c.b16 %v3224_v31, %v3223_v19  ;;  %v2766_v0 = vld [vmem:[#allocation2 + $0x188] sm:$0xff]  ;;  %v3145_v19 = vpack.c.bf16 %v3113_v3, %v3113_v3 }
 0x216   : > { %v2289_v29 = vpop.f32.mrf.mxu1  ;;  %v2798_v10 = vpack.c.bf16 %v2766_v0, %v2766_v0 }
 0x217   : > { %v3060_v14 = vadd.f32 %v2980_v4, %v2714_v42  ;;  %v2368_v20 = vadd.f32 %v2289_v29, %v4783_v27  ;;  %v3112_v29 = vld [vmem:[#allocation2 + $0x189] sm:$0xff] }
 0x218   : > { %v3328_v37 = vpop.f32.mrf.mxu0 }
 0x219   : > { %v3406_v24 = vadd.f32 %v3326_v61, %v3060_v14  ;;  %v2900_v61 = vpack.c.b16 %v2878_v6, %v2877_v52  ;;  %v2799_v52 = vpack.c.bf16 %v2767_v30, %v2767_v30  ;;  %v3144_v6 = vpack.c.bf16 %v3112_v29, %v3112_v29 }
 0x21b   : > { %3438 = vst [vmem:[%s4889_s21] sm:$0xff] %v3406_v24  ;;  %v3508_v42 = vmul.f32 %v3406_v24, %v3406_v24 }
 0x21c   : > { %v2636_v40 = vpop.f32.mrf.mxu2 }
 0x21d   : > { %v2715_v21 = vadd.f32 %v2636_v40, %v2368_v20  ;;  %v2982_v36 = vpop.f32.mrf.mxu3 }
 0x21e   : > { %v2292_v60 = vpop.f32.mrf.mxu1 }
 0x21f   : > { %v3061_v35 = vadd.f32 %v2982_v36, %v2715_v21  ;;  %v2369_v18 = vadd.f32 %v2292_v60, %v4786_v1  ;;  %v2879_v21 = vunpack.c.l.b16 %v2798_v10  ;;  %v2880_v36 = vunpack.c.l.b16 %v2799_v52  ;;  %v3115_v10 = vld [vmem:[#allocation2 + $0x1b1] sm:$0xff] }
 0x220   : > { %v3331_v62 = vpop.f32.mrf.mxu0  ;;  %v3226_v60 = vunpack.c.l.b16 %v3145_v19 }
 0x221   : > { %v3407_v44 = vadd.f32 %v3328_v37, %v3061_v35  ;;  %2331 = vmatmul.bf16.gmra.mxu1 %v3245_v53  ;;  %2678 = vmatmul.bf16.gmra.mxu2 %v2554_v12  ;;  %v2452_v53 = vpack.c.bf16 %v2420_v38, %v2420_v38  ;;  %v2453_v37 = vpack.c.bf16 %v2421_v55, %v2421_v55  ;;  %v3225_v12 = vunpack.c.l.b16 %v3144_v6 }
 0x222   : > { %3024 = vmatmul.bf16.gmra.mxu3 %v2900_v61  ;;  %v2901_v30 = vpack.c.b16 %v2880_v36, %v2879_v21  ;;  %v3147_v36 = vpack.c.bf16 %v3115_v10, %v3115_v10  ;;  %v2425_v10 = vld [vmem:[#allocation2 + $0x1cf] sm:$0xff] }
 0x223   : > { %3370 = vmatmul.bf16.gmra.mxu0 %v3246_v48  ;;  %3439 = vst [vmem:[%s4889_s21 + $0x8] sm:$0xff] %v3407_v44  ;;  %v3470_v27 = vadd.f32 %v3407_v44, %v3406_v24  ;;  %v3509_v4 = vmul.f32 %v3407_v44, %v3407_v44  ;;  %v2533_v40 = vunpack.c.l.b16 %v2452_v53  ;;  %v2534_v1 = vunpack.c.l.b16 %v2453_v37  ;;  %v2769_v37 = vld [vmem:[#allocation2 + $0x1b0] sm:$0xff] }
 0x224   : > { %v2639_v39 = vpop.f32.mrf.mxu2 }
 0x225   : > { %v3540_v54 = vadd.f32 %v3509_v4, %v3508_v42  ;;  %v2716_v17 = vadd.f32 %v2639_v39, %v2369_v18  ;;  %v2985_v14 = vpop.f32.mrf.mxu3  ;;  %v2555_v4 = vpack.c.b16 %v2534_v1, %v2533_v40  ;;  %v2801_v1 = vpack.c.bf16 %v2769_v37, %v2769_v37 }
 0x226   : > { %v2294_v57 = vpop.f32.mrf.mxu1 }
 0x227   : > { %v3062_v31 = vadd.f32 %v2985_v14, %v2716_v17  ;;  %v2370_v44 = vadd.f32 %v2294_v57, %v4789_v34  ;;  %v2423_v17 = vld [vmem:[#allocation2 + $0x1af] sm:$0xff] }
 0x228   : > { %v3333_v24 = vpop.f32.mrf.mxu0  ;;  %v2768_v14 = vld [vmem:[#allocation2 + $0x1a8] sm:$0xff] }
 0x229   : > { %v3408_v20 = vadd.f32 %v3331_v62, %v3062_v31  ;;  %v3247_v62 = vpack.c.b16 %v3226_v60, %v3225_v12  ;;  %v3114_v57 = vld [vmem:[#allocation2 + $0x1a9] sm:$0xff]  ;;  %v2800_v40 = vpack.c.bf16 %v2768_v14, %v2768_v14 }
 0x22a   : > { %v3146_v21 = vpack.c.bf16 %v3114_v57, %v3114_v57 }
 0x22b   : > { %3440 = vst [vmem:[%s4889_s21 + $0x10] sm:$0xff] %v3408_v20  ;;  %v3471_v61 = vadd.f32 %v3470_v27, %v3408_v20  ;;  %v3510_v35 = vmul.f32 %v3408_v20, %v3408_v20  ;;  %v2422_v27 = vld [vmem:[#allocation2 + $0x1a7] sm:$0xff] }
 0x22c   : > { %v2641_v38 = vpop.f32.mrf.mxu2 }
 0x22d   : > { %v3541_v55 = vadd.f32 %v3540_v54, %v3510_v35  ;;  %v2717_v0 = vadd.f32 %v2641_v38, %v2370_v44  ;;  %v2987_v42 = vpop.f32.mrf.mxu3  ;;  %v2881_v44 = vunpack.c.l.b16 %v2800_v40  ;;  %v2882_v38 = vunpack.c.l.b16 %v2801_v1 }
 0x22e   : > { %v2297_v18 = vpop.f32.mrf.mxu1 }
 0x22f   : > { %v3063_v29 = vadd.f32 %v2987_v42, %v2717_v0  ;;  %v2371_v53 = vadd.f32 %v2297_v18, %v4792_v11  ;;  %v3227_v0 = vunpack.c.l.b16 %v3146_v21  ;;  %v3228_v42 = vunpack.c.l.b16 %v3147_v36 }
 0x230   : > { %v3336_v3 = vpop.f32.mrf.mxu0 }
 0x231   : > { %v3409_v39 = vadd.f32 %v3333_v24, %v3063_v29  ;;  %2336 = vmatmul.bf16.gmra.mxu1 %v3246_v48  ;;  %2683 = vmatmul.bf16.gmra.mxu2 %v2555_v4  ;;  %v2454_v24 = vpack.c.bf16 %v2422_v27, %v2422_v27  ;;  %v2455_v48 = vpack.c.bf16 %v2423_v17, %v2423_v17 }
 0x232   : > { %3029 = vmatmul.bf16.gmra.mxu3 %v2901_v30 }
 0x233   : > { %3375 = vmatmul.bf16.gmra.mxu0 %v3247_v62  ;;  %3441 = vst [vmem:[%s4889_s21 + $0x18] sm:$0xff] %v3409_v39  ;;  %v3472_v34 = vadd.f32 %v3471_v61, %v3409_v39  ;;  %v3511_v54 = vmul.f32 %v3409_v39, %v3409_v39  ;;  %v2535_v35 = vunpack.c.l.b16 %v2454_v24  ;;  %v2536_v11 = vunpack.c.l.b16 %v2455_v48  ;;  %v3116_v24 = vld [vmem:[#allocation2 + $0x1c9] sm:$0xff]  ;;  %v3117_v48 = vld [vmem:[#allocation2 + $0x1d1] sm:$0xff] }
 0x234   : > { %v2644_v52 = vpop.f32.mrf.mxu2 }
 0x235   : > { %v3542_v6 = vadd.f32 %v3541_v55, %v3511_v54  ;;  %v2718_v19 = vadd.f32 %v2644_v52, %v2371_v53  ;;  %v2990_v31 = vpop.f32.mrf.mxu3  ;;  %v2556_v17 = vpack.c.b16 %v2536_v11, %v2535_v35  ;;  %v2902_v54 = vpack.c.b16 %v2882_v38, %v2881_v44  ;;  %v2770_v52 = vld [vmem:[#allocation2 + $0x1c8] sm:$0xff] }
 0x236   : > { %v2299_v20 = vpop.f32.mrf.mxu1  ;;  %v3148_v35 = vpack.c.bf16 %v3116_v24, %v3116_v24  ;;  %v3149_v11 = vpack.c.bf16 %v3117_v48, %v3117_v48  ;;  %v2772_v24 = vld [vmem:[#allocation2 + $0x1e8] sm:$0xff] }
 0x237   : > { %v3064_v12 = vadd.f32 %v2990_v31, %v2718_v19  ;;  %v2372_v18 = vadd.f32 %v2299_v20, %v4795_v22  ;;  %v2771_v31 = vld [vmem:[#allocation2 + $0x1d0] sm:$0xff] }
 0x238   : > { %v3338_v60 = vpop.f32.mrf.mxu0 }
 0x239   : > { %v3410_v61 = vadd.f32 %v3336_v3, %v3064_v12  ;;  %v3248_v3 = vpack.c.b16 %v3228_v42, %v3227_v0 }
 0x23b   : > { %3442 = vst [vmem:[%s4889_s21 + $0x20] sm:$0xff] %v3410_v61  ;;  %v3473_v55 = vadd.f32 %v3472_v34, %v3410_v61  ;;  %v3512_v4 = vmul.f32 %v3410_v61, %v3410_v61  ;;  %v2424_v34 = vld [vmem:[#allocation2 + $0x1c7] sm:$0xff]  ;;  %v2803_v61 = vpack.c.bf16 %v2771_v31, %v2771_v31  ;;  %v2427_v31 = vld [vmem:[#allocation2 + $0x1ef] sm:$0xff] }
 0x23c   : > { %v2646_v30 = vpop.f32.mrf.mxu2  ;;  %v2456_v36 = vpack.c.bf16 %v2424_v34, %v2424_v34 }
 0x23d   : > { %v3543_v29 = vadd.f32 %v3542_v6, %v3512_v4  ;;  %v2719_v39 = vadd.f32 %v2646_v30, %v2372_v18  ;;  %v2992_v27 = vpop.f32.mrf.mxu3  ;;  %v2884_v4 = vunpack.c.l.b16 %v2803_v61  ;;  %v3229_v18 = vunpack.c.l.b16 %v3148_v35 }
 0x23e   : > { %v2302_v14 = vpop.f32.mrf.mxu1  ;;  %v2537_v42 = vunpack.c.l.b16 %v2456_v36  ;;  %v3230_v30 = vunpack.c.l.b16 %v3149_v11  ;;  %v2804_v11 = vpack.c.bf16 %v2772_v24, %v2772_v24 }
 0x23f   : > { %v3065_v53 = vadd.f32 %v2992_v27, %v2719_v39  ;;  %v2373_v19 = vadd.f32 %v2302_v14, %v4798_v28 }
 0x240   : > { %v3341_v37 = vpop.f32.mrf.mxu0 }
 0x241   : > { %v3411_v57 = vadd.f32 %v3338_v60, %v3065_v53  ;;  %2341 = vmatmul.bf16.gmra.mxu1 %v3247_v62  ;;  %2688 = vmatmul.bf16.gmra.mxu2 %v2556_v17  ;;  %v2457_v62 = vpack.c.bf16 %v2425_v10, %v2425_v10  ;;  %v2802_v60 = vpack.c.bf16 %v2770_v52, %v2770_v52 }
 0x242   : > { %3034 = vmatmul.bf16.gmra.mxu3 %v2902_v54 }
 0x243   : > { %3380 = vmatmul.bf16.gmra.mxu0 %v3248_v3  ;;  %3443 = vst [vmem:[%s4889_s21 + $0x28] sm:$0xff] %v3411_v57  ;;  %v3474_v22 = vadd.f32 %v3473_v55, %v3411_v57  ;;  %v3513_v6 = vmul.f32 %v3411_v57, %v3411_v57  ;;  %v2538_v28 = vunpack.c.l.b16 %v2457_v62  ;;  %v2883_v55 = vunpack.c.l.b16 %v2802_v60 }
 0x244   : > { %v2649_v20 = vpop.f32.mrf.mxu2 }
 0x245   : > { %v3544_v40 = vadd.f32 %v3543_v29, %v3513_v6  ;;  %v2720_v1 = vadd.f32 %v2649_v20, %v2373_v19  ;;  %v2995_v21 = vpop.f32.mrf.mxu3  ;;  %v2557_v57 = vpack.c.b16 %v2538_v28, %v2537_v42  ;;  %v2903_v10 = vpack.c.b16 %v2884_v4, %v2883_v55 }
 0x246   : > { %v2304_v12 = vpop.f32.mrf.mxu1 }
 0x247   : > { %v3066_v44 = vadd.f32 %v2995_v21, %v2720_v1  ;;  %v2374_v27 = vadd.f32 %v2304_v12, %v4800_v46  ;;  %v3118_v1 = vld [vmem:[#allocation2 + $0x1e9] sm:$0xff]  ;;  %v3119_v21 = vld [vmem:[#allocation2 + $0x1f1] sm:$0xff] }
 0x248   : > { %v3343_v38 = vpop.f32.mrf.mxu0 }
 0x249   : > { %v3412_v0 = vadd.f32 %v3341_v37, %v3066_v44  ;;  %v3249_v37 = vpack.c.b16 %v3230_v30, %v3229_v18  ;;  %v2885_v18 = vunpack.c.l.b16 %v2804_v11 }
 0x24b   : > { %3444 = vst [vmem:[%s4889_s21 + $0x30] sm:$0xff] %v3412_v0  ;;  %v3475_v29 = vadd.f32 %v3474_v22, %v3412_v0  ;;  %v3514_v39 = vmul.f32 %v3412_v0, %v3412_v0  ;;  %v2426_v22 = vld [vmem:[#allocation2 + $0x1e7] sm:$0xff]  ;;  %v3151_v0 = vpack.c.bf16 %v3119_v21, %v3119_v21  ;;  %v2775_v21 = vld [vmem:[#allocation2 + $0x210] sm:$0xff] }
 0x24c   : > { %v2651_v17 = vpop.f32.mrf.mxu2  ;;  %v2458_v61 = vpack.c.bf16 %v2426_v22, %v2426_v22 }
 0x24d   : > { %v3545_v14 = vadd.f32 %v3544_v40, %v3514_v39  ;;  %v2721_v54 = vadd.f32 %v2651_v17, %v2374_v27  ;;  %v2997_v53 = vpop.f32.mrf.mxu3  ;;  %v2773_v40 = vld [vmem:[#allocation2 + $0x1f0] sm:$0xff]  ;;  %v3232_v39 = vunpack.c.l.b16 %v3151_v0 }
 0x24e   : > { %v2307_v34 = vpop.f32.mrf.mxu1  ;;  %v2805_v44 = vpack.c.bf16 %v2773_v40, %v2773_v40  ;;  %v2539_v4 = vunpack.c.l.b16 %v2458_v61 }
 0x24f   : > { %v3067_v52 = vadd.f32 %v2997_v53, %v2721_v54  ;;  %v2375_v20 = vadd.f32 %v2307_v34, %v4811_v41 }
 0x250   : > { %v3346_v6 = vpop.f32.mrf.mxu0  ;;  %v2886_v30 = vunpack.c.l.b16 %v2805_v44 }
 0x251   : > { %v3413_v19 = vadd.f32 %v3343_v38, %v3067_v52  ;;  %2346 = vmatmul.bf16.gmra.mxu1 %v3248_v3  ;;  %2693 = vmatmul.bf16.gmra.mxu2 %v2557_v57  ;;  %v2459_v3 = vpack.c.bf16 %v2427_v31, %v2427_v31  ;;  %v3150_v38 = vpack.c.bf16 %v3118_v1, %v3118_v1 }
 0x252   : > { %3039 = vmatmul.bf16.gmra.mxu3 %v2903_v10 }
 0x253   : > { %3385 = vmatmul.bf16.gmra.mxu0 %v3249_v37  ;;  %3445 = vst [vmem:[%s4889_s21 + $0x38] sm:$0xff] %v3413_v19  ;;  %v3476_v46 = vadd.f32 %v3475_v29, %v3413_v19  ;;  %v3515_v48 = vmul.f32 %v3413_v19, %v3413_v19  ;;  %v2540_v41 = vunpack.c.l.b16 %v2459_v3  ;;  %v3231_v29 = vunpack.c.l.b16 %v3150_v38 }
 0x254   : > { %v2654_v36 = vpop.f32.mrf.mxu2  ;;  %v2904_v19 = vpack.c.b16 %v2886_v30, %v2885_v18  ;;  %v2807_v38 = vpack.c.bf16 %v2775_v21, %v2775_v21  ;;  %v3123_v21 = vld [vmem:[#allocation2 + $0x231] sm:$0xff] }
 0x255   : > { %v3546_v62 = vadd.f32 %v3545_v14, %v3515_v48  ;;  %v2722_v12 = vadd.f32 %v2654_v36, %v2375_v20  ;;  %v3000_v60 = vpop.f32.mrf.mxu3  ;;  %v2558_v10 = vpack.c.b16 %v2540_v41, %v2539_v4  ;;  %v2429_v48 = vld [vmem:[#allocation2 + $0x20f] sm:$0xff] }
 0x256   : > { %v2309_v35 = vpop.f32.mrf.mxu1  ;;  %v2774_v20 = vld [vmem:[#allocation2 + $0x208] sm:$0xff]  ;;  %v2888_v30 = vunpack.c.l.b16 %v2807_v38 }
 0x257   : > { %v3068_v42 = vadd.f32 %v3000_v60, %v2722_v12  ;;  %v2376_v14 = vadd.f32 %v2309_v35, %v4814_v7  ;;  %v3120_v36 = vld [vmem:[#allocation2 + $0x209] sm:$0xff]  ;;  %v2806_v44 = vpack.c.bf16 %v2774_v20, %v2774_v20 }
 0x258   : > { %v3348_v28 = vpop.f32.mrf.mxu0  ;;  %v3152_v0 = vpack.c.bf16 %v3120_v36, %v3120_v36  ;;  %v2431_v20 = vld [vmem:[#allocation2 + $0x22f] sm:$0xff] }
 0x259   : > { %v3414_v55 = vadd.f32 %v3346_v6, %v3068_v42  ;;  %v3250_v6 = vpack.c.b16 %v3232_v39, %v3231_v29  ;;  %v2887_v18 = vunpack.c.l.b16 %v2806_v44  ;;  %v3155_v44 = vpack.c.bf16 %v3123_v21, %v3123_v21 }
 0x25a   : > { %v3233_v29 = vunpack.c.l.b16 %v3152_v0 }
 0x25b   : > { %3446 = vst [vmem:[%s4889_s21 + $0x40] sm:$0xff] %v3414_v55  ;;  %v3477_v27 = vadd.f32 %v3476_v46, %v3414_v55  ;;  %v3516_v17 = vmul.f32 %v3414_v55, %v3414_v55  ;;  %v2428_v46 = vld [vmem:[#allocation2 + $0x207] sm:$0xff] }
 0x25c   : > { %v2656_v54 = vpop.f32.mrf.mxu2  ;;  %v2460_v35 = vpack.c.bf16 %v2428_v46, %v2428_v46 }
 0x25d   : > { %v3547_v53 = vadd.f32 %v3546_v62, %v3516_v17  ;;  %v2723_v57 = vadd.f32 %v2656_v54, %v2376_v14  ;;  %v3002_v34 = vpop.f32.mrf.mxu3  ;;  %v3121_v62 = vld [vmem:[#allocation2 + $0x211] sm:$0xff] }
 0x25e   : > { %v2312_v52 = vpop.f32.mrf.mxu1  ;;  %v3153_v42 = vpack.c.bf16 %v3121_v62, %v3121_v62  ;;  %v2541_v41 = vunpack.c.l.b16 %v2460_v35  ;;  %v4240_v35 = vld [vmem:[#allocation2] sm:$0xff] }
 0x25f   : > { %v3069_v22 = vadd.f32 %v3002_v34, %v2723_v57  ;;  %v2377_v1 = vadd.f32 %v2312_v52, %v4817_v13 }
 0x260   : > { %v3351_v31 = vpop.f32.mrf.mxu0  ;;  %v3234_v39 = vunpack.c.l.b16 %v3153_v42 }
 0x261   : > { %v3415_v24 = vadd.f32 %v3348_v28, %v3069_v22  ;;  %2351 = vmatmul.bf16.gmra.mxu1 %v3249_v37  ;;  %2698 = vmatmul.bf16.gmra.mxu2 %v2558_v10  ;;  %v2461_v37 = vpack.c.bf16 %v2429_v48, %v2429_v48  ;;  %v2430_v48 = vld [vmem:[#allocation2 + $0x227] sm:$0xff] }
 0x262   : > { %3044 = vmatmul.bf16.gmra.mxu3 %v2904_v19  ;;  %v2905_v19 = vpack.c.b16 %v2888_v30, %v2887_v18  ;;  %v3251_v22 = vpack.c.b16 %v3234_v39, %v3233_v29 }
 0x263   : > { %3390 = vmatmul.bf16.gmra.mxu0 %v3250_v6  ;;  %3447 = vst [vmem:[%s4889_s21 + $0x48] sm:$0xff] %v3415_v24  ;;  %v3478_v7 = vadd.f32 %v3477_v27, %v3415_v24  ;;  %v3517_v40 = vmul.f32 %v3415_v24, %v3415_v24  ;;  %v2542_v13 = vunpack.c.l.b16 %v2461_v37  ;;  %v2808_v37 = vpack.c.bf16 %v4240_v35, %v4240_v35 }
 0x264   : > { %v2659_v12 = vpop.f32.mrf.mxu2 }
 0x265   : > { %v3548_v60 = vadd.f32 %v3547_v53, %v3517_v40  ;;  %v2724_v61 = vadd.f32 %v2659_v12, %v2377_v1  ;;  %v3005_v3 = vpop.f32.mrf.mxu3  ;;  %v2559_v10 = vpack.c.b16 %v2542_v13, %v2541_v41  ;;  %v3122_v1 = vld [vmem:[#allocation2 + $0x229] sm:$0xff]  ;;  %v3236_v41 = vunpack.c.l.b16 %v3155_v44 }
 0x266   : > { %v2314_v11 = vpop.f32.mrf.mxu1 }
 0x267   : > { %v3070_v28 = vadd.f32 %v3005_v3, %v2724_v61  ;;  %v2378_v14 = vadd.f32 %v2314_v11, %v4820_v58  ;;  %v2462_v61 = vpack.c.bf16 %v2430_v48, %v2430_v48  ;;  %v2463_v3 = vpack.c.bf16 %v2431_v20, %v2431_v20 }
 0x268   : > { %v3353_v55 = vpop.f32.mrf.mxu0  ;;  %v3154_v11 = vpack.c.bf16 %v3122_v1, %v3122_v1 }
 0x269   : > { %v3416_v4 = vadd.f32 %v3351_v31, %v3070_v28  ;;  %v2543_v28 = vunpack.c.l.b16 %v2462_v61 }
 0x26b   : > { %3448 = vst [vmem:[%s4889_s21 + $0x50] sm:$0xff] %v3416_v4  ;;  %v3479_v27 = vadd.f32 %v3478_v7, %v3416_v4  ;;  %v3518_v17 = vmul.f32 %v3416_v4, %v3416_v4  ;;  %v3235_v4 = vunpack.c.l.b16 %v3154_v11 }
 0x26c   : > { %v2661_v54 = vpop.f32.mrf.mxu2 }
 0x26d   : > { %v3549_v53 = vadd.f32 %v3548_v60, %v3518_v17  ;;  %v2725_v57 = vadd.f32 %v2661_v54, %v2378_v14  ;;  %v3007_v34 = vpop.f32.mrf.mxu3 }
 0x26e   : > { %v2317_v52 = vpop.f32.mrf.mxu1 }
 0x26f   : > { %v3071_v31 = vadd.f32 %v3007_v34, %v2725_v57  ;;  %v2379_v40 = vadd.f32 %v2317_v52, %v4827_v50  ;;  %v2889_v50 = vunpack.c.l.b16 %v2808_v37  ;;  %v3252_v57 = vpack.c.b16 %v3236_v41, %v3235_v4 }
 0x270   : > { %v3356_v24 = vpop.f32.mrf.mxu0 }
 0x271   : > { %v3417_v46 = vadd.f32 %v3353_v55, %v3071_v31  ;;  %2356 = vmatmul.bf16.gmra.mxu1 %v3250_v6  ;;  %2703 = vmatmul.bf16.gmra.mxu2 %v2559_v10  ;;  %v2544_v55 = vunpack.c.l.b16 %v2463_v3 }
 0x272   : > { %3049 = vmatmul.bf16.gmra.mxu3 %v2905_v19 }
 0x273   : > { %3395 = vmatmul.bf16.gmra.mxu0 %v3251_v22  ;;  %3449 = vst [vmem:[%s4889_s21 + $0x58] sm:$0xff] %v3417_v46  ;;  %v3480_v58 = vadd.f32 %v3479_v27, %v3417_v46  ;;  %v3519_v7 = vmul.f32 %v3417_v46, %v3417_v46  ;;  %v2560_v14 = vpack.c.b16 %v2544_v55, %v2543_v28 }
 0x274   : > { %v2664_v36 = vpop.f32.mrf.mxu2 }
 0x275   : > { %v3550_v62 = vadd.f32 %v3549_v53, %v3519_v7  ;;  %v2726_v12 = vadd.f32 %v2664_v36, %v2379_v40  ;;  %v3010_v60 = vpop.f32.mrf.mxu3  ;;  %v2906_v53 = vpack.c.b16 %v2889_v50, %v2889_v50 }
 0x276   : > { %v2319_v6 = vpop.f32.mrf.mxu1 }
 0x277   : > { %v3072_v38 = vadd.f32 %v3010_v60, %v2726_v12  ;;  %v2380_v30 = vadd.f32 %v2319_v6, %v4830_v25 }
 0x278   : > { %v3358_v0 = vpop.f32.mrf.mxu0 }
 0x279   : > { %v3418_v42 = vadd.f32 %v3356_v24, %v3072_v38 }
 0x27b   : > { %3450 = vst [vmem:[%s4889_s21 + $0x60] sm:$0xff] %v3418_v42  ;;  %v3481_v13 = vadd.f32 %v3480_v58, %v3418_v42  ;;  %v3520_v18 = vmul.f32 %v3418_v42, %v3418_v42 }
 0x27c   : > { %v2666_v29 = vpop.f32.mrf.mxu2 }
 0x27d   : > { %v3551_v39 = vadd.f32 %v3550_v62, %v3520_v18  ;;  %v2727_v27 = vadd.f32 %v2666_v29, %v2380_v30  ;;  %v3012_v17 = vpop.f32.mrf.mxu3 }
 0x27e   : > { %v2322_v54 = vpop.f32.mrf.mxu1 }
 0x27f   : > { %v3073_v34 = vadd.f32 %v3012_v17, %v2727_v27  ;;  %v2381_v31 = vadd.f32 %v2322_v54, %v4833_v16 }
 0x280   : > { %v3361_v10 = vpop.f32.mrf.mxu0 }
 0x281   : > { %v3419_v52 = vadd.f32 %v3358_v0, %v3073_v34  ;;  %2361 = vmatmul.bf16.gmra.mxu1 %v3251_v22  ;;  %2708 = vmatmul.bf16.gmra.mxu2 %v2560_v14 }
 0x282   : > { %3054 = vmatmul.bf16.gmra.mxu3 %v2906_v53 }
 0x283   : > { %3400 = vmatmul.bf16.gmra.mxu0 %v3252_v57  ;;  %3451 = vst [vmem:[%s4889_s21 + $0x68] sm:$0xff] %v3419_v52  ;;  %v3482_v19 = vadd.f32 %v3481_v13, %v3419_v52  ;;  %v3521_v25 = vmul.f32 %v3419_v52, %v3419_v52 }
 0x284   : > { %v2669_v24 = vpop.f32.mrf.mxu2 }
 0x285   : > { %v3552_v46 = vadd.f32 %v3551_v39, %v3521_v25  ;;  %v2728_v48 = vadd.f32 %v2669_v24, %v2381_v31  ;;  %v3015_v20 = vpop.f32.mrf.mxu3 }
 0x286   : > { %v2324_v58 = vpop.f32.mrf.mxu1 }
 0x287   : > { %v3074_v7 = vadd.f32 %v3015_v20, %v2728_v48  ;;  %v2382_v36 = vadd.f32 %v2324_v58, %v4836_v32 }
 0x288   : > { %v3363_v40 = vpop.f32.mrf.mxu0 }
 0x289   : > { %v3420_v1 = vadd.f32 %v3361_v10, %v3074_v7 }
 0x28b   : > { %3452 = vst [vmem:[%s4889_s21 + $0x70] sm:$0xff] %v3420_v1  ;;  %v3483_v22 = vadd.f32 %v3482_v19, %v3420_v1  ;;  %v3522_v21 = vmul.f32 %v3420_v1, %v3420_v1 }
 0x28c   : > { %v2671_v62 = vpop.f32.mrf.mxu2 }
 0x28d   : > { %v3553_v12 = vadd.f32 %v3552_v46, %v3522_v21  ;;  %v2729_v60 = vadd.f32 %v2671_v62, %v2382_v36  ;;  %v3017_v61 = vpop.f32.mrf.mxu3 }
 0x28e   : > { %v2327_v3 = vpop.f32.mrf.mxu1 }
 0x28f   : > { %v3075_v16 = vadd.f32 %v3017_v61, %v2729_v60  ;;  %v2383_v44 = vadd.f32 %v2327_v3, %v4839_v33 }
 0x290   : > { %v3366_v6 = vpop.f32.mrf.mxu0 }
 0x291   : > { %v3421_v35 = vadd.f32 %v3363_v40, %v3075_v16 }
 0x293   : > { %3453 = vst [vmem:[%s4889_s21 + $0x78] sm:$0xff] %v3421_v35  ;;  %v3484_v37 = vadd.f32 %v3483_v22, %v3421_v35  ;;  %v3523_v11 = vmul.f32 %v3421_v35, %v3421_v35 }
 0x294   : > { %v2674_v38 = vpop.f32.mrf.mxu2 }
 0x295   : > { %v3554_v0 = vadd.f32 %v3553_v12, %v3523_v11  ;;  %v2730_v42 = vadd.f32 %v2674_v38, %v2383_v44  ;;  %v3020_v28 = vpop.f32.mrf.mxu3 }
 0x296   : > { %v2329_v55 = vpop.f32.mrf.mxu1 }
 0x297   : > { %v3076_v32 = vadd.f32 %v3020_v28, %v2730_v42  ;;  %v2384_v18 = vadd.f32 %v2329_v55, %v4842_v49 }
 0x298   : > { %v3368_v50 = vpop.f32.mrf.mxu0 }
 0x299   : > { %v3422_v4 = vadd.f32 %v3366_v6, %v3076_v32 }
 0x29b   : > { %3454 = vst [vmem:[%s4889_s21 + $0x80] sm:$0xff] %v3422_v4  ;;  %v3485_v41 = vadd.f32 %v3484_v37, %v3422_v4  ;;  %v3524_v13 = vmul.f32 %v3422_v4, %v3422_v4 }
 0x29c   : > { %v2676_v30 = vpop.f32.mrf.mxu2 }
 0x29d   : > { %v3555_v29 = vadd.f32 %v3554_v0, %v3524_v13  ;;  %v2731_v39 = vadd.f32 %v2676_v30, %v2384_v18  ;;  %v3022_v27 = vpop.f32.mrf.mxu3 }
 0x29e   : > { %v2332_v17 = vpop.f32.mrf.mxu1 }
 0x29f   : > { %v3077_v33 = vadd.f32 %v3022_v27, %v2731_v39  ;;  %v2385_v34 = vadd.f32 %v2332_v17, %v4845_v26 }
 0x2a0   : > { %v3371_v14 = vpop.f32.mrf.mxu0 }
 0x2a1   : > { %v3423_v54 = vadd.f32 %v3368_v50, %v3077_v33 }
 0x2a3   : > { %3455 = vst [vmem:[%s4889_s21 + $0x88] sm:$0xff] %v3423_v54  ;;  %v3486_v53 = vadd.f32 %v3485_v41, %v3423_v54  ;;  %v3525_v57 = vmul.f32 %v3423_v54, %v3423_v54 }
 0x2a4   : > { %v2679_v10 = vpop.f32.mrf.mxu2 }
 0x2a5   : > { %v3556_v52 = vadd.f32 %v3555_v29, %v3525_v57  ;;  %v2732_v19 = vadd.f32 %v2679_v10, %v2385_v34  ;;  %v3025_v25 = vpop.f32.mrf.mxu3 }
 0x2a6   : > { %v2334_v31 = vpop.f32.mrf.mxu1 }
 0x2a7   : > { %v3078_v49 = vadd.f32 %v3025_v25, %v2732_v19  ;;  %v2386_v58 = vadd.f32 %v2334_v31, %v4848_v56 }
 0x2a8   : > { %v3373_v24 = vpop.f32.mrf.mxu0 }
 0x2a9   : > { %v3424_v46 = vadd.f32 %v3371_v14, %v3078_v49 }
 0x2ab   : > { %3456 = vst [vmem:[%s4889_s21 + $0x90] sm:$0xff] %v3424_v46  ;;  %v3487_v48 = vadd.f32 %v3486_v53, %v3424_v46  ;;  %v3526_v20 = vmul.f32 %v3424_v46, %v3424_v46 }
 0x2ac   : > { %v2681_v7 = vpop.f32.mrf.mxu2 }
 0x2ad   : > { %v3557_v40 = vadd.f32 %v3556_v52, %v3526_v20  ;;  %v2733_v1 = vadd.f32 %v2681_v7, %v2386_v58  ;;  %v3027_v22 = vpop.f32.mrf.mxu3 }
 0x2ae   : > { %v2337_v21 = vpop.f32.mrf.mxu1 }
 0x2af   : > { %v3079_v26 = vadd.f32 %v3027_v22, %v2733_v1  ;;  %v2387_v61 = vadd.f32 %v2337_v21, %v4851_v2 }
 0x2b0   : > { %v3376_v36 = vpop.f32.mrf.mxu0 }
 0x2b1   : > { %v3425_v62 = vadd.f32 %v3373_v24, %v3079_v26 }
 0x2b3   : > { %3457 = vst [vmem:[%s4889_s21 + $0x98] sm:$0xff] %v3425_v62  ;;  %v3488_v12 = vadd.f32 %v3487_v48, %v3425_v62  ;;  %v3527_v60 = vmul.f32 %v3425_v62, %v3425_v62 }
 0x2b4   : > { %v2684_v3 = vpop.f32.mrf.mxu2 }
 0x2b5   : > { %v3558_v16 = vadd.f32 %v3557_v40, %v3527_v60  ;;  %v2734_v6 = vadd.f32 %v2684_v3, %v2387_v61  ;;  %v3030_v35 = vpop.f32.mrf.mxu3 }
 0x2b6   : > { %v2339_v37 = vpop.f32.mrf.mxu1 }
 0x2b7   : > { %v3080_v56 = vadd.f32 %v3030_v35, %v2734_v6  ;;  %v2388_v42 = vadd.f32 %v2339_v37, %v4854_v9 }
 0x2b8   : > { %v3378_v11 = vpop.f32.mrf.mxu0 }
 0x2b9   : > { %v3426_v44 = vadd.f32 %v3376_v36, %v3080_v56 }
 0x2bb   : > { %3458 = vst [vmem:[%s4889_s21 + $0xa0] sm:$0xff] %v3426_v44  ;;  %v3489_v38 = vadd.f32 %v3488_v12, %v3426_v44  ;;  %v3528_v0 = vmul.f32 %v3426_v44, %v3426_v44 }
 0x2bc   : > { %v2686_v28 = vpop.f32.mrf.mxu2 }
 0x2bd   : > { %v3559_v55 = vadd.f32 %v3558_v16, %v3528_v0  ;;  %v2735_v32 = vadd.f32 %v2686_v28, %v2388_v42  ;;  %v3032_v50 = vpop.f32.mrf.mxu3 }
 0x2be   : > { %v2342_v4 = vpop.f32.mrf.mxu1 }
 0x2bf   : > { %v3081_v2 = vadd.f32 %v3032_v50, %v2735_v32  ;;  %v2389_v29 = vadd.f32 %v2342_v4, %v4857_v63 }
 0x2c0   : > { %v3381_v41 = vpop.f32.mrf.mxu0 }
 0x2c1   : > { %v3427_v13 = vadd.f32 %v3378_v11, %v3081_v2 }
 0x2c3   : > { %3459 = vst [vmem:[%s4889_s21 + $0xa8] sm:$0xff] %v3427_v13  ;;  %v3490_v18 = vadd.f32 %v3489_v38, %v3427_v13  ;;  %v3529_v30 = vmul.f32 %v3427_v13, %v3427_v13 }
 0x2c4   : > { %v2689_v39 = vpop.f32.mrf.mxu2 }
 0x2c5   : > { %v3560_v27 = vadd.f32 %v3559_v55, %v3529_v30  ;;  %v2736_v17 = vadd.f32 %v2689_v39, %v2389_v29  ;;  %v3035_v33 = vpop.f32.mrf.mxu3 }
 0x2c6   : > { %v2344_v14 = vpop.f32.mrf.mxu1 }
 0x2c7   : > { %v3082_v9 = vadd.f32 %v3035_v33, %v2736_v17  ;;  %v2390_v10 = vadd.f32 %v2344_v14, %v4860_v45 }
 0x2c8   : > { %v3383_v54 = vpop.f32.mrf.mxu0 }
 0x2c9   : > { %v3428_v53 = vadd.f32 %v3381_v41, %v3082_v9 }
 0x2cb   : > { %3460 = vst [vmem:[%s4889_s21 + $0xb0] sm:$0xff] %v3428_v53  ;;  %v3491_v57 = vadd.f32 %v3490_v18, %v3428_v53  ;;  %v3530_v34 = vmul.f32 %v3428_v53, %v3428_v53 }
 0x2cc   : > { %v2691_v52 = vpop.f32.mrf.mxu2 }
 0x2cd   : > { %v3561_v19 = vadd.f32 %v3560_v27, %v3530_v34  ;;  %v2737_v25 = vadd.f32 %v2691_v52, %v2390_v10  ;;  %v3037_v31 = vpop.f32.mrf.mxu3 }
 0x2ce   : > { %v2347_v49 = vpop.f32.mrf.mxu1 }
 0x2cf   : > { %v3083_v63 = vadd.f32 %v3037_v31, %v2737_v25  ;;  %v2391_v58 = vadd.f32 %v2347_v49, %v4863_v47 }
 0x2d0   : > { %v3386_v24 = vpop.f32.mrf.mxu0 }
 0x2d1   : > { %v3429_v46 = vadd.f32 %v3383_v54, %v3083_v63 }
 0x2d3   : > { %3461 = vst [vmem:[%s4889_s21 + $0xb8] sm:$0xff] %v3429_v46  ;;  %v3492_v48 = vadd.f32 %v3491_v57, %v3429_v46  ;;  %v3531_v20 = vmul.f32 %v3429_v46, %v3429_v46 }
 0x2d4   : > { %v2694_v7 = vpop.f32.mrf.mxu2 }
 0x2d5   : > { %v3562_v40 = vadd.f32 %v3561_v19, %v3531_v20  ;;  %v2738_v1 = vadd.f32 %v2694_v7, %v2391_v58  ;;  %v3040_v22 = vpop.f32.mrf.mxu3 }
 0x2d6   : > { %v2349_v21 = vpop.f32.mrf.mxu1 }
 0x2d7   : > { %v3084_v45 = vadd.f32 %v3040_v22, %v2738_v1  ;;  %v2392_v60 = vadd.f32 %v2349_v21, %v4866_v8 }
 0x2d8   : > { %v3388_v26 = vpop.f32.mrf.mxu0 }
 0x2d9   : > { %v3430_v36 = vadd.f32 %v3386_v24, %v3084_v45 }
 0x2db   : > { %3462 = vst [vmem:[%s4889_s21 + $0xc0] sm:$0xff] %v3430_v36  ;;  %v3493_v62 = vadd.f32 %v3492_v48, %v3430_v36  ;;  %v3532_v12 = vmul.f32 %v3430_v36, %v3430_v36 }
 0x2dc   : > { %v2696_v61 = vpop.f32.mrf.mxu2 }
 0x2dd   : > { %v3563_v3 = vadd.f32 %v3562_v40, %v3532_v12  ;;  %v2739_v16 = vadd.f32 %v2696_v61, %v2392_v60  ;;  %v3042_v6 = vpop.f32.mrf.mxu3 }
 0x2de   : > { %v2352_v35 = vpop.f32.mrf.mxu1 }
 0x2df   : > { %v3085_v47 = vadd.f32 %v3042_v6, %v2739_v16  ;;  %v2393_v38 = vadd.f32 %v2352_v35, %v4869_v43 }
 0x2e0   : > { %v3391_v37 = vpop.f32.mrf.mxu0 }
 0x2e1   : > { %v3431_v56 = vadd.f32 %v3388_v26, %v3085_v47 }
 0x2e3   : > { %3463 = vst [vmem:[%s4889_s21 + $0xc8] sm:$0xff] %v3431_v56  ;;  %v3494_v11 = vadd.f32 %v3493_v62, %v3431_v56  ;;  %v3533_v44 = vmul.f32 %v3431_v56, %v3431_v56 }
 0x2e4   : > { %v2699_v0 = vpop.f32.mrf.mxu2 }
 0x2e5   : > { %v3564_v42 = vadd.f32 %v3563_v3, %v3533_v44  ;;  %v2740_v28 = vadd.f32 %v2699_v0, %v2393_v38  ;;  %v3045_v55 = vpop.f32.mrf.mxu3 }
 0x2e6   : > { %v2354_v32 = vpop.f32.mrf.mxu1 }
 0x2e7   : > { %v3086_v8 = vadd.f32 %v3045_v55, %v2740_v28  ;;  %v2394_v13 = vadd.f32 %v2354_v32, %v4872_v59 }
 0x2e8   : > { %v3393_v50 = vpop.f32.mrf.mxu0 }
 0x2e9   : > { %v3432_v4 = vadd.f32 %v3391_v37, %v3086_v8 }
 0x2eb   : > { %3464 = vst [vmem:[%s4889_s21 + $0xd0] sm:$0xff] %v3432_v4  ;;  %v3495_v2 = vadd.f32 %v3494_v11, %v3432_v4  ;;  %v3534_v41 = vmul.f32 %v3432_v4, %v3432_v4 }
 0x2ec   : > { %v2701_v18 = vpop.f32.mrf.mxu2 }
 0x2ed   : > { %v3565_v30 = vadd.f32 %v3564_v42, %v3534_v41  ;;  %v2741_v29 = vadd.f32 %v2701_v18, %v2394_v13  ;;  %v3047_v39 = vpop.f32.mrf.mxu3 }
 0x2ee   : > { %v2357_v43 = vpop.f32.mrf.mxu1 }
 0x2ef   : > { %v3087_v27 = vadd.f32 %v3047_v39, %v2741_v29  ;;  %v2395_v54 = vadd.f32 %v2357_v43, %v4875_v51 }
 0x2f0   : > { %v3396_v33 = vpop.f32.mrf.mxu0 }
 0x2f1   : > { %v3433_v17 = vadd.f32 %v3393_v50, %v3087_v27 }
 0x2f3   : > { %3465 = vst [vmem:[%s4889_s21 + $0xd8] sm:$0xff] %v3433_v17  ;;  %v3496_v14 = vadd.f32 %v3495_v2, %v3433_v17  ;;  %v3535_v9 = vmul.f32 %v3433_v17, %v3433_v17 }
 0x2f4   : > { %v2704_v53 = vpop.f32.mrf.mxu2 }
 0x2f5   : > { %v3566_v57 = vadd.f32 %v3565_v30, %v3535_v9  ;;  %v2742_v34 = vadd.f32 %v2704_v53, %v2395_v54  ;;  %v3050_v10 = vpop.f32.mrf.mxu3 }
 0x2f6   : > { %v2359_v59 = vpop.f32.mrf.mxu1 }
 0x2f7   : > { %v3088_v52 = vadd.f32 %v3050_v10, %v2742_v34  ;;  %v2396_v49 = vadd.f32 %v2359_v59, %v4878_v5 }
 0x2f8   : > { %v3398_v63 = vpop.f32.mrf.mxu0 }
 0x2f9   : > { %v3434_v19 = vadd.f32 %v3396_v33, %v3088_v52 }
 0x2fb   : > { %3466 = vst [vmem:[%s4889_s21 + $0xe0] sm:$0xff] %v3434_v19  ;;  %v3497_v25 = vadd.f32 %v3496_v14, %v3434_v19  ;;  %v3536_v31 = vmul.f32 %v3434_v19, %v3434_v19 }
 0x2fc   : > { %v2706_v24 = vpop.f32.mrf.mxu2 }
 0x2fd   : > { %v3567_v46 = vadd.f32 %v3566_v57, %v3536_v31  ;;  %v2743_v48 = vadd.f32 %v2706_v24, %v2396_v49  ;;  %v3052_v20 = vpop.f32.mrf.mxu3 }
 0x2fe   : > { %v2362_v51 = vpop.f32.mrf.mxu1 }
 0x2ff   : > { %v3089_v58 = vadd.f32 %v3052_v20, %v2743_v48  ;;  %v2397_v22 = vadd.f32 %v2362_v51, %v4881_v15 }
 0x300   : > { %v3401_v36 = vpop.f32.mrf.mxu0 }
 0x301   : > { %v3435_v7 = vadd.f32 %v3398_v63, %v3089_v58 }
 0x303   : > { %3467 = vst [vmem:[%s4889_s21 + $0xe8] sm:$0xff] %v3435_v7  ;;  %v3498_v40 = vadd.f32 %v3497_v25, %v3435_v7  ;;  %v3537_v1 = vmul.f32 %v3435_v7, %v3435_v7 }
 0x304   : > { %v2709_v21 = vpop.f32.mrf.mxu2 }
 0x305   : > { %v3568_v45 = vadd.f32 %v3567_v46, %v3537_v1  ;;  %v2744_v26 = vadd.f32 %v2709_v21, %v2397_v22  ;;  %v3055_v5 = vpop.f32.mrf.mxu3 }
 0x306   : > { %v2364_v12 = vpop.f32.mrf.mxu1 }
 0x307   : > { %v3090_v62 = vadd.f32 %v3055_v5, %v2744_v26  ;;  %v2398_v16 = vadd.f32 %v2364_v12, %v4884_v23 }
 0x308   : > { %v3403_v56 = vpop.f32.mrf.mxu0 }
 0x309   : > { %v3436_v60 = vadd.f32 %v3401_v36, %v3090_v62 }
 0x30b   : > { %3468 = vst [vmem:[%s4889_s21 + $0xf0] sm:$0xff] %v3436_v60  ;;  %v3499_v61 = vadd.f32 %v3498_v40, %v3436_v60  ;;  %v3538_v3 = vmul.f32 %v3436_v60, %v3436_v60 }
 0x30c   : > { %v2711_v15 = vpop.f32.mrf.mxu2 }
 0x30d   : > { %v3569_v6 = vadd.f32 %v3568_v45, %v3538_v3  ;;  %v2745_v35 = vadd.f32 %v2711_v15, %v2398_v16  ;;  %v3057_v47 = vpop.f32.mrf.mxu3 }
 0x30f   : > { %v3091_v37 = vadd.f32 %v3057_v47, %v2745_v35 }
 0x311   : > { %v3437_v11 = vadd.f32 %v3403_v56, %v3091_v37 }
 0x313   : > { %3469 = vst [vmem:[%s4889_s21 + $0xf8] sm:$0xff] %v3437_v11  ;;  %v3500_v44 = vadd.f32 %v3499_v61, %v3437_v11  ;;  %v3539_v23 = vmul.f32 %v3437_v11, %v3437_v11 }
 0x314   : > { %4328 = shalt.err (!%p4325_p10)
}
 0x315   : > { %s4440_s21 = smov 128   ;;  %s4441_s26 = smov 8   ;;  %v3501_v38 = vrot.slane %v3500_v44, 4  ;;  %v3570_v0 = vadd.f32 %v3569_v6, %v3539_v23 }
 0x316   : > { %4172 = dma.vmem_to_hbm [thread:$0]  (%p4536_p7), %s3600_s30, 4096, %s3602_s11, %s3579_s12, %s4440_s21, %s4440_s21, %s4441_s26  }
 0x317   : > { %v3502_v42 = vadd.f32 %v3501_v38, %v3500_v44  ;;  %v3571_v28 = vrot.slane %v3570_v0, 4  ;;  %s3613_s28 = scalar_lea.hbm %s5042_s3, %s4488_s19  ;;  %s3583_s13 = sand.u32 1, %s4488_s19  }
 0x318   : > { %s3626_s23 = scalar_lea.hbm %s5043_s4, %s4488_s19  ;;  %s244_s5 = scalar_lea.vmem [#allocation9], %s4564_s25 }
 0x319   : > { %v3503_v55 = vrot.slane %v3502_v42, 2  ;;  %v3572_v32 = vadd.f32 %v3571_v28, %v3570_v0  ;;  %s4980_s30 = sshll.u32 %s244_s5, 4  ;;  %s4982_s11 = sshll.u32 %s3613_s28, 4  ;;  %s3616_s30 = int_to_ptr.vmem [resolvable:$true] %s4980_s30  ;;  %s3618_s11 = int_to_ptr.hbm [resolvable:$true] %s4982_s11 }
 0x31a   : > { %s250_s12 = scalar_lea.vmem [#allocation11], %s4564_s25  ;;  %s4987_s7 = sshll.u32 %s3626_s23, 4  ;;  %s3631_s7 = int_to_ptr.hbm [resolvable:$true] %s4987_s7 }
 0x31b   : > { %v3504_v8 = vadd.f32 %v3503_v55, %v3502_v42  ;;  %v3573_v50 = vrot.slane %v3572_v32, 2  ;;  %s4985_s6 = sshll.u32 %s250_s12, 4  ;;  %s3584_s19 = scalar_lea.sflag [#allocation10], %s3583_s13  ;;  %s3629_s6 = int_to_ptr.vmem [resolvable:$true] %s4985_s6 }
 0x31c   : > { %s4343_s21 = sshra.s32 %s3618_s11, 4  ;;  %s4349_s27 = scalar_lea.hbm %s5042_s3, 2  ;;  %s4344_s21 = int_to_ptr.hbm [resolvable:$true] %s4343_s21 }
 0x31d   : > { %v3574_v4 = vadd.f32 %v3573_v50, %v3572_v32  ;;  %v3505_v2 = vrot.slane %v3504_v8, 1  ;;  %s4345_s26 = scalar_lea.hbm %s4344_s21, 1  ;;  %p4350_p3 = scmp.lt.s32.totalorder %s4344_s21, %s5042_s3 }
 0x31e   : > { %p4346_p12 = scmp.ne.s32.totalorder %s4344_s21, %s4345_s26  ;;  %p4351_p5 = scmp.lt.s32.totalorder %s4349_s27, %s4345_s26 }
 0x31f   : > { %v3506_v41 = vadd.f32 %v3505_v2, %v3504_v8  ;;  %v3575_v13 = vrot.slane %v3574_v4, 1 }
 0x320   : > { %p4347_p13 = pnand %p4346_p12, %p4536_p7  ;;  %p4352_p1 = por %p4351_p5, %p4350_p3 }
 0x321   : > { %3507 = vst [vmem:[%s244_s5] sm:$0x1] %v3506_v41  ;;  %v3576_v18 = vadd.f32 %v3575_v13, %v3574_v4 }
 0x322   : > { %p4348_p0 = pneg %p4347_p13 }
 0x324   : > { %p4353_p4 = pnand %p4352_p1, %p4348_p0 }
 0x326   : > { %4356 = shalt.err (!%p4353_p4)
}
 0x327   : > { %4173 = dma.vmem_to_hbm [thread:$0]  (%p4536_p7), %s3616_s30, 16, %s3618_s11, %s3584_s19   ;;  %3577 = vst [vmem:[%s250_s12] sm:$0x1] %v3576_v18 }
 0x328   : > { %s4371_s13 = sshra.s32 %s3631_s7, 4  ;;  %s4377_s21 = scalar_lea.hbm %s5043_s4, 2  ;;  %s4372_s13 = int_to_ptr.hbm [resolvable:$true] %s4371_s13 }
 0x329   : > { %s4373_s10 = scalar_lea.hbm %s4372_s13, 1  ;;  %p4378_p2 = scmp.lt.s32.totalorder %s4372_s13, %s5043_s4 }
 0x32a   : > { %p4374_p8 = scmp.ne.s32.totalorder %s4372_s13, %s4373_s10  ;;  %p4379_p10 = scmp.lt.s32.totalorder %s4377_s21, %s4373_s10 }
 0x32c   : > { %p4375_p11 = pnand %p4374_p8, %p4536_p7  ;;  %p4380_p12 = por %p4379_p10, %p4378_p2 }
 0x32e   : > { %p4376_p9 = pneg %p4375_p11 }
 0x330   : > { %p4381_p13 = pnand %p4380_p12, %p4376_p9 }
 0x332   : > { %4384 = shalt.err (!%p4381_p13)
}
 0x333   : > { %4174 = dma.vmem_to_hbm [thread:$0]  (%p4536_p7), %s3629_s6, 16, %s3631_s7, %s3584_s19  }
 0x334 PF: > { %s3642_s30 = sand.u32 1, %s4419_s15   ;;  %p5049_p0 = scmp.ge.s32.totalorder %s4431_s18, 2 }
 0x335   : > { %s3643_s11 = scalar_lea.sflag [#allocation5], %s3642_s30 }
 0x336   : > { %p4187_p3 = pnand %p5049_p0, %p4504_p6 }
 0x338   : > { %p4188_p5 = pneg %p4187_p3 }
 0x33a   : > { %4410 = dma.done.wait (%p4188_p5), %s3643_s11, 4096  }
 0x33b   : > { %4412 = vsyncadd (%p4188_p5), %s3643_s11, 4294963200  ;;  %s3652_s9 = sand.u32 1, %s3764_s20  }
 0x33c   : > { %s3653_s12 = scalar_lea.sflag [#allocation10], %s3652_s9 }
 0x33d   : > { %4414 = dma.done.wait (%p4188_p5), %s3653_s12, 32  }
 0x33e   : > { %4416 = vsyncadd (%p4188_p5), %s3653_s12, 4294967264  ;;  %p22_p7 = scmp.ge.s32.totalorder %s4522_s29, 4   ;;  %s5050_s15 = smov %s4423_s16 }
 0x33f   : > { %s5051_s16 = smov %s4427_s17  ;;  %s5052_s17 = smov %s4532_s8 }
 0x340   : > { %s5053_s18 = smov %s4522_s29  ;;  %24 = sbr.rel (!%p22_p7) target bundleno = 8 (0x8), region = 119 }
 0x345   :  { %3667 = vsyncpa [#allocation4], 1 }
 0x346   :  { %3669 = vsyncpa [#allocation4 + $0x1], 1 }
 0x347   :  { %3670 = vsyncpa [#allocation7], 1 }
 0x348   :  { %3671 = vsyncpa [#allocation5], 1 }
 0x349   :  { %3673 = vsyncpa [#allocation5 + $0x1], 1 }
 0x34a   :  { %3674 = vsyncpa [#allocation10], 1 }
 0x34b   :  { %3676 = vsyncpa [#allocation10 + $0x1], 1 }

</bundles_post_ra>
